<compile_context>
chip_gen: v7x
topology: tpu7x:2x2x1
jax: 0.10.0
libtpu: 0.0.40
codegen_flags: <defaults>
</compile_context>

<pallas_src>
import functools
import math

import jax
import jax.numpy as jnp
from jax.experimental import pallas as pl
from jax.experimental.pallas import tpu as pltpu

# ----------------------------- config ---------------------------------------
D_MODEL = 32
N_HEADS = 4
DIM_FF = 64
NUM_LAYERS = 2
NUM_QUERIES = 8     # tgt sequence length
MEM_LEN = 16        # memory sequence length (e.g. H*W of encoder features)
BATCH = 2
LN_EPS = 1e-5

PARAM_ORDER = (
    "sa_in_w", "sa_in_b", "sa_out_w", "sa_out_b",
    "ca_in_w", "ca_in_b", "ca_out_w", "ca_out_b",
    "lin1_w", "lin1_b", "lin2_w", "lin2_b",
    "n1_w", "n1_b", "n2_w", "n2_b", "n3_w", "n3_b",
)


# ------------------------- in-kernel math helpers ----------------------------
def _layer_norm_cols(x, w, b, eps=LN_EPS):
    """LayerNorm over the feature axis for column-major x: (D, N); w/b: (D, 1)."""
    mu = jnp.mean(x, axis=0, keepdims=True)
    xc = x - mu
    var = jnp.mean(xc * xc, axis=0, keepdims=True)
    return xc * jax.lax.rsqrt(var + eps) * w + b


def _batch_block_mask(n_q, n_k, batch):
    """(n_q, n_k) bool mask: True where the query row and key row belong to the
    same batch element (rows are (token, batch) flattened, batch fastest)."""
    bq = jax.lax.broadcasted_iota(jnp.int32, (n_q, n_k), 0) % batch
    bk = jax.lax.broadcasted_iota(jnp.int32, (n_q, n_k), 1) % batch
    return bq == bk


def _attention_cols(q_t, k_t, v_t, w_out, b_out, mask, nheads):
    """PyTorch-style multi-head attention on column-major projected tensors.

    q_t: (D, Nq), k_t/v_t: (D, Nk) -- already linearly projected.
    w_out: (D, D) (PyTorch orientation), b_out: (D, 1), mask: (Nq, Nk) bool.
    Returns the attention output, column-major (D, Nq).
    """
    d = q_t.shape[0]
    hd = d // nheads
    scale = 1.0 / math.sqrt(hd)

    head_outs = []
    for h in range(nheads):            # tiny, unrolled; slices are sublane-aligned
        rows = slice(h * hd, (h + 1) * hd)
        qh = q_t[rows, :]              # (hd, Nq)  -- free sublane slice
        kh = k_t[rows, :]              # (hd, Nk)
        vh = v_t[rows, :]              # (hd, Nk)
        s = jnp.dot(qh.T, kh, preferred_element_type=jnp.float32) * scale  # (Nq, Nk)
        s = jnp.where(mask, s, -1e30)
        s = s - jnp.max(s, axis=-1, keepdims=True)
        p = jnp.exp(s)
        p = p * pl.reciprocal(jnp.sum(p, axis=-1, keepdims=True), approx=True)
        head_outs.append(
            jnp.dot(vh, p.T, preferred_element_type=jnp.float32))          # (hd, Nq)
    o_t = jnp.concatenate(head_outs, axis=0)                               # (D, Nq)
    # concat-heads output projection: one matmul, no per-head lane slicing
    return jnp.dot(w_out, o_t, preferred_element_type=jnp.float32) + b_out


# ------------------------------ fused kernel ---------------------------------
def fused_decoder_kernel(tgt_ref, mem_ref, qpos_ref, pos_ref,
                         sa_iw, sa_ib, sa_ow, sa_ob,
                         ca_iw, ca_ib, ca_ow, ca_ob,
                         l1w, l1b, l2w, l2b,
                         n1w, n1b, n2w, n2b, n3w, n3b,
                         fn_w, fn_b,
                         out_ref, *, batch, nheads, num_layers):
    d = fn_w.shape[0]

    # Column-major activations: features on sublanes, tokens on lanes.
    x = tgt_ref[...].astype(jnp.float32).T       # (D, Nt)
    mem = mem_ref[...].astype(jnp.float32).T     # (D, Ns)
    qp = qpos_ref[...].astype(jnp.float32).T     # (D, Nt)
    pp = pos_ref[...].astype(jnp.float32).T      # (D, Ns)
    n_t = x.shape[1]
    n_s = mem.shape[1]

    self_mask = _batch_block_mask(n_t, n_t, batch)
    cross_mask = _batch_block_mask(n_t, n_s, batch)
    mem_pp = mem + pp                            # reused by every layer

    for l in range(num_layers):                  # unrolled at trace time
        # ---- self attention: q = k = x + query_pos, v = x ----
        iw, ib = sa_iw[l], sa_ib[l]              # (3D, D), (3D, 1)
        qk = jnp.dot(iw[:2 * d, :], x + qp,
                     preferred_element_type=jnp.float32) + ib[:2 * d, :]
        v_t = jnp.dot(iw[2 * d:, :], x,
                      preferred_element_type=jnp.float32) + ib[2 * d:, :]
        sa = _attention_cols(qk[:d, :], qk[d:, :], v_t,
                             sa_ow[l], sa_ob[l], self_mask, nheads)
        x = _layer_norm_cols(x + sa, n1w[l], n1b[l])

        # ---- cross attention: q = x + query_pos, k = mem + pos, v = mem ----
        iw, ib = ca_iw[l], ca_ib[l]
        q_t = jnp.dot(iw[:d, :], x + qp,
                      preferred_element_type=jnp.float32) + ib[:d, :]
        k_t = jnp.dot(iw[d:2 * d, :], mem_pp,
                      preferred_element_type=jnp.float32) + ib[d:2 * d, :]
        v_t = jnp.dot(iw[2 * d:, :], mem,
                      preferred_element_type=jnp.float32) + ib[2 * d:, :]
        ca = _attention_cols(q_t, k_t, v_t, ca_ow[l], ca_ob[l],
                             cross_mask, nheads)
        x = _layer_norm_cols(x + ca, n2w[l], n2b[l])

        # ---- feed forward (relu) ----
        h = jnp.maximum(
            jnp.dot(l1w[l], x, preferred_element_type=jnp.float32) + l1b[l], 0.0)
        f = jnp.dot(l2w[l], h, preferred_element_type=jnp.float32) + l2b[l]
        x = _layer_norm_cols(x + f, n3w[l], n3b[l])

    # ---- final decoder norm ----
    x = _layer_norm_cols(x, fn_w[...], fn_b[...])
    out_ref[...] = x.T.astype(out_ref.dtype)


# ------------------------------ wrappers --------------------------------------
def pack_decoder_params(layers_params, norm_w, norm_b):
    """Stack per-layer params on a leading axis; 1-D params -> (out, 1) columns
    so they broadcast against column-major activations with no transpose."""
    def stack(key):
        arrs = [lp[key] for lp in layers_params]
        if arrs[0].ndim == 1:
            arrs = [a.reshape(-1, 1) for a in arrs]
        return jnp.stack(arrs, axis=0)

    packed = tuple(stack(k) for k in PARAM_ORDER)
    return packed + (norm_w.reshape(-1, 1), norm_b.reshape(-1, 1))


@jax.jit
def transformer_decoder(tgt, memory, query_pos, pos, packed_params):
    """tgt/query_pos: (T, B, D); memory/pos: (S, B, D).  Returns (T, B, D)."""
    t, b, d = tgt.shape
    s = memory.shape[0]
    num_layers = packed_params[0].shape[0]

    kernel = functools.partial(fused_decoder_kernel, batch=b,
                               nheads=N_HEADS, num_layers=num_layers)
    vmem_spec = pl.BlockSpec(memory_space=pltpu.MemorySpace.VMEM)
    n_inputs = 4 + len(packed_params)

    out2d = pl.pallas_call(
        kernel,
        out_shape=jax.ShapeDtypeStruct((t * b, d), tgt.dtype),
        in_specs=[vmem_spec] * n_inputs,
        out_specs=vmem_spec,
    )(
        # (seq, batch, d) -> (seq*batch, d): free reshapes, no XLA transposes.
        tgt.reshape(t * b, d), memory.reshape(s * b, d),
        query_pos.reshape(t * b, d), pos.reshape(s * b, d),
        *packed_params,
    )
    return out2d.reshape(t, b, d)


# ---------------------- plain-JAX reference (for checking) -------------------
def _ref_mha(q_in, k_in, v_in, in_w, in_b, out_w, out_b, nheads):
    d = q_in.shape[-1]
    hd = d // nheads
    q = q_in @ in_w[:d].T + in_b[:d]
    k = k_in @ in_w[d:2 * d].T + in_b[d:2 * d]
    v = v_in @ in_w[2 * d:].T + in_b[2 * d:]
    q = q.reshape(-1, nheads, hd).transpose(1, 0, 2) / math.sqrt(hd)
    k = k.reshape(-1, nheads, hd).transpose(1, 0, 2)
    v = v.reshape(-1, nheads, hd).transpose(1, 0, 2)
    s = jnp.einsum("hqd,hkd->hqk", q, k)
    p = jax.nn.softmax(s, axis=-1)
    o = jnp.einsum("hqk,hkd->hqd", p, v).transpose(1, 0, 2).reshape(-1, d)
    return o @ out_w.T + out_b


def _ref_ln(x, w, b):
    mu = x.mean(-1, keepdims=True)
    var = ((x - mu) ** 2).mean(-1, keepdims=True)
    return (x - mu) / jnp.sqrt(var + LN_EPS) * w + b


def reference_decoder(tgt, memory, query_pos, pos, layers_params,
                      norm_w, norm_b, nheads=N_HEADS):
    _, bsz, _ = tgt.shape
    outs = []
    for b in range(bsz):
        x, mem = tgt[:, b], memory[:, b]
        qp, pp = query_pos[:, b], pos[:, b]
        for p in layers_params:
            sa = _ref_mha(x + qp, x + qp, x, p["sa_in_w"], p["sa_in_b"],
                          p["sa_out_w"], p["sa_out_b"], nheads)
            x = _ref_ln(x + sa, p["n1_w"], p["n1_b"])
            ca = _ref_mha(x + qp, mem + pp, mem, p["ca_in_w"], p["ca_in_b"],
                          p["ca_out_w"], p["ca_out_b"], nheads)
            x = _ref_ln(x + ca, p["n2_w"], p["n2_b"])
            h = jax.nn.relu(x @ p["lin1_w"].T + p["lin1_b"])
            f = h @ p["lin2_w"].T + p["lin2_b"]
            x = _ref_ln(x + f, p["n3_w"], p["n3_b"])
        outs.append(_ref_ln(x, norm_w, norm_b))
    return jnp.stack(outs, axis=1)


# ------------------------------ params ----------------------------------------
def make_layer_params(key):
    ks = jax.random.split(key, 8)
    d, f = D_MODEL, DIM_FF
    return {
        "sa_in_w": 0.05 * jax.random.normal(ks[0], (3 * d, d), jnp.float32),
        "sa_in_b": 0.01 * jax.random.normal(ks[1], (3 * d,), jnp.float32),
        "sa_out_w": 0.05 * jax.random.normal(ks[2], (d, d), jnp.float32),
        "sa_out_b": jnp.zeros((d,), jnp.float32),
        "ca_in_w": 0.05 * jax.random.normal(ks[3], (3 * d, d), jnp.float32),
        "ca_in_b": 0.01 * jax.random.normal(ks[4], (3 * d,), jnp.float32),
        "ca_out_w": 0.05 * jax.random.normal(ks[5], (d, d), jnp.float32),
        "ca_out_b": jnp.zeros((d,), jnp.float32),
        "lin1_w": 0.05 * jax.random.normal(ks[6], (f, d), jnp.float32),
        "lin1_b": jnp.zeros((f,), jnp.float32),
        "lin2_w": 0.05 * jax.random.normal(ks[7], (d, f), jnp.float32),
        "lin2_b": jnp.zeros((d,), jnp.float32),
        "n1_w": jnp.ones((d,), jnp.float32), "n1_b": jnp.zeros((d,), jnp.float32),
        "n2_w": jnp.ones((d,), jnp.float32), "n2_b": jnp.zeros((d,), jnp.float32),
        "n3_w": jnp.ones((d,), jnp.float32), "n3_b": jnp.zeros((d,), jnp.float32),
    }


if __name__ == "__main__":
    root = jax.random.PRNGKey(0)
    k_tgt, k_mem, k_qp, k_pos, k_par = jax.random.split(root, 5)

    tgt = jax.random.normal(k_tgt, (NUM_QUERIES, BATCH, D_MODEL), jnp.float32)
    memory = jax.random.normal(k_mem, (MEM_LEN, BATCH, D_MODEL), jnp.float32)
    query_pos = jax.random.normal(k_qp, (NUM_QUERIES, BATCH, D_MODEL), jnp.float32)
    pos = jax.random.normal(k_pos, (MEM_LEN, BATCH, D_MODEL), jnp.float32)

    layer_keys = jax.random.split(k_par, NUM_LAYERS)
    layers_params = tuple(make_layer_params(k) for k in layer_keys)
    norm_w = jnp.ones((D_MODEL,), jnp.float32)
    norm_b = jnp.zeros((D_MODEL,), jnp.float32)

    packed = pack_decoder_params(layers_params, norm_w, norm_b)

    out = transformer_decoder(tgt, memory, query_pos, pos, packed)
    out = jax.block_until_ready(out)

    ref = reference_decoder(tgt, memory, query_pos, pos, layers_params,
                            norm_w, norm_b)
    assert out.shape == (NUM_QUERIES, BATCH, D_MODEL)
    # tolerance slightly relaxed vs exact math because the kernel's softmax
    # uses the EUP approximate reciprocal (pl.reciprocal(approx=True)).
    assert jnp.allclose(out, ref, atol=2e-3, rtol=2e-3), "mismatch vs reference"

    print("KERNEL_OK")
</pallas_src>

<mosaic_0001>
module attributes {stable_mosaic.version = 11 : i64} {
  func.func @fused_decoder_kernel(%arg0: memref<16x32xf32, #tpu.memory_space<vmem>>, %arg1: memref<32x32xf32, #tpu.memory_space<vmem>>, %arg2: memref<16x32xf32, #tpu.memory_space<vmem>>, %arg3: memref<32x32xf32, #tpu.memory_space<vmem>>, %arg4: memref<2x96x32xf32, #tpu.memory_space<vmem>>, %arg5: memref<2x96x1xf32, #tpu.memory_space<vmem>>, %arg6: memref<2x32x32xf32, #tpu.memory_space<vmem>>, %arg7: memref<2x32x1xf32, #tpu.memory_space<vmem>>, %arg8: memref<2x96x32xf32, #tpu.memory_space<vmem>>, %arg9: memref<2x96x1xf32, #tpu.memory_space<vmem>>, %arg10: memref<2x32x32xf32, #tpu.memory_space<vmem>>, %arg11: memref<2x32x1xf32, #tpu.memory_space<vmem>>, %arg12: memref<2x64x32xf32, #tpu.memory_space<vmem>>, %arg13: memref<2x64x1xf32, #tpu.memory_space<vmem>>, %arg14: memref<2x32x64xf32, #tpu.memory_space<vmem>>, %arg15: memref<2x32x1xf32, #tpu.memory_space<vmem>>, %arg16: memref<2x32x1xf32, #tpu.memory_space<vmem>>, %arg17: memref<2x32x1xf32, #tpu.memory_space<vmem>>, %arg18: memref<2x32x1xf32, #tpu.memory_space<vmem>>, %arg19: memref<2x32x1xf32, #tpu.memory_space<vmem>>, %arg20: memref<2x32x1xf32, #tpu.memory_space<vmem>>, %arg21: memref<2x32x1xf32, #tpu.memory_space<vmem>>, %arg22: memref<32x1xf32, #tpu.memory_space<vmem>>, %arg23: memref<32x1xf32, #tpu.memory_space<vmem>>, %arg24: memref<16x32xf32, #tpu.memory_space<vmem>>) attributes {dimension_semantics = [], scalar_prefetch = 0 : i64, scratch_operands = 0 : i64, tpu.core_type = #tpu.core_type<tc>} {
    %c0 = arith.constant 0 : index
    %c0_0 = arith.constant 0 : index
    %0 = vector.load %arg0[%c0, %c0_0] : memref<16x32xf32, #tpu.memory_space<vmem>>, vector<16x32xf32>
    %1 = tpu.transpose %0, [1, 0] : vector<16x32xf32> -> vector<32x16xf32>
    %c0_1 = arith.constant 0 : index
    %c0_2 = arith.constant 0 : index
    %2 = vector.load %arg1[%c0_1, %c0_2] : memref<32x32xf32, #tpu.memory_space<vmem>>, vector<32x32xf32>
    %3 = tpu.transpose %2, [1, 0] : vector<32x32xf32> -> vector<32x32xf32>
    %c0_3 = arith.constant 0 : index
    %c0_4 = arith.constant 0 : index
    %4 = vector.load %arg2[%c0_3, %c0_4] : memref<16x32xf32, #tpu.memory_space<vmem>>, vector<16x32xf32>
    %5 = tpu.transpose %4, [1, 0] : vector<16x32xf32> -> vector<32x16xf32>
    %c0_5 = arith.constant 0 : index
    %c0_6 = arith.constant 0 : index
    %6 = vector.load %arg3[%c0_5, %c0_6] : memref<32x32xf32, #tpu.memory_space<vmem>>, vector<32x32xf32>
    %7 = tpu.transpose %6, [1, 0] : vector<32x32xf32> -> vector<32x32xf32>
    %8 = tpu.iota {dimensions = array<i32: 0>} : vector<16x16xi32>
    %c2_i32 = arith.constant 2 : i32
    %c0_i32 = arith.constant 0 : i32
    %9 = arith.cmpi eq, %c2_i32, %c0_i32 : i32
    %c1_i32 = arith.constant 1 : i32
    %10 = arith.select %9, %c1_i32, %c2_i32 : i32
    %11 = vector.broadcast %10 : i32 to vector<16x16xi32>
    %12 = arith.remsi %8, %11 : vector<16x16xi32>
    %c0_i32_7 = arith.constant 0 : i32
    %13 = vector.broadcast %c0_i32_7 : i32 to vector<16x16xi32>
    %14 = arith.cmpi ne, %12, %13 : vector<16x16xi32>
    %c0_i32_8 = arith.constant 0 : i32
    %15 = vector.broadcast %c0_i32_8 : i32 to vector<16x16xi32>
    %16 = arith.cmpi slt, %12, %15 : vector<16x16xi32>
    %c0_i32_9 = arith.constant 0 : i32
    %17 = arith.cmpi slt, %10, %c0_i32_9 : i32
    %18 = vector.broadcast %17 : i1 to vector<16x16xi1>
    %19 = vector.broadcast %18 : vector<16x16xi1> to vector<16x16xi1>
    %20 = arith.xori %16, %19 : vector<16x16xi1>
    %21 = arith.andi %20, %14 : vector<16x16xi1>
    %22 = vector.broadcast %10 : i32 to vector<16x16xi32>
    %23 = arith.addi %12, %22 : vector<16x16xi32>
    %24 = arith.select %21, %23, %12 : vector<16x16xi1>, vector<16x16xi32>
    %25 = tpu.iota {dimensions = array<i32: 1>} : vector<16x16xi32>
    %c2_i32_10 = arith.constant 2 : i32
    %c0_i32_11 = arith.constant 0 : i32
    %26 = arith.cmpi eq, %c2_i32_10, %c0_i32_11 : i32
    %c1_i32_12 = arith.constant 1 : i32
    %27 = arith.select %26, %c1_i32_12, %c2_i32_10 : i32
    %28 = vector.broadcast %27 : i32 to vector<16x16xi32>
    %29 = arith.remsi %25, %28 : vector<16x16xi32>
    %c0_i32_13 = arith.constant 0 : i32
    %30 = vector.broadcast %c0_i32_13 : i32 to vector<16x16xi32>
    %31 = arith.cmpi ne, %29, %30 : vector<16x16xi32>
    %c0_i32_14 = arith.constant 0 : i32
    %32 = vector.broadcast %c0_i32_14 : i32 to vector<16x16xi32>
    %33 = arith.cmpi slt, %29, %32 : vector<16x16xi32>
    %c0_i32_15 = arith.constant 0 : i32
    %34 = arith.cmpi slt, %27, %c0_i32_15 : i32
    %35 = vector.broadcast %34 : i1 to vector<16x16xi1>
    %36 = vector.broadcast %35 : vector<16x16xi1> to vector<16x16xi1>
    %37 = arith.xori %33, %36 : vector<16x16xi1>
    %38 = arith.andi %37, %31 : vector<16x16xi1>
    %39 = vector.broadcast %27 : i32 to vector<16x16xi32>
    %40 = arith.addi %29, %39 : vector<16x16xi32>
    %41 = arith.select %38, %40, %29 : vector<16x16xi1>, vector<16x16xi32>
    %42 = arith.cmpi eq, %24, %41 : vector<16x16xi32>
    %43 = tpu.iota {dimensions = array<i32: 0>} : vector<16x32xi32>
    %c2_i32_16 = arith.constant 2 : i32
    %c0_i32_17 = arith.constant 0 : i32
    %44 = arith.cmpi eq, %c2_i32_16, %c0_i32_17 : i32
    %c1_i32_18 = arith.constant 1 : i32
    %45 = arith.select %44, %c1_i32_18, %c2_i32_16 : i32
    %46 = vector.broadcast %45 : i32 to vector<16x32xi32>
    %47 = arith.remsi %43, %46 : vector<16x32xi32>
    %c0_i32_19 = arith.constant 0 : i32
    %48 = vector.broadcast %c0_i32_19 : i32 to vector<16x32xi32>
    %49 = arith.cmpi ne, %47, %48 : vector<16x32xi32>
    %c0_i32_20 = arith.constant 0 : i32
    %50 = vector.broadcast %c0_i32_20 : i32 to vector<16x32xi32>
    %51 = arith.cmpi slt, %47, %50 : vector<16x32xi32>
    %c0_i32_21 = arith.constant 0 : i32
    %52 = arith.cmpi slt, %45, %c0_i32_21 : i32
    %53 = vector.broadcast %52 : i1 to vector<16x32xi1>
    %54 = vector.broadcast %53 : vector<16x32xi1> to vector<16x32xi1>
    %55 = arith.xori %51, %54 : vector<16x32xi1>
    %56 = arith.andi %55, %49 : vector<16x32xi1>
    %57 = vector.broadcast %45 : i32 to vector<16x32xi32>
    %58 = arith.addi %47, %57 : vector<16x32xi32>
    %59 = arith.select %56, %58, %47 : vector<16x32xi1>, vector<16x32xi32>
    %60 = tpu.iota {dimensions = array<i32: 1>} : vector<16x32xi32>
    %c2_i32_22 = arith.constant 2 : i32
    %c0_i32_23 = arith.constant 0 : i32
    %61 = arith.cmpi eq, %c2_i32_22, %c0_i32_23 : i32
    %c1_i32_24 = arith.constant 1 : i32
    %62 = arith.select %61, %c1_i32_24, %c2_i32_22 : i32
    %63 = vector.broadcast %62 : i32 to vector<16x32xi32>
    %64 = arith.remsi %60, %63 : vector<16x32xi32>
    %c0_i32_25 = arith.constant 0 : i32
    %65 = vector.broadcast %c0_i32_25 : i32 to vector<16x32xi32>
    %66 = arith.cmpi ne, %64, %65 : vector<16x32xi32>
    %c0_i32_26 = arith.constant 0 : i32
    %67 = vector.broadcast %c0_i32_26 : i32 to vector<16x32xi32>
    %68 = arith.cmpi slt, %64, %67 : vector<16x32xi32>
    %c0_i32_27 = arith.constant 0 : i32
    %69 = arith.cmpi slt, %62, %c0_i32_27 : i32
    %70 = vector.broadcast %69 : i1 to vector<16x32xi1>
    %71 = vector.broadcast %70 : vector<16x32xi1> to vector<16x32xi1>
    %72 = arith.xori %68, %71 : vector<16x32xi1>
    %73 = arith.andi %72, %66 : vector<16x32xi1>
    %74 = vector.broadcast %62 : i32 to vector<16x32xi32>
    %75 = arith.addi %64, %74 : vector<16x32xi32>
    %76 = arith.select %73, %75, %64 : vector<16x32xi1>, vector<16x32xi32>
    %77 = arith.cmpi eq, %59, %76 : vector<16x32xi32>
    %78 = arith.addf %3, %7 : vector<32x32xf32>
    %c0_28 = arith.constant 0 : index
    %c0_29 = arith.constant 0 : index
    %c0_30 = arith.constant 0 : index
    %79 = vector.load %arg4[%c0_28, %c0_29, %c0_30] : memref<2x96x32xf32, #tpu.memory_space<vmem>>, vector<1x96x32xf32>
    %80 = vector.shape_cast %79 : vector<1x96x32xf32> to vector<96x32xf32>
    %c0_31 = arith.constant 0 : index
    %c0_32 = arith.constant 0 : index
    %c0_33 = arith.constant 0 : index
    %81 = vector.load %arg5[%c0_31, %c0_32, %c0_33] : memref<2x96x1xf32, #tpu.memory_space<vmem>>, vector<1x96x1xf32>
    %82 = vector.shape_cast %81 : vector<1x96x1xf32> to vector<96x1xf32>
    %83 = vector.extract_strided_slice %80 {offsets = [0, 0], sizes = [64, 32], strides = [1, 1]} : vector<96x32xf32> to vector<64x32xf32>
    %84 = arith.addf %1, %5 : vector<32x16xf32>
    %cst = arith.constant dense<0.000000e+00> : vector<64x16xf32>
    %85 = tpu.matmul %83, %84, %cst {dimension_numbers = #tpu.dot_dimension_numbers<[1], [0], [0], [1], [0, 0, 1, 1], [], []>} : vector<64x32xf32>, vector<32x16xf32>, vector<64x16xf32> -> vector<64x16xf32>
    %86 = vector.extract_strided_slice %82 {offsets = [0, 0], sizes = [64, 1], strides = [1, 1]} : vector<96x1xf32> to vector<64x1xf32>
    %87 = vector.broadcast %86 : vector<64x1xf32> to vector<64x16xf32>
    %88 = arith.addf %85, %87 : vector<64x16xf32>
    %89 = vector.extract_strided_slice %80 {offsets = [64, 0], sizes = [32, 32], strides = [1, 1]} : vector<96x32xf32> to vector<32x32xf32>
    %cst_34 = arith.constant dense<0.000000e+00> : vector<32x16xf32>
    %90 = tpu.matmul %89, %1, %cst_34 {dimension_numbers = #tpu.dot_dimension_numbers<[1], [0], [0], [1], [0, 0, 1, 1], [], []>} : vector<32x32xf32>, vector<32x16xf32>, vector<32x16xf32> -> vector<32x16xf32>
    %91 = vector.extract_strided_slice %82 {offsets = [64, 0], sizes = [32, 1], strides = [1, 1]} : vector<96x1xf32> to vector<32x1xf32>
    %92 = vector.broadcast %91 : vector<32x1xf32> to vector<32x16xf32>
    %93 = arith.addf %90, %92 : vector<32x16xf32>
    %94 = vector.extract_strided_slice %88 {offsets = [0, 0], sizes = [32, 16], strides = [1, 1]} : vector<64x16xf32> to vector<32x16xf32>
    %95 = vector.extract_strided_slice %88 {offsets = [32, 0], sizes = [32, 16], strides = [1, 1]} : vector<64x16xf32> to vector<32x16xf32>
    %c0_35 = arith.constant 0 : index
    %c0_36 = arith.constant 0 : index
    %c0_37 = arith.constant 0 : index
    %96 = vector.load %arg6[%c0_35, %c0_36, %c0_37] : memref<2x32x32xf32, #tpu.memory_space<vmem>>, vector<1x32x32xf32>
    %97 = vector.shape_cast %96 : vector<1x32x32xf32> to vector<32x32xf32>
    %c0_38 = arith.constant 0 : index
    %c0_39 = arith.constant 0 : index
    %c0_40 = arith.constant 0 : index
    %98 = vector.load %arg7[%c0_38, %c0_39, %c0_40] : memref<2x32x1xf32, #tpu.memory_space<vmem>>, vector<1x32x1xf32>
    %99 = vector.shape_cast %98 : vector<1x32x1xf32> to vector<32x1xf32>
    %100 = vector.extract_strided_slice %94 {offsets = [0, 0], sizes = [8, 16], strides = [1, 1]} : vector<32x16xf32> to vector<8x16xf32>
    %101 = vector.extract_strided_slice %95 {offsets = [0, 0], sizes = [8, 16], strides = [1, 1]} : vector<32x16xf32> to vector<8x16xf32>
    %102 = vector.extract_strided_slice %93 {offsets = [0, 0], sizes = [8, 16], strides = [1, 1]} : vector<32x16xf32> to vector<8x16xf32>
    %103 = tpu.transpose %100, [1, 0] : vector<8x16xf32> -> vector<16x8xf32>
    %cst_41 = arith.constant dense<0.000000e+00> : vector<16x16xf32>
    %104 = tpu.matmul %103, %101, %cst_41 {dimension_numbers = #tpu.dot_dimension_numbers<[1], [0], [0], [1], [0, 0, 1, 1], [], []>} : vector<16x8xf32>, vector<8x16xf32>, vector<16x16xf32> -> vector<16x16xf32>
    %cst_42 = arith.constant 0.353553385 : f32
    %105 = vector.broadcast %cst_42 : f32 to vector<16x16xf32>
    %106 = arith.mulf %104, %105 : vector<16x16xf32>
    %cst_43 = arith.constant -1.000000e+30 : f32
    %107 = vector.broadcast %cst_43 : f32 to vector<16x16xf32>
    %108 = arith.select %42, %106, %107 : vector<16x16xi1>, vector<16x16xf32>
    %cst_44 = arith.constant dense<0xFF800000> : vector<16xf32>
    %109 = vector.multi_reduction <maximumf>, %108, %cst_44 [1] : vector<16x16xf32> to vector<16xf32>
    %110 = vector.shape_cast %109 : vector<16xf32> to vector<16x1xf32>
    %111 = vector.broadcast %110 : vector<16x1xf32> to vector<16x16xf32>
    %112 = arith.subf %108, %111 : vector<16x16xf32>
    %113 = math.exp %112 : vector<16x16xf32>
    %cst_45 = arith.constant dense<0.000000e+00> : vector<16xf32>
    %114 = vector.multi_reduction <add>, %113, %cst_45 [1] : vector<16x16xf32> to vector<16xf32>
    %115 = vector.shape_cast %114 : vector<16xf32> to vector<16x1xf32>
    %116 = tpu.reciprocal %115 {approx = true} : vector<16x1xf32> -> vector<16x1xf32>
    %117 = vector.broadcast %116 : vector<16x1xf32> to vector<16x16xf32>
    %118 = arith.mulf %113, %117 : vector<16x16xf32>
    %119 = tpu.transpose %118, [1, 0] : vector<16x16xf32> -> vector<16x16xf32>
    %cst_46 = arith.constant dense<0.000000e+00> : vector<8x16xf32>
    %120 = tpu.matmul %102, %119, %cst_46 {dimension_numbers = #tpu.dot_dimension_numbers<[1], [0], [0], [1], [0, 0, 1, 1], [], []>} : vector<8x16xf32>, vector<16x16xf32>, vector<8x16xf32> -> vector<8x16xf32>
    %121 = vector.extract_strided_slice %94 {offsets = [8, 0], sizes = [8, 16], strides = [1, 1]} : vector<32x16xf32> to vector<8x16xf32>
    %122 = vector.extract_strided_slice %95 {offsets = [8, 0], sizes = [8, 16], strides = [1, 1]} : vector<32x16xf32> to vector<8x16xf32>
    %123 = vector.extract_strided_slice %93 {offsets = [8, 0], sizes = [8, 16], strides = [1, 1]} : vector<32x16xf32> to vector<8x16xf32>
    %124 = tpu.transpose %121, [1, 0] : vector<8x16xf32> -> vector<16x8xf32>
    %cst_47 = arith.constant dense<0.000000e+00> : vector<16x16xf32>
    %125 = tpu.matmul %124, %122, %cst_47 {dimension_numbers = #tpu.dot_dimension_numbers<[1], [0], [0], [1], [0, 0, 1, 1], [], []>} : vector<16x8xf32>, vector<8x16xf32>, vector<16x16xf32> -> vector<16x16xf32>
    %cst_48 = arith.constant 0.353553385 : f32
    %126 = vector.broadcast %cst_48 : f32 to vector<16x16xf32>
    %127 = arith.mulf %125, %126 : vector<16x16xf32>
    %cst_49 = arith.constant -1.000000e+30 : f32
    %128 = vector.broadcast %cst_49 : f32 to vector<16x16xf32>
    %129 = arith.select %42, %127, %128 : vector<16x16xi1>, vector<16x16xf32>
    %cst_50 = arith.constant dense<0xFF800000> : vector<16xf32>
    %130 = vector.multi_reduction <maximumf>, %129, %cst_50 [1] : vector<16x16xf32> to vector<16xf32>
    %131 = vector.shape_cast %130 : vector<16xf32> to vector<16x1xf32>
    %132 = vector.broadcast %131 : vector<16x1xf32> to vector<16x16xf32>
    %133 = arith.subf %129, %132 : vector<16x16xf32>
    %134 = math.exp %133 : vector<16x16xf32>
    %cst_51 = arith.constant dense<0.000000e+00> : vector<16xf32>
    %135 = vector.multi_reduction <add>, %134, %cst_51 [1] : vector<16x16xf32> to vector<16xf32>
    %136 = vector.shape_cast %135 : vector<16xf32> to vector<16x1xf32>
    %137 = tpu.reciprocal %136 {approx = true} : vector<16x1xf32> -> vector<16x1xf32>
    %138 = vector.broadcast %137 : vector<16x1xf32> to vector<16x16xf32>
    %139 = arith.mulf %134, %138 : vector<16x16xf32>
    %140 = tpu.transpose %139, [1, 0] : vector<16x16xf32> -> vector<16x16xf32>
    %cst_52 = arith.constant dense<0.000000e+00> : vector<8x16xf32>
    %141 = tpu.matmul %123, %140, %cst_52 {dimension_numbers = #tpu.dot_dimension_numbers<[1], [0], [0], [1], [0, 0, 1, 1], [], []>} : vector<8x16xf32>, vector<16x16xf32>, vector<8x16xf32> -> vector<8x16xf32>
    %142 = vector.extract_strided_slice %94 {offsets = [16, 0], sizes = [8, 16], strides = [1, 1]} : vector<32x16xf32> to vector<8x16xf32>
    %143 = vector.extract_strided_slice %95 {offsets = [16, 0], sizes = [8, 16], strides = [1, 1]} : vector<32x16xf32> to vector<8x16xf32>
    %144 = vector.extract_strided_slice %93 {offsets = [16, 0], sizes = [8, 16], strides = [1, 1]} : vector<32x16xf32> to vector<8x16xf32>
    %145 = tpu.transpose %142, [1, 0] : vector<8x16xf32> -> vector<16x8xf32>
    %cst_53 = arith.constant dense<0.000000e+00> : vector<16x16xf32>
    %146 = tpu.matmul %145, %143, %cst_53 {dimension_numbers = #tpu.dot_dimension_numbers<[1], [0], [0], [1], [0, 0, 1, 1], [], []>} : vector<16x8xf32>, vector<8x16xf32>, vector<16x16xf32> -> vector<16x16xf32>
    %cst_54 = arith.constant 0.353553385 : f32
    %147 = vector.broadcast %cst_54 : f32 to vector<16x16xf32>
    %148 = arith.mulf %146, %147 : vector<16x16xf32>
    %cst_55 = arith.constant -1.000000e+30 : f32
    %149 = vector.broadcast %cst_55 : f32 to vector<16x16xf32>
    %150 = arith.select %42, %148, %149 : vector<16x16xi1>, vector<16x16xf32>
    %cst_56 = arith.constant dense<0xFF800000> : vector<16xf32>
    %151 = vector.multi_reduction <maximumf>, %150, %cst_56 [1] : vector<16x16xf32> to vector<16xf32>
    %152 = vector.shape_cast %151 : vector<16xf32> to vector<16x1xf32>
    %153 = vector.broadcast %152 : vector<16x1xf32> to vector<16x16xf32>
    %154 = arith.subf %150, %153 : vector<16x16xf32>
    %155 = math.exp %154 : vector<16x16xf32>
    %cst_57 = arith.constant dense<0.000000e+00> : vector<16xf32>
    %156 = vector.multi_reduction <add>, %155, %cst_57 [1] : vector<16x16xf32> to vector<16xf32>
    %157 = vector.shape_cast %156 : vector<16xf32> to vector<16x1xf32>
    %158 = tpu.reciprocal %157 {approx = true} : vector<16x1xf32> -> vector<16x1xf32>
    %159 = vector.broadcast %158 : vector<16x1xf32> to vector<16x16xf32>
    %160 = arith.mulf %155, %159 : vector<16x16xf32>
    %161 = tpu.transpose %160, [1, 0] : vector<16x16xf32> -> vector<16x16xf32>
    %cst_58 = arith.constant dense<0.000000e+00> : vector<8x16xf32>
    %162 = tpu.matmul %144, %161, %cst_58 {dimension_numbers = #tpu.dot_dimension_numbers<[1], [0], [0], [1], [0, 0, 1, 1], [], []>} : vector<8x16xf32>, vector<16x16xf32>, vector<8x16xf32> -> vector<8x16xf32>
    %163 = vector.extract_strided_slice %94 {offsets = [24, 0], sizes = [8, 16], strides = [1, 1]} : vector<32x16xf32> to vector<8x16xf32>
    %164 = vector.extract_strided_slice %95 {offsets = [24, 0], sizes = [8, 16], strides = [1, 1]} : vector<32x16xf32> to vector<8x16xf32>
    %165 = vector.extract_strided_slice %93 {offsets = [24, 0], sizes = [8, 16], strides = [1, 1]} : vector<32x16xf32> to vector<8x16xf32>
    %166 = tpu.transpose %163, [1, 0] : vector<8x16xf32> -> vector<16x8xf32>
    %cst_59 = arith.constant dense<0.000000e+00> : vector<16x16xf32>
    %167 = tpu.matmul %166, %164, %cst_59 {dimension_numbers = #tpu.dot_dimension_numbers<[1], [0], [0], [1], [0, 0, 1, 1], [], []>} : vector<16x8xf32>, vector<8x16xf32>, vector<16x16xf32> -> vector<16x16xf32>
    %cst_60 = arith.constant 0.353553385 : f32
    %168 = vector.broadcast %cst_60 : f32 to vector<16x16xf32>
    %169 = arith.mulf %167, %168 : vector<16x16xf32>
    %cst_61 = arith.constant -1.000000e+30 : f32
    %170 = vector.broadcast %cst_61 : f32 to vector<16x16xf32>
    %171 = arith.select %42, %169, %170 : vector<16x16xi1>, vector<16x16xf32>
    %cst_62 = arith.constant dense<0xFF800000> : vector<16xf32>
    %172 = vector.multi_reduction <maximumf>, %171, %cst_62 [1] : vector<16x16xf32> to vector<16xf32>
    %173 = vector.shape_cast %172 : vector<16xf32> to vector<16x1xf32>
    %174 = vector.broadcast %173 : vector<16x1xf32> to vector<16x16xf32>
    %175 = arith.subf %171, %174 : vector<16x16xf32>
    %176 = math.exp %175 : vector<16x16xf32>
    %cst_63 = arith.constant dense<0.000000e+00> : vector<16xf32>
    %177 = vector.multi_reduction <add>, %176, %cst_63 [1] : vector<16x16xf32> to vector<16xf32>
    %178 = vector.shape_cast %177 : vector<16xf32> to vector<16x1xf32>
    %179 = tpu.reciprocal %178 {approx = true} : vector<16x1xf32> -> vector<16x1xf32>
    %180 = vector.broadcast %179 : vector<16x1xf32> to vector<16x16xf32>
    %181 = arith.mulf %176, %180 : vector<16x16xf32>
    %182 = tpu.transpose %181, [1, 0] : vector<16x16xf32> -> vector<16x16xf32>
    %cst_64 = arith.constant dense<0.000000e+00> : vector<8x16xf32>
    %183 = tpu.matmul %165, %182, %cst_64 {dimension_numbers = #tpu.dot_dimension_numbers<[1], [0], [0], [1], [0, 0, 1, 1], [], []>} : vector<8x16xf32>, vector<16x16xf32>, vector<8x16xf32> -> vector<8x16xf32>
    %184 = tpu.concatenate %120, %141, %162, %183 in 0 : vector<8x16xf32>, vector<8x16xf32>, vector<8x16xf32>, vector<8x16xf32> -> vector<32x16xf32>
    %cst_65 = arith.constant dense<0.000000e+00> : vector<32x16xf32>
    %185 = tpu.matmul %97, %184, %cst_65 {dimension_numbers = #tpu.dot_dimension_numbers<[1], [0], [0], [1], [0, 0, 1, 1], [], []>} : vector<32x32xf32>, vector<32x16xf32>, vector<32x16xf32> -> vector<32x16xf32>
    %186 = vector.broadcast %99 : vector<32x1xf32> to vector<32x16xf32>
    %187 = arith.addf %185, %186 : vector<32x16xf32>
    %188 = arith.addf %1, %187 : vector<32x16xf32>
    %c0_66 = arith.constant 0 : index
    %c0_67 = arith.constant 0 : index
    %c0_68 = arith.constant 0 : index
    %189 = vector.load %arg16[%c0_66, %c0_67, %c0_68] : memref<2x32x1xf32, #tpu.memory_space<vmem>>, vector<1x32x1xf32>
    %190 = vector.shape_cast %189 : vector<1x32x1xf32> to vector<32x1xf32>
    %c0_69 = arith.constant 0 : index
    %c0_70 = arith.constant 0 : index
    %c0_71 = arith.constant 0 : index
    %191 = vector.load %arg17[%c0_69, %c0_70, %c0_71] : memref<2x32x1xf32, #tpu.memory_space<vmem>>, vector<1x32x1xf32>
    %192 = vector.shape_cast %191 : vector<1x32x1xf32> to vector<32x1xf32>
    %cst_72 = arith.constant dense<0.000000e+00> : vector<16xf32>
    %193 = vector.multi_reduction <add>, %188, %cst_72 [0] : vector<32x16xf32> to vector<16xf32>
    %194 = vector.shape_cast %193 : vector<16xf32> to vector<1x16xf32>
    %cst_73 = arith.constant 3.200000e+01 : f32
    %195 = vector.broadcast %cst_73 : f32 to vector<1x16xf32>
    %196 = arith.divf %194, %195 : vector<1x16xf32>
    %197 = vector.broadcast %196 : vector<1x16xf32> to vector<32x16xf32>
    %198 = arith.subf %188, %197 : vector<32x16xf32>
    %199 = arith.mulf %198, %198 : vector<32x16xf32>
    %cst_74 = arith.constant dense<0.000000e+00> : vector<16xf32>
    %200 = vector.multi_reduction <add>, %199, %cst_74 [0] : vector<32x16xf32> to vector<16xf32>
    %201 = vector.shape_cast %200 : vector<16xf32> to vector<1x16xf32>
    %cst_75 = arith.constant 3.200000e+01 : f32
    %202 = vector.broadcast %cst_75 : f32 to vector<1x16xf32>
    %203 = arith.divf %201, %202 : vector<1x16xf32>
    %cst_76 = arith.constant 9.99999974E-6 : f32
    %204 = vector.broadcast %cst_76 : f32 to vector<1x16xf32>
    %205 = arith.addf %203, %204 : vector<1x16xf32>
    %206 = math.rsqrt %205 : vector<1x16xf32>
    %207 = vector.broadcast %206 : vector<1x16xf32> to vector<32x16xf32>
    %208 = arith.mulf %198, %207 : vector<32x16xf32>
    %209 = vector.broadcast %190 : vector<32x1xf32> to vector<32x16xf32>
    %210 = arith.mulf %208, %209 : vector<32x16xf32>
    %211 = vector.broadcast %192 : vector<32x1xf32> to vector<32x16xf32>
    %212 = arith.addf %210, %211 : vector<32x16xf32>
    %c0_77 = arith.constant 0 : index
    %c0_78 = arith.constant 0 : index
    %c0_79 = arith.constant 0 : index
    %213 = vector.load %arg8[%c0_77, %c0_78, %c0_79] : memref<2x96x32xf32, #tpu.memory_space<vmem>>, vector<1x96x32xf32>
    %214 = vector.shape_cast %213 : vector<1x96x32xf32> to vector<96x32xf32>
    %c0_80 = arith.constant 0 : index
    %c0_81 = arith.constant 0 : index
    %c0_82 = arith.constant 0 : index
    %215 = vector.load %arg9[%c0_80, %c0_81, %c0_82] : memref<2x96x1xf32, #tpu.memory_space<vmem>>, vector<1x96x1xf32>
    %216 = vector.shape_cast %215 : vector<1x96x1xf32> to vector<96x1xf32>
    %217 = vector.extract_strided_slice %214 {offsets = [0, 0], sizes = [32, 32], strides = [1, 1]} : vector<96x32xf32> to vector<32x32xf32>
    %218 = arith.addf %212, %5 : vector<32x16xf32>
    %cst_83 = arith.constant dense<0.000000e+00> : vector<32x16xf32>
    %219 = tpu.matmul %217, %218, %cst_83 {dimension_numbers = #tpu.dot_dimension_numbers<[1], [0], [0], [1], [0, 0, 1, 1], [], []>} : vector<32x32xf32>, vector<32x16xf32>, vector<32x16xf32> -> vector<32x16xf32>
    %220 = vector.extract_strided_slice %216 {offsets = [0, 0], sizes = [32, 1], strides = [1, 1]} : vector<96x1xf32> to vector<32x1xf32>
    %221 = vector.broadcast %220 : vector<32x1xf32> to vector<32x16xf32>
    %222 = arith.addf %219, %221 : vector<32x16xf32>
    %223 = vector.extract_strided_slice %214 {offsets = [32, 0], sizes = [32, 32], strides = [1, 1]} : vector<96x32xf32> to vector<32x32xf32>
    %cst_84 = arith.constant dense<0.000000e+00> : vector<32x32xf32>
    %224 = tpu.matmul %223, %78, %cst_84 {dimension_numbers = #tpu.dot_dimension_numbers<[1], [0], [0], [1], [0, 0, 1, 1], [], []>} : vector<32x32xf32>, vector<32x32xf32>, vector<32x32xf32> -> vector<32x32xf32>
    %225 = vector.extract_strided_slice %216 {offsets = [32, 0], sizes = [32, 1], strides = [1, 1]} : vector<96x1xf32> to vector<32x1xf32>
    %226 = vector.broadcast %225 : vector<32x1xf32> to vector<32x32xf32>
    %227 = arith.addf %224, %226 : vector<32x32xf32>
    %228 = vector.extract_strided_slice %214 {offsets = [64, 0], sizes = [32, 32], strides = [1, 1]} : vector<96x32xf32> to vector<32x32xf32>
    %cst_85 = arith.constant dense<0.000000e+00> : vector<32x32xf32>
    %229 = tpu.matmul %228, %3, %cst_85 {dimension_numbers = #tpu.dot_dimension_numbers<[1], [0], [0], [1], [0, 0, 1, 1], [], []>} : vector<32x32xf32>, vector<32x32xf32>, vector<32x32xf32> -> vector<32x32xf32>
    %230 = vector.extract_strided_slice %216 {offsets = [64, 0], sizes = [32, 1], strides = [1, 1]} : vector<96x1xf32> to vector<32x1xf32>
    %231 = vector.broadcast %230 : vector<32x1xf32> to vector<32x32xf32>
    %232 = arith.addf %229, %231 : vector<32x32xf32>
    %c0_86 = arith.constant 0 : index
    %c0_87 = arith.constant 0 : index
    %c0_88 = arith.constant 0 : index
    %233 = vector.load %arg10[%c0_86, %c0_87, %c0_88] : memref<2x32x32xf32, #tpu.memory_space<vmem>>, vector<1x32x32xf32>
    %234 = vector.shape_cast %233 : vector<1x32x32xf32> to vector<32x32xf32>
    %c0_89 = arith.constant 0 : index
    %c0_90 = arith.constant 0 : index
    %c0_91 = arith.constant 0 : index
    %235 = vector.load %arg11[%c0_89, %c0_90, %c0_91] : memref<2x32x1xf32, #tpu.memory_space<vmem>>, vector<1x32x1xf32>
    %236 = vector.shape_cast %235 : vector<1x32x1xf32> to vector<32x1xf32>
    %237 = vector.extract_strided_slice %222 {offsets = [0, 0], sizes = [8, 16], strides = [1, 1]} : vector<32x16xf32> to vector<8x16xf32>
    %238 = vector.extract_strided_slice %227 {offsets = [0, 0], sizes = [8, 32], strides = [1, 1]} : vector<32x32xf32> to vector<8x32xf32>
    %239 = vector.extract_strided_slice %232 {offsets = [0, 0], sizes = [8, 32], strides = [1, 1]} : vector<32x32xf32> to vector<8x32xf32>
    %240 = tpu.transpose %237, [1, 0] : vector<8x16xf32> -> vector<16x8xf32>
    %cst_92 = arith.constant dense<0.000000e+00> : vector<16x32xf32>
    %241 = tpu.matmul %240, %238, %cst_92 {dimension_numbers = #tpu.dot_dimension_numbers<[1], [0], [0], [1], [0, 0, 1, 1], [], []>} : vector<16x8xf32>, vector<8x32xf32>, vector<16x32xf32> -> vector<16x32xf32>
    %cst_93 = arith.constant 0.353553385 : f32
    %242 = vector.broadcast %cst_93 : f32 to vector<16x32xf32>
    %243 = arith.mulf %241, %242 : vector<16x32xf32>
    %cst_94 = arith.constant -1.000000e+30 : f32
    %244 = vector.broadcast %cst_94 : f32 to vector<16x32xf32>
    %245 = arith.select %77, %243, %244 : vector<16x32xi1>, vector<16x32xf32>
    %cst_95 = arith.constant dense<0xFF800000> : vector<16xf32>
    %246 = vector.multi_reduction <maximumf>, %245, %cst_95 [1] : vector<16x32xf32> to vector<16xf32>
    %247 = vector.shape_cast %246 : vector<16xf32> to vector<16x1xf32>
    %248 = vector.broadcast %247 : vector<16x1xf32> to vector<16x32xf32>
    %249 = arith.subf %245, %248 : vector<16x32xf32>
    %250 = math.exp %249 : vector<16x32xf32>
    %cst_96 = arith.constant dense<0.000000e+00> : vector<16xf32>
    %251 = vector.multi_reduction <add>, %250, %cst_96 [1] : vector<16x32xf32> to vector<16xf32>
    %252 = vector.shape_cast %251 : vector<16xf32> to vector<16x1xf32>
    %253 = tpu.reciprocal %252 {approx = true} : vector<16x1xf32> -> vector<16x1xf32>
    %254 = vector.broadcast %253 : vector<16x1xf32> to vector<16x32xf32>
    %255 = arith.mulf %250, %254 : vector<16x32xf32>
    %256 = tpu.transpose %255, [1, 0] : vector<16x32xf32> -> vector<32x16xf32>
    %cst_97 = arith.constant dense<0.000000e+00> : vector<8x16xf32>
    %257 = tpu.matmul %239, %256, %cst_97 {dimension_numbers = #tpu.dot_dimension_numbers<[1], [0], [0], [1], [0, 0, 1, 1], [], []>} : vector<8x32xf32>, vector<32x16xf32>, vector<8x16xf32> -> vector<8x16xf32>
    %258 = vector.extract_strided_slice %222 {offsets = [8, 0], sizes = [8, 16], strides = [1, 1]} : vector<32x16xf32> to vector<8x16xf32>
    %259 = vector.extract_strided_slice %227 {offsets = [8, 0], sizes = [8, 32], strides = [1, 1]} : vector<32x32xf32> to vector<8x32xf32>
    %260 = vector.extract_strided_slice %232 {offsets = [8, 0], sizes = [8, 32], strides = [1, 1]} : vector<32x32xf32> to vector<8x32xf32>
    %261 = tpu.transpose %258, [1, 0] : vector<8x16xf32> -> vector<16x8xf32>
    %cst_98 = arith.constant dense<0.000000e+00> : vector<16x32xf32>
    %262 = tpu.matmul %261, %259, %cst_98 {dimension_numbers = #tpu.dot_dimension_numbers<[1], [0], [0], [1], [0, 0, 1, 1], [], []>} : vector<16x8xf32>, vector<8x32xf32>, vector<16x32xf32> -> vector<16x32xf32>
    %cst_99 = arith.constant 0.353553385 : f32
    %263 = vector.broadcast %cst_99 : f32 to vector<16x32xf32>
    %264 = arith.mulf %262, %263 : vector<16x32xf32>
    %cst_100 = arith.constant -1.000000e+30 : f32
    %265 = vector.broadcast %cst_100 : f32 to vector<16x32xf32>
    %266 = arith.select %77, %264, %265 : vector<16x32xi1>, vector<16x32xf32>
    %cst_101 = arith.constant dense<0xFF800000> : vector<16xf32>
    %267 = vector.multi_reduction <maximumf>, %266, %cst_101 [1] : vector<16x32xf32> to vector<16xf32>
    %268 = vector.shape_cast %267 : vector<16xf32> to vector<16x1xf32>
    %269 = vector.broadcast %268 : vector<16x1xf32> to vector<16x32xf32>
    %270 = arith.subf %266, %269 : vector<16x32xf32>
    %271 = math.exp %270 : vector<16x32xf32>
    %cst_102 = arith.constant dense<0.000000e+00> : vector<16xf32>
    %272 = vector.multi_reduction <add>, %271, %cst_102 [1] : vector<16x32xf32> to vector<16xf32>
    %273 = vector.shape_cast %272 : vector<16xf32> to vector<16x1xf32>
    %274 = tpu.reciprocal %273 {approx = true} : vector<16x1xf32> -> vector<16x1xf32>
    %275 = vector.broadcast %274 : vector<16x1xf32> to vector<16x32xf32>
    %276 = arith.mulf %271, %275 : vector<16x32xf32>
    %277 = tpu.transpose %276, [1, 0] : vector<16x32xf32> -> vector<32x16xf32>
    %cst_103 = arith.constant dense<0.000000e+00> : vector<8x16xf32>
    %278 = tpu.matmul %260, %277, %cst_103 {dimension_numbers = #tpu.dot_dimension_numbers<[1], [0], [0], [1], [0, 0, 1, 1], [], []>} : vector<8x32xf32>, vector<32x16xf32>, vector<8x16xf32> -> vector<8x16xf32>
    %279 = vector.extract_strided_slice %222 {offsets = [16, 0], sizes = [8, 16], strides = [1, 1]} : vector<32x16xf32> to vector<8x16xf32>
    %280 = vector.extract_strided_slice %227 {offsets = [16, 0], sizes = [8, 32], strides = [1, 1]} : vector<32x32xf32> to vector<8x32xf32>
    %281 = vector.extract_strided_slice %232 {offsets = [16, 0], sizes = [8, 32], strides = [1, 1]} : vector<32x32xf32> to vector<8x32xf32>
    %282 = tpu.transpose %279, [1, 0] : vector<8x16xf32> -> vector<16x8xf32>
    %cst_104 = arith.constant dense<0.000000e+00> : vector<16x32xf32>
    %283 = tpu.matmul %282, %280, %cst_104 {dimension_numbers = #tpu.dot_dimension_numbers<[1], [0], [0], [1], [0, 0, 1, 1], [], []>} : vector<16x8xf32>, vector<8x32xf32>, vector<16x32xf32> -> vector<16x32xf32>
    %cst_105 = arith.constant 0.353553385 : f32
    %284 = vector.broadcast %cst_105 : f32 to vector<16x32xf32>
    %285 = arith.mulf %283, %284 : vector<16x32xf32>
    %cst_106 = arith.constant -1.000000e+30 : f32
    %286 = vector.broadcast %cst_106 : f32 to vector<16x32xf32>
    %287 = arith.select %77, %285, %286 : vector<16x32xi1>, vector<16x32xf32>
    %cst_107 = arith.constant dense<0xFF800000> : vector<16xf32>
    %288 = vector.multi_reduction <maximumf>, %287, %cst_107 [1] : vector<16x32xf32> to vector<16xf32>
    %289 = vector.shape_cast %288 : vector<16xf32> to vector<16x1xf32>
    %290 = vector.broadcast %289 : vector<16x1xf32> to vector<16x32xf32>
    %291 = arith.subf %287, %290 : vector<16x32xf32>
    %292 = math.exp %291 : vector<16x32xf32>
    %cst_108 = arith.constant dense<0.000000e+00> : vector<16xf32>
    %293 = vector.multi_reduction <add>, %292, %cst_108 [1] : vector<16x32xf32> to vector<16xf32>
    %294 = vector.shape_cast %293 : vector<16xf32> to vector<16x1xf32>
    %295 = tpu.reciprocal %294 {approx = true} : vector<16x1xf32> -> vector<16x1xf32>
    %296 = vector.broadcast %295 : vector<16x1xf32> to vector<16x32xf32>
    %297 = arith.mulf %292, %296 : vector<16x32xf32>
    %298 = tpu.transpose %297, [1, 0] : vector<16x32xf32> -> vector<32x16xf32>
    %cst_109 = arith.constant dense<0.000000e+00> : vector<8x16xf32>
    %299 = tpu.matmul %281, %298, %cst_109 {dimension_numbers = #tpu.dot_dimension_numbers<[1], [0], [0], [1], [0, 0, 1, 1], [], []>} : vector<8x32xf32>, vector<32x16xf32>, vector<8x16xf32> -> vector<8x16xf32>
    %300 = vector.extract_strided_slice %222 {offsets = [24, 0], sizes = [8, 16], strides = [1, 1]} : vector<32x16xf32> to vector<8x16xf32>
    %301 = vector.extract_strided_slice %227 {offsets = [24, 0], sizes = [8, 32], strides = [1, 1]} : vector<32x32xf32> to vector<8x32xf32>
    %302 = vector.extract_strided_slice %232 {offsets = [24, 0], sizes = [8, 32], strides = [1, 1]} : vector<32x32xf32> to vector<8x32xf32>
    %303 = tpu.transpose %300, [1, 0] : vector<8x16xf32> -> vector<16x8xf32>
    %cst_110 = arith.constant dense<0.000000e+00> : vector<16x32xf32>
    %304 = tpu.matmul %303, %301, %cst_110 {dimension_numbers = #tpu.dot_dimension_numbers<[1], [0], [0], [1], [0, 0, 1, 1], [], []>} : vector<16x8xf32>, vector<8x32xf32>, vector<16x32xf32> -> vector<16x32xf32>
    %cst_111 = arith.constant 0.353553385 : f32
    %305 = vector.broadcast %cst_111 : f32 to vector<16x32xf32>
    %306 = arith.mulf %304, %305 : vector<16x32xf32>
    %cst_112 = arith.constant -1.000000e+30 : f32
    %307 = vector.broadcast %cst_112 : f32 to vector<16x32xf32>
    %308 = arith.select %77, %306, %307 : vector<16x32xi1>, vector<16x32xf32>
    %cst_113 = arith.constant dense<0xFF800000> : vector<16xf32>
    %309 = vector.multi_reduction <maximumf>, %308, %cst_113 [1] : vector<16x32xf32> to vector<16xf32>
    %310 = vector.shape_cast %309 : vector<16xf32> to vector<16x1xf32>
    %311 = vector.broadcast %310 : vector<16x1xf32> to vector<16x32xf32>
    %312 = arith.subf %308, %311 : vector<16x32xf32>
    %313 = math.exp %312 : vector<16x32xf32>
    %cst_114 = arith.constant dense<0.000000e+00> : vector<16xf32>
    %314 = vector.multi_reduction <add>, %313, %cst_114 [1] : vector<16x32xf32> to vector<16xf32>
    %315 = vector.shape_cast %314 : vector<16xf32> to vector<16x1xf32>
    %316 = tpu.reciprocal %315 {approx = true} : vector<16x1xf32> -> vector<16x1xf32>
    %317 = vector.broadcast %316 : vector<16x1xf32> to vector<16x32xf32>
    %318 = arith.mulf %313, %317 : vector<16x32xf32>
    %319 = tpu.transpose %318, [1, 0] : vector<16x32xf32> -> vector<32x16xf32>
    %cst_115 = arith.constant dense<0.000000e+00> : vector<8x16xf32>
    %320 = tpu.matmul %302, %319, %cst_115 {dimension_numbers = #tpu.dot_dimension_numbers<[1], [0], [0], [1], [0, 0, 1, 1], [], []>} : vector<8x32xf32>, vector<32x16xf32>, vector<8x16xf32> -> vector<8x16xf32>
    %321 = tpu.concatenate %257, %278, %299, %320 in 0 : vector<8x16xf32>, vector<8x16xf32>, vector<8x16xf32>, vector<8x16xf32> -> vector<32x16xf32>
    %cst_116 = arith.constant dense<0.000000e+00> : vector<32x16xf32>
    %322 = tpu.matmul %234, %321, %cst_116 {dimension_numbers = #tpu.dot_dimension_numbers<[1], [0], [0], [1], [0, 0, 1, 1], [], []>} : vector<32x32xf32>, vector<32x16xf32>, vector<32x16xf32> -> vector<32x16xf32>
    %323 = vector.broadcast %236 : vector<32x1xf32> to vector<32x16xf32>
    %324 = arith.addf %322, %323 : vector<32x16xf32>
    %325 = arith.addf %212, %324 : vector<32x16xf32>
    %c0_117 = arith.constant 0 : index
    %c0_118 = arith.constant 0 : index
    %c0_119 = arith.constant 0 : index
    %326 = vector.load %arg18[%c0_117, %c0_118, %c0_119] : memref<2x32x1xf32, #tpu.memory_space<vmem>>, vector<1x32x1xf32>
    %327 = vector.shape_cast %326 : vector<1x32x1xf32> to vector<32x1xf32>
    %c0_120 = arith.constant 0 : index
    %c0_121 = arith.constant 0 : index
    %c0_122 = arith.constant 0 : index
    %328 = vector.load %arg19[%c0_120, %c0_121, %c0_122] : memref<2x32x1xf32, #tpu.memory_space<vmem>>, vector<1x32x1xf32>
    %329 = vector.shape_cast %328 : vector<1x32x1xf32> to vector<32x1xf32>
    %cst_123 = arith.constant dense<0.000000e+00> : vector<16xf32>
    %330 = vector.multi_reduction <add>, %325, %cst_123 [0] : vector<32x16xf32> to vector<16xf32>
    %331 = vector.shape_cast %330 : vector<16xf32> to vector<1x16xf32>
    %cst_124 = arith.constant 3.200000e+01 : f32
    %332 = vector.broadcast %cst_124 : f32 to vector<1x16xf32>
    %333 = arith.divf %331, %332 : vector<1x16xf32>
    %334 = vector.broadcast %333 : vector<1x16xf32> to vector<32x16xf32>
    %335 = arith.subf %325, %334 : vector<32x16xf32>
    %336 = arith.mulf %335, %335 : vector<32x16xf32>
    %cst_125 = arith.constant dense<0.000000e+00> : vector<16xf32>
    %337 = vector.multi_reduction <add>, %336, %cst_125 [0] : vector<32x16xf32> to vector<16xf32>
    %338 = vector.shape_cast %337 : vector<16xf32> to vector<1x16xf32>
    %cst_126 = arith.constant 3.200000e+01 : f32
    %339 = vector.broadcast %cst_126 : f32 to vector<1x16xf32>
    %340 = arith.divf %338, %339 : vector<1x16xf32>
    %cst_127 = arith.constant 9.99999974E-6 : f32
    %341 = vector.broadcast %cst_127 : f32 to vector<1x16xf32>
    %342 = arith.addf %340, %341 : vector<1x16xf32>
    %343 = math.rsqrt %342 : vector<1x16xf32>
    %344 = vector.broadcast %343 : vector<1x16xf32> to vector<32x16xf32>
    %345 = arith.mulf %335, %344 : vector<32x16xf32>
    %346 = vector.broadcast %327 : vector<32x1xf32> to vector<32x16xf32>
    %347 = arith.mulf %345, %346 : vector<32x16xf32>
    %348 = vector.broadcast %329 : vector<32x1xf32> to vector<32x16xf32>
    %349 = arith.addf %347, %348 : vector<32x16xf32>
    %c0_128 = arith.constant 0 : index
    %c0_129 = arith.constant 0 : index
    %c0_130 = arith.constant 0 : index
    %350 = vector.load %arg12[%c0_128, %c0_129, %c0_130] : memref<2x64x32xf32, #tpu.memory_space<vmem>>, vector<1x64x32xf32>
    %351 = vector.shape_cast %350 : vector<1x64x32xf32> to vector<64x32xf32>
    %cst_131 = arith.constant dense<0.000000e+00> : vector<64x16xf32>
    %352 = tpu.matmul %351, %349, %cst_131 {dimension_numbers = #tpu.dot_dimension_numbers<[1], [0], [0], [1], [0, 0, 1, 1], [], []>} : vector<64x32xf32>, vector<32x16xf32>, vector<64x16xf32> -> vector<64x16xf32>
    %c0_132 = arith.constant 0 : index
    %c0_133 = arith.constant 0 : index
    %c0_134 = arith.constant 0 : index
    %353 = vector.load %arg13[%c0_132, %c0_133, %c0_134] : memref<2x64x1xf32, #tpu.memory_space<vmem>>, vector<1x64x1xf32>
    %354 = vector.shape_cast %353 : vector<1x64x1xf32> to vector<64x1xf32>
    %355 = vector.broadcast %354 : vector<64x1xf32> to vector<64x16xf32>
    %356 = arith.addf %352, %355 : vector<64x16xf32>
    %cst_135 = arith.constant 0.000000e+00 : f32
    %357 = vector.broadcast %cst_135 : f32 to vector<64x16xf32>
    %358 = arith.maximumf %356, %357 : vector<64x16xf32>
    %c0_136 = arith.constant 0 : index
    %c0_137 = arith.constant 0 : index
    %c0_138 = arith.constant 0 : index
    %359 = vector.load %arg14[%c0_136, %c0_137, %c0_138] : memref<2x32x64xf32, #tpu.memory_space<vmem>>, vector<1x32x64xf32>
    %360 = vector.shape_cast %359 : vector<1x32x64xf32> to vector<32x64xf32>
    %cst_139 = arith.constant dense<0.000000e+00> : vector<32x16xf32>
    %361 = tpu.matmul %360, %358, %cst_139 {dimension_numbers = #tpu.dot_dimension_numbers<[1], [0], [0], [1], [0, 0, 1, 1], [], []>} : vector<32x64xf32>, vector<64x16xf32>, vector<32x16xf32> -> vector<32x16xf32>
    %c0_140 = arith.constant 0 : index
    %c0_141 = arith.constant 0 : index
    %c0_142 = arith.constant 0 : index
    %362 = vector.load %arg15[%c0_140, %c0_141, %c0_142] : memref<2x32x1xf32, #tpu.memory_space<vmem>>, vector<1x32x1xf32>
    %363 = vector.shape_cast %362 : vector<1x32x1xf32> to vector<32x1xf32>
    %364 = vector.broadcast %363 : vector<32x1xf32> to vector<32x16xf32>
    %365 = arith.addf %361, %364 : vector<32x16xf32>
    %366 = arith.addf %349, %365 : vector<32x16xf32>
    %c0_143 = arith.constant 0 : index
    %c0_144 = arith.constant 0 : index
    %c0_145 = arith.constant 0 : index
    %367 = vector.load %arg20[%c0_143, %c0_144, %c0_145] : memref<2x32x1xf32, #tpu.memory_space<vmem>>, vector<1x32x1xf32>
    %368 = vector.shape_cast %367 : vector<1x32x1xf32> to vector<32x1xf32>
    %c0_146 = arith.constant 0 : index
    %c0_147 = arith.constant 0 : index
    %c0_148 = arith.constant 0 : index
    %369 = vector.load %arg21[%c0_146, %c0_147, %c0_148] : memref<2x32x1xf32, #tpu.memory_space<vmem>>, vector<1x32x1xf32>
    %370 = vector.shape_cast %369 : vector<1x32x1xf32> to vector<32x1xf32>
    %cst_149 = arith.constant dense<0.000000e+00> : vector<16xf32>
    %371 = vector.multi_reduction <add>, %366, %cst_149 [0] : vector<32x16xf32> to vector<16xf32>
    %372 = vector.shape_cast %371 : vector<16xf32> to vector<1x16xf32>
    %cst_150 = arith.constant 3.200000e+01 : f32
    %373 = vector.broadcast %cst_150 : f32 to vector<1x16xf32>
    %374 = arith.divf %372, %373 : vector<1x16xf32>
    %375 = vector.broadcast %374 : vector<1x16xf32> to vector<32x16xf32>
    %376 = arith.subf %366, %375 : vector<32x16xf32>
    %377 = arith.mulf %376, %376 : vector<32x16xf32>
    %cst_151 = arith.constant dense<0.000000e+00> : vector<16xf32>
    %378 = vector.multi_reduction <add>, %377, %cst_151 [0] : vector<32x16xf32> to vector<16xf32>
    %379 = vector.shape_cast %378 : vector<16xf32> to vector<1x16xf32>
    %cst_152 = arith.constant 3.200000e+01 : f32
    %380 = vector.broadcast %cst_152 : f32 to vector<1x16xf32>
    %381 = arith.divf %379, %380 : vector<1x16xf32>
    %cst_153 = arith.constant 9.99999974E-6 : f32
    %382 = vector.broadcast %cst_153 : f32 to vector<1x16xf32>
    %383 = arith.addf %381, %382 : vector<1x16xf32>
    %384 = math.rsqrt %383 : vector<1x16xf32>
    %385 = vector.broadcast %384 : vector<1x16xf32> to vector<32x16xf32>
    %386 = arith.mulf %376, %385 : vector<32x16xf32>
    %387 = vector.broadcast %368 : vector<32x1xf32> to vector<32x16xf32>
    %388 = arith.mulf %386, %387 : vector<32x16xf32>
    %389 = vector.broadcast %370 : vector<32x1xf32> to vector<32x16xf32>
    %390 = arith.addf %388, %389 : vector<32x16xf32>
    %c1 = arith.constant 1 : index
    %c0_154 = arith.constant 0 : index
    %c0_155 = arith.constant 0 : index
    %391 = vector.load %arg4[%c1, %c0_154, %c0_155] : memref<2x96x32xf32, #tpu.memory_space<vmem>>, vector<1x96x32xf32>
    %392 = vector.shape_cast %391 : vector<1x96x32xf32> to vector<96x32xf32>
    %c1_156 = arith.constant 1 : index
    %c0_157 = arith.constant 0 : index
    %c0_158 = arith.constant 0 : index
    %393 = vector.load %arg5[%c1_156, %c0_157, %c0_158] : memref<2x96x1xf32, #tpu.memory_space<vmem>>, vector<1x96x1xf32>
    %394 = vector.shape_cast %393 : vector<1x96x1xf32> to vector<96x1xf32>
    %395 = vector.extract_strided_slice %392 {offsets = [0, 0], sizes = [64, 32], strides = [1, 1]} : vector<96x32xf32> to vector<64x32xf32>
    %396 = arith.addf %390, %5 : vector<32x16xf32>
    %cst_159 = arith.constant dense<0.000000e+00> : vector<64x16xf32>
    %397 = tpu.matmul %395, %396, %cst_159 {dimension_numbers = #tpu.dot_dimension_numbers<[1], [0], [0], [1], [0, 0, 1, 1], [], []>} : vector<64x32xf32>, vector<32x16xf32>, vector<64x16xf32> -> vector<64x16xf32>
    %398 = vector.extract_strided_slice %394 {offsets = [0, 0], sizes = [64, 1], strides = [1, 1]} : vector<96x1xf32> to vector<64x1xf32>
    %399 = vector.broadcast %398 : vector<64x1xf32> to vector<64x16xf32>
    %400 = arith.addf %397, %399 : vector<64x16xf32>
    %401 = vector.extract_strided_slice %392 {offsets = [64, 0], sizes = [32, 32], strides = [1, 1]} : vector<96x32xf32> to vector<32x32xf32>
    %cst_160 = arith.constant dense<0.000000e+00> : vector<32x16xf32>
    %402 = tpu.matmul %401, %390, %cst_160 {dimension_numbers = #tpu.dot_dimension_numbers<[1], [0], [0], [1], [0, 0, 1, 1], [], []>} : vector<32x32xf32>, vector<32x16xf32>, vector<32x16xf32> -> vector<32x16xf32>
    %403 = vector.extract_strided_slice %394 {offsets = [64, 0], sizes = [32, 1], strides = [1, 1]} : vector<96x1xf32> to vector<32x1xf32>
    %404 = vector.broadcast %403 : vector<32x1xf32> to vector<32x16xf32>
    %405 = arith.addf %402, %404 : vector<32x16xf32>
    %406 = vector.extract_strided_slice %400 {offsets = [0, 0], sizes = [32, 16], strides = [1, 1]} : vector<64x16xf32> to vector<32x16xf32>
    %407 = vector.extract_strided_slice %400 {offsets = [32, 0], sizes = [32, 16], strides = [1, 1]} : vector<64x16xf32> to vector<32x16xf32>
    %c1_161 = arith.constant 1 : index
    %c0_162 = arith.constant 0 : index
    %c0_163 = arith.constant 0 : index
    %408 = vector.load %arg6[%c1_161, %c0_162, %c0_163] : memref<2x32x32xf32, #tpu.memory_space<vmem>>, vector<1x32x32xf32>
    %409 = vector.shape_cast %408 : vector<1x32x32xf32> to vector<32x32xf32>
    %c1_164 = arith.constant 1 : index
    %c0_165 = arith.constant 0 : index
    %c0_166 = arith.constant 0 : index
    %410 = vector.load %arg7[%c1_164, %c0_165, %c0_166] : memref<2x32x1xf32, #tpu.memory_space<vmem>>, vector<1x32x1xf32>
    %411 = vector.shape_cast %410 : vector<1x32x1xf32> to vector<32x1xf32>
    %412 = vector.extract_strided_slice %406 {offsets = [0, 0], sizes = [8, 16], strides = [1, 1]} : vector<32x16xf32> to vector<8x16xf32>
    %413 = vector.extract_strided_slice %407 {offsets = [0, 0], sizes = [8, 16], strides = [1, 1]} : vector<32x16xf32> to vector<8x16xf32>
    %414 = vector.extract_strided_slice %405 {offsets = [0, 0], sizes = [8, 16], strides = [1, 1]} : vector<32x16xf32> to vector<8x16xf32>
    %415 = tpu.transpose %412, [1, 0] : vector<8x16xf32> -> vector<16x8xf32>
    %cst_167 = arith.constant dense<0.000000e+00> : vector<16x16xf32>
    %416 = tpu.matmul %415, %413, %cst_167 {dimension_numbers = #tpu.dot_dimension_numbers<[1], [0], [0], [1], [0, 0, 1, 1], [], []>} : vector<16x8xf32>, vector<8x16xf32>, vector<16x16xf32> -> vector<16x16xf32>
    %cst_168 = arith.constant 0.353553385 : f32
    %417 = vector.broadcast %cst_168 : f32 to vector<16x16xf32>
    %418 = arith.mulf %416, %417 : vector<16x16xf32>
    %cst_169 = arith.constant -1.000000e+30 : f32
    %419 = vector.broadcast %cst_169 : f32 to vector<16x16xf32>
    %420 = arith.select %42, %418, %419 : vector<16x16xi1>, vector<16x16xf32>
    %cst_170 = arith.constant dense<0xFF800000> : vector<16xf32>
    %421 = vector.multi_reduction <maximumf>, %420, %cst_170 [1] : vector<16x16xf32> to vector<16xf32>
    %422 = vector.shape_cast %421 : vector<16xf32> to vector<16x1xf32>
    %423 = vector.broadcast %422 : vector<16x1xf32> to vector<16x16xf32>
    %424 = arith.subf %420, %423 : vector<16x16xf32>
    %425 = math.exp %424 : vector<16x16xf32>
    %cst_171 = arith.constant dense<0.000000e+00> : vector<16xf32>
    %426 = vector.multi_reduction <add>, %425, %cst_171 [1] : vector<16x16xf32> to vector<16xf32>
    %427 = vector.shape_cast %426 : vector<16xf32> to vector<16x1xf32>
    %428 = tpu.reciprocal %427 {approx = true} : vector<16x1xf32> -> vector<16x1xf32>
    %429 = vector.broadcast %428 : vector<16x1xf32> to vector<16x16xf32>
    %430 = arith.mulf %425, %429 : vector<16x16xf32>
    %431 = tpu.transpose %430, [1, 0] : vector<16x16xf32> -> vector<16x16xf32>
    %cst_172 = arith.constant dense<0.000000e+00> : vector<8x16xf32>
    %432 = tpu.matmul %414, %431, %cst_172 {dimension_numbers = #tpu.dot_dimension_numbers<[1], [0], [0], [1], [0, 0, 1, 1], [], []>} : vector<8x16xf32>, vector<16x16xf32>, vector<8x16xf32> -> vector<8x16xf32>
    %433 = vector.extract_strided_slice %406 {offsets = [8, 0], sizes = [8, 16], strides = [1, 1]} : vector<32x16xf32> to vector<8x16xf32>
    %434 = vector.extract_strided_slice %407 {offsets = [8, 0], sizes = [8, 16], strides = [1, 1]} : vector<32x16xf32> to vector<8x16xf32>
    %435 = vector.extract_strided_slice %405 {offsets = [8, 0], sizes = [8, 16], strides = [1, 1]} : vector<32x16xf32> to vector<8x16xf32>
    %436 = tpu.transpose %433, [1, 0] : vector<8x16xf32> -> vector<16x8xf32>
    %cst_173 = arith.constant dense<0.000000e+00> : vector<16x16xf32>
    %437 = tpu.matmul %436, %434, %cst_173 {dimension_numbers = #tpu.dot_dimension_numbers<[1], [0], [0], [1], [0, 0, 1, 1], [], []>} : vector<16x8xf32>, vector<8x16xf32>, vector<16x16xf32> -> vector<16x16xf32>
    %cst_174 = arith.constant 0.353553385 : f32
    %438 = vector.broadcast %cst_174 : f32 to vector<16x16xf32>
    %439 = arith.mulf %437, %438 : vector<16x16xf32>
    %cst_175 = arith.constant -1.000000e+30 : f32
    %440 = vector.broadcast %cst_175 : f32 to vector<16x16xf32>
    %441 = arith.select %42, %439, %440 : vector<16x16xi1>, vector<16x16xf32>
    %cst_176 = arith.constant dense<0xFF800000> : vector<16xf32>
    %442 = vector.multi_reduction <maximumf>, %441, %cst_176 [1] : vector<16x16xf32> to vector<16xf32>
    %443 = vector.shape_cast %442 : vector<16xf32> to vector<16x1xf32>
    %444 = vector.broadcast %443 : vector<16x1xf32> to vector<16x16xf32>
    %445 = arith.subf %441, %444 : vector<16x16xf32>
    %446 = math.exp %445 : vector<16x16xf32>
    %cst_177 = arith.constant dense<0.000000e+00> : vector<16xf32>
    %447 = vector.multi_reduction <add>, %446, %cst_177 [1] : vector<16x16xf32> to vector<16xf32>
    %448 = vector.shape_cast %447 : vector<16xf32> to vector<16x1xf32>
    %449 = tpu.reciprocal %448 {approx = true} : vector<16x1xf32> -> vector<16x1xf32>
    %450 = vector.broadcast %449 : vector<16x1xf32> to vector<16x16xf32>
    %451 = arith.mulf %446, %450 : vector<16x16xf32>
    %452 = tpu.transpose %451, [1, 0] : vector<16x16xf32> -> vector<16x16xf32>
    %cst_178 = arith.constant dense<0.000000e+00> : vector<8x16xf32>
    %453 = tpu.matmul %435, %452, %cst_178 {dimension_numbers = #tpu.dot_dimension_numbers<[1], [0], [0], [1], [0, 0, 1, 1], [], []>} : vector<8x16xf32>, vector<16x16xf32>, vector<8x16xf32> -> vector<8x16xf32>
    %454 = vector.extract_strided_slice %406 {offsets = [16, 0], sizes = [8, 16], strides = [1, 1]} : vector<32x16xf32> to vector<8x16xf32>
    %455 = vector.extract_strided_slice %407 {offsets = [16, 0], sizes = [8, 16], strides = [1, 1]} : vector<32x16xf32> to vector<8x16xf32>
    %456 = vector.extract_strided_slice %405 {offsets = [16, 0], sizes = [8, 16], strides = [1, 1]} : vector<32x16xf32> to vector<8x16xf32>
    %457 = tpu.transpose %454, [1, 0] : vector<8x16xf32> -> vector<16x8xf32>
    %cst_179 = arith.constant dense<0.000000e+00> : vector<16x16xf32>
    %458 = tpu.matmul %457, %455, %cst_179 {dimension_numbers = #tpu.dot_dimension_numbers<[1], [0], [0], [1], [0, 0, 1, 1], [], []>} : vector<16x8xf32>, vector<8x16xf32>, vector<16x16xf32> -> vector<16x16xf32>
    %cst_180 = arith.constant 0.353553385 : f32
    %459 = vector.broadcast %cst_180 : f32 to vector<16x16xf32>
    %460 = arith.mulf %458, %459 : vector<16x16xf32>
    %cst_181 = arith.constant -1.000000e+30 : f32
    %461 = vector.broadcast %cst_181 : f32 to vector<16x16xf32>
    %462 = arith.select %42, %460, %461 : vector<16x16xi1>, vector<16x16xf32>
    %cst_182 = arith.constant dense<0xFF800000> : vector<16xf32>
    %463 = vector.multi_reduction <maximumf>, %462, %cst_182 [1] : vector<16x16xf32> to vector<16xf32>
    %464 = vector.shape_cast %463 : vector<16xf32> to vector<16x1xf32>
    %465 = vector.broadcast %464 : vector<16x1xf32> to vector<16x16xf32>
    %466 = arith.subf %462, %465 : vector<16x16xf32>
    %467 = math.exp %466 : vector<16x16xf32>
    %cst_183 = arith.constant dense<0.000000e+00> : vector<16xf32>
    %468 = vector.multi_reduction <add>, %467, %cst_183 [1] : vector<16x16xf32> to vector<16xf32>
    %469 = vector.shape_cast %468 : vector<16xf32> to vector<16x1xf32>
    %470 = tpu.reciprocal %469 {approx = true} : vector<16x1xf32> -> vector<16x1xf32>
    %471 = vector.broadcast %470 : vector<16x1xf32> to vector<16x16xf32>
    %472 = arith.mulf %467, %471 : vector<16x16xf32>
    %473 = tpu.transpose %472, [1, 0] : vector<16x16xf32> -> vector<16x16xf32>
    %cst_184 = arith.constant dense<0.000000e+00> : vector<8x16xf32>
    %474 = tpu.matmul %456, %473, %cst_184 {dimension_numbers = #tpu.dot_dimension_numbers<[1], [0], [0], [1], [0, 0, 1, 1], [], []>} : vector<8x16xf32>, vector<16x16xf32>, vector<8x16xf32> -> vector<8x16xf32>
    %475 = vector.extract_strided_slice %406 {offsets = [24, 0], sizes = [8, 16], strides = [1, 1]} : vector<32x16xf32> to vector<8x16xf32>
    %476 = vector.extract_strided_slice %407 {offsets = [24, 0], sizes = [8, 16], strides = [1, 1]} : vector<32x16xf32> to vector<8x16xf32>
    %477 = vector.extract_strided_slice %405 {offsets = [24, 0], sizes = [8, 16], strides = [1, 1]} : vector<32x16xf32> to vector<8x16xf32>
    %478 = tpu.transpose %475, [1, 0] : vector<8x16xf32> -> vector<16x8xf32>
    %cst_185 = arith.constant dense<0.000000e+00> : vector<16x16xf32>
    %479 = tpu.matmul %478, %476, %cst_185 {dimension_numbers = #tpu.dot_dimension_numbers<[1], [0], [0], [1], [0, 0, 1, 1], [], []>} : vector<16x8xf32>, vector<8x16xf32>, vector<16x16xf32> -> vector<16x16xf32>
    %cst_186 = arith.constant 0.353553385 : f32
    %480 = vector.broadcast %cst_186 : f32 to vector<16x16xf32>
    %481 = arith.mulf %479, %480 : vector<16x16xf32>
    %cst_187 = arith.constant -1.000000e+30 : f32
    %482 = vector.broadcast %cst_187 : f32 to vector<16x16xf32>
    %483 = arith.select %42, %481, %482 : vector<16x16xi1>, vector<16x16xf32>
    %cst_188 = arith.constant dense<0xFF800000> : vector<16xf32>
    %484 = vector.multi_reduction <maximumf>, %483, %cst_188 [1] : vector<16x16xf32> to vector<16xf32>
    %485 = vector.shape_cast %484 : vector<16xf32> to vector<16x1xf32>
    %486 = vector.broadcast %485 : vector<16x1xf32> to vector<16x16xf32>
    %487 = arith.subf %483, %486 : vector<16x16xf32>
    %488 = math.exp %487 : vector<16x16xf32>
    %cst_189 = arith.constant dense<0.000000e+00> : vector<16xf32>
    %489 = vector.multi_reduction <add>, %488, %cst_189 [1] : vector<16x16xf32> to vector<16xf32>
    %490 = vector.shape_cast %489 : vector<16xf32> to vector<16x1xf32>
    %491 = tpu.reciprocal %490 {approx = true} : vector<16x1xf32> -> vector<16x1xf32>
    %492 = vector.broadcast %491 : vector<16x1xf32> to vector<16x16xf32>
    %493 = arith.mulf %488, %492 : vector<16x16xf32>
    %494 = tpu.transpose %493, [1, 0] : vector<16x16xf32> -> vector<16x16xf32>
    %cst_190 = arith.constant dense<0.000000e+00> : vector<8x16xf32>
    %495 = tpu.matmul %477, %494, %cst_190 {dimension_numbers = #tpu.dot_dimension_numbers<[1], [0], [0], [1], [0, 0, 1, 1], [], []>} : vector<8x16xf32>, vector<16x16xf32>, vector<8x16xf32> -> vector<8x16xf32>
    %496 = tpu.concatenate %432, %453, %474, %495 in 0 : vector<8x16xf32>, vector<8x16xf32>, vector<8x16xf32>, vector<8x16xf32> -> vector<32x16xf32>
    %cst_191 = arith.constant dense<0.000000e+00> : vector<32x16xf32>
    %497 = tpu.matmul %409, %496, %cst_191 {dimension_numbers = #tpu.dot_dimension_numbers<[1], [0], [0], [1], [0, 0, 1, 1], [], []>} : vector<32x32xf32>, vector<32x16xf32>, vector<32x16xf32> -> vector<32x16xf32>
    %498 = vector.broadcast %411 : vector<32x1xf32> to vector<32x16xf32>
    %499 = arith.addf %497, %498 : vector<32x16xf32>
    %500 = arith.addf %390, %499 : vector<32x16xf32>
    %c1_192 = arith.constant 1 : index
    %c0_193 = arith.constant 0 : index
    %c0_194 = arith.constant 0 : index
    %501 = vector.load %arg16[%c1_192, %c0_193, %c0_194] : memref<2x32x1xf32, #tpu.memory_space<vmem>>, vector<1x32x1xf32>
    %502 = vector.shape_cast %501 : vector<1x32x1xf32> to vector<32x1xf32>
    %c1_195 = arith.constant 1 : index
    %c0_196 = arith.constant 0 : index
    %c0_197 = arith.constant 0 : index
    %503 = vector.load %arg17[%c1_195, %c0_196, %c0_197] : memref<2x32x1xf32, #tpu.memory_space<vmem>>, vector<1x32x1xf32>
    %504 = vector.shape_cast %503 : vector<1x32x1xf32> to vector<32x1xf32>
    %cst_198 = arith.constant dense<0.000000e+00> : vector<16xf32>
    %505 = vector.multi_reduction <add>, %500, %cst_198 [0] : vector<32x16xf32> to vector<16xf32>
    %506 = vector.shape_cast %505 : vector<16xf32> to vector<1x16xf32>
    %cst_199 = arith.constant 3.200000e+01 : f32
    %507 = vector.broadcast %cst_199 : f32 to vector<1x16xf32>
    %508 = arith.divf %506, %507 : vector<1x16xf32>
    %509 = vector.broadcast %508 : vector<1x16xf32> to vector<32x16xf32>
    %510 = arith.subf %500, %509 : vector<32x16xf32>
    %511 = arith.mulf %510, %510 : vector<32x16xf32>
    %cst_200 = arith.constant dense<0.000000e+00> : vector<16xf32>
    %512 = vector.multi_reduction <add>, %511, %cst_200 [0] : vector<32x16xf32> to vector<16xf32>
    %513 = vector.shape_cast %512 : vector<16xf32> to vector<1x16xf32>
    %cst_201 = arith.constant 3.200000e+01 : f32
    %514 = vector.broadcast %cst_201 : f32 to vector<1x16xf32>
    %515 = arith.divf %513, %514 : vector<1x16xf32>
    %cst_202 = arith.constant 9.99999974E-6 : f32
    %516 = vector.broadcast %cst_202 : f32 to vector<1x16xf32>
    %517 = arith.addf %515, %516 : vector<1x16xf32>
    %518 = math.rsqrt %517 : vector<1x16xf32>
    %519 = vector.broadcast %518 : vector<1x16xf32> to vector<32x16xf32>
    %520 = arith.mulf %510, %519 : vector<32x16xf32>
    %521 = vector.broadcast %502 : vector<32x1xf32> to vector<32x16xf32>
    %522 = arith.mulf %520, %521 : vector<32x16xf32>
    %523 = vector.broadcast %504 : vector<32x1xf32> to vector<32x16xf32>
    %524 = arith.addf %522, %523 : vector<32x16xf32>
    %c1_203 = arith.constant 1 : index
    %c0_204 = arith.constant 0 : index
    %c0_205 = arith.constant 0 : index
    %525 = vector.load %arg8[%c1_203, %c0_204, %c0_205] : memref<2x96x32xf32, #tpu.memory_space<vmem>>, vector<1x96x32xf32>
    %526 = vector.shape_cast %525 : vector<1x96x32xf32> to vector<96x32xf32>
    %c1_206 = arith.constant 1 : index
    %c0_207 = arith.constant 0 : index
    %c0_208 = arith.constant 0 : index
    %527 = vector.load %arg9[%c1_206, %c0_207, %c0_208] : memref<2x96x1xf32, #tpu.memory_space<vmem>>, vector<1x96x1xf32>
    %528 = vector.shape_cast %527 : vector<1x96x1xf32> to vector<96x1xf32>
    %529 = vector.extract_strided_slice %526 {offsets = [0, 0], sizes = [32, 32], strides = [1, 1]} : vector<96x32xf32> to vector<32x32xf32>
    %530 = arith.addf %524, %5 : vector<32x16xf32>
    %cst_209 = arith.constant dense<0.000000e+00> : vector<32x16xf32>
    %531 = tpu.matmul %529, %530, %cst_209 {dimension_numbers = #tpu.dot_dimension_numbers<[1], [0], [0], [1], [0, 0, 1, 1], [], []>} : vector<32x32xf32>, vector<32x16xf32>, vector<32x16xf32> -> vector<32x16xf32>
    %532 = vector.extract_strided_slice %528 {offsets = [0, 0], sizes = [32, 1], strides = [1, 1]} : vector<96x1xf32> to vector<32x1xf32>
    %533 = vector.broadcast %532 : vector<32x1xf32> to vector<32x16xf32>
    %534 = arith.addf %531, %533 : vector<32x16xf32>
    %535 = vector.extract_strided_slice %526 {offsets = [32, 0], sizes = [32, 32], strides = [1, 1]} : vector<96x32xf32> to vector<32x32xf32>
    %cst_210 = arith.constant dense<0.000000e+00> : vector<32x32xf32>
    %536 = tpu.matmul %535, %78, %cst_210 {dimension_numbers = #tpu.dot_dimension_numbers<[1], [0], [0], [1], [0, 0, 1, 1], [], []>} : vector<32x32xf32>, vector<32x32xf32>, vector<32x32xf32> -> vector<32x32xf32>
    %537 = vector.extract_strided_slice %528 {offsets = [32, 0], sizes = [32, 1], strides = [1, 1]} : vector<96x1xf32> to vector<32x1xf32>
    %538 = vector.broadcast %537 : vector<32x1xf32> to vector<32x32xf32>
    %539 = arith.addf %536, %538 : vector<32x32xf32>
    %540 = vector.extract_strided_slice %526 {offsets = [64, 0], sizes = [32, 32], strides = [1, 1]} : vector<96x32xf32> to vector<32x32xf32>
    %cst_211 = arith.constant dense<0.000000e+00> : vector<32x32xf32>
    %541 = tpu.matmul %540, %3, %cst_211 {dimension_numbers = #tpu.dot_dimension_numbers<[1], [0], [0], [1], [0, 0, 1, 1], [], []>} : vector<32x32xf32>, vector<32x32xf32>, vector<32x32xf32> -> vector<32x32xf32>
    %542 = vector.extract_strided_slice %528 {offsets = [64, 0], sizes = [32, 1], strides = [1, 1]} : vector<96x1xf32> to vector<32x1xf32>
    %543 = vector.broadcast %542 : vector<32x1xf32> to vector<32x32xf32>
    %544 = arith.addf %541, %543 : vector<32x32xf32>
    %c1_212 = arith.constant 1 : index
    %c0_213 = arith.constant 0 : index
    %c0_214 = arith.constant 0 : index
    %545 = vector.load %arg10[%c1_212, %c0_213, %c0_214] : memref<2x32x32xf32, #tpu.memory_space<vmem>>, vector<1x32x32xf32>
    %546 = vector.shape_cast %545 : vector<1x32x32xf32> to vector<32x32xf32>
    %c1_215 = arith.constant 1 : index
    %c0_216 = arith.constant 0 : index
    %c0_217 = arith.constant 0 : index
    %547 = vector.load %arg11[%c1_215, %c0_216, %c0_217] : memref<2x32x1xf32, #tpu.memory_space<vmem>>, vector<1x32x1xf32>
    %548 = vector.shape_cast %547 : vector<1x32x1xf32> to vector<32x1xf32>
    %549 = vector.extract_strided_slice %534 {offsets = [0, 0], sizes = [8, 16], strides = [1, 1]} : vector<32x16xf32> to vector<8x16xf32>
    %550 = vector.extract_strided_slice %539 {offsets = [0, 0], sizes = [8, 32], strides = [1, 1]} : vector<32x32xf32> to vector<8x32xf32>
    %551 = vector.extract_strided_slice %544 {offsets = [0, 0], sizes = [8, 32], strides = [1, 1]} : vector<32x32xf32> to vector<8x32xf32>
    %552 = tpu.transpose %549, [1, 0] : vector<8x16xf32> -> vector<16x8xf32>
    %cst_218 = arith.constant dense<0.000000e+00> : vector<16x32xf32>
    %553 = tpu.matmul %552, %550, %cst_218 {dimension_numbers = #tpu.dot_dimension_numbers<[1], [0], [0], [1], [0, 0, 1, 1], [], []>} : vector<16x8xf32>, vector<8x32xf32>, vector<16x32xf32> -> vector<16x32xf32>
    %cst_219 = arith.constant 0.353553385 : f32
    %554 = vector.broadcast %cst_219 : f32 to vector<16x32xf32>
    %555 = arith.mulf %553, %554 : vector<16x32xf32>
    %cst_220 = arith.constant -1.000000e+30 : f32
    %556 = vector.broadcast %cst_220 : f32 to vector<16x32xf32>
    %557 = arith.select %77, %555, %556 : vector<16x32xi1>, vector<16x32xf32>
    %cst_221 = arith.constant dense<0xFF800000> : vector<16xf32>
    %558 = vector.multi_reduction <maximumf>, %557, %cst_221 [1] : vector<16x32xf32> to vector<16xf32>
    %559 = vector.shape_cast %558 : vector<16xf32> to vector<16x1xf32>
    %560 = vector.broadcast %559 : vector<16x1xf32> to vector<16x32xf32>
    %561 = arith.subf %557, %560 : vector<16x32xf32>
    %562 = math.exp %561 : vector<16x32xf32>
    %cst_222 = arith.constant dense<0.000000e+00> : vector<16xf32>
    %563 = vector.multi_reduction <add>, %562, %cst_222 [1] : vector<16x32xf32> to vector<16xf32>
    %564 = vector.shape_cast %563 : vector<16xf32> to vector<16x1xf32>
    %565 = tpu.reciprocal %564 {approx = true} : vector<16x1xf32> -> vector<16x1xf32>
    %566 = vector.broadcast %565 : vector<16x1xf32> to vector<16x32xf32>
    %567 = arith.mulf %562, %566 : vector<16x32xf32>
    %568 = tpu.transpose %567, [1, 0] : vector<16x32xf32> -> vector<32x16xf32>
    %cst_223 = arith.constant dense<0.000000e+00> : vector<8x16xf32>
    %569 = tpu.matmul %551, %568, %cst_223 {dimension_numbers = #tpu.dot_dimension_numbers<[1], [0], [0], [1], [0, 0, 1, 1], [], []>} : vector<8x32xf32>, vector<32x16xf32>, vector<8x16xf32> -> vector<8x16xf32>
    %570 = vector.extract_strided_slice %534 {offsets = [8, 0], sizes = [8, 16], strides = [1, 1]} : vector<32x16xf32> to vector<8x16xf32>
    %571 = vector.extract_strided_slice %539 {offsets = [8, 0], sizes = [8, 32], strides = [1, 1]} : vector<32x32xf32> to vector<8x32xf32>
    %572 = vector.extract_strided_slice %544 {offsets = [8, 0], sizes = [8, 32], strides = [1, 1]} : vector<32x32xf32> to vector<8x32xf32>
    %573 = tpu.transpose %570, [1, 0] : vector<8x16xf32> -> vector<16x8xf32>
    %cst_224 = arith.constant dense<0.000000e+00> : vector<16x32xf32>
    %574 = tpu.matmul %573, %571, %cst_224 {dimension_numbers = #tpu.dot_dimension_numbers<[1], [0], [0], [1], [0, 0, 1, 1], [], []>} : vector<16x8xf32>, vector<8x32xf32>, vector<16x32xf32> -> vector<16x32xf32>
    %cst_225 = arith.constant 0.353553385 : f32
    %575 = vector.broadcast %cst_225 : f32 to vector<16x32xf32>
    %576 = arith.mulf %574, %575 : vector<16x32xf32>
    %cst_226 = arith.constant -1.000000e+30 : f32
    %577 = vector.broadcast %cst_226 : f32 to vector<16x32xf32>
    %578 = arith.select %77, %576, %577 : vector<16x32xi1>, vector<16x32xf32>
    %cst_227 = arith.constant dense<0xFF800000> : vector<16xf32>
    %579 = vector.multi_reduction <maximumf>, %578, %cst_227 [1] : vector<16x32xf32> to vector<16xf32>
    %580 = vector.shape_cast %579 : vector<16xf32> to vector<16x1xf32>
    %581 = vector.broadcast %580 : vector<16x1xf32> to vector<16x32xf32>
    %582 = arith.subf %578, %581 : vector<16x32xf32>
    %583 = math.exp %582 : vector<16x32xf32>
    %cst_228 = arith.constant dense<0.000000e+00> : vector<16xf32>
    %584 = vector.multi_reduction <add>, %583, %cst_228 [1] : vector<16x32xf32> to vector<16xf32>
    %585 = vector.shape_cast %584 : vector<16xf32> to vector<16x1xf32>
    %586 = tpu.reciprocal %585 {approx = true} : vector<16x1xf32> -> vector<16x1xf32>
    %587 = vector.broadcast %586 : vector<16x1xf32> to vector<16x32xf32>
    %588 = arith.mulf %583, %587 : vector<16x32xf32>
    %589 = tpu.transpose %588, [1, 0] : vector<16x32xf32> -> vector<32x16xf32>
    %cst_229 = arith.constant dense<0.000000e+00> : vector<8x16xf32>
    %590 = tpu.matmul %572, %589, %cst_229 {dimension_numbers = #tpu.dot_dimension_numbers<[1], [0], [0], [1], [0, 0, 1, 1], [], []>} : vector<8x32xf32>, vector<32x16xf32>, vector<8x16xf32> -> vector<8x16xf32>
    %591 = vector.extract_strided_slice %534 {offsets = [16, 0], sizes = [8, 16], strides = [1, 1]} : vector<32x16xf32> to vector<8x16xf32>
    %592 = vector.extract_strided_slice %539 {offsets = [16, 0], sizes = [8, 32], strides = [1, 1]} : vector<32x32xf32> to vector<8x32xf32>
    %593 = vector.extract_strided_slice %544 {offsets = [16, 0], sizes = [8, 32], strides = [1, 1]} : vector<32x32xf32> to vector<8x32xf32>
    %594 = tpu.transpose %591, [1, 0] : vector<8x16xf32> -> vector<16x8xf32>
    %cst_230 = arith.constant dense<0.000000e+00> : vector<16x32xf32>
    %595 = tpu.matmul %594, %592, %cst_230 {dimension_numbers = #tpu.dot_dimension_numbers<[1], [0], [0], [1], [0, 0, 1, 1], [], []>} : vector<16x8xf32>, vector<8x32xf32>, vector<16x32xf32> -> vector<16x32xf32>
    %cst_231 = arith.constant 0.353553385 : f32
    %596 = vector.broadcast %cst_231 : f32 to vector<16x32xf32>
    %597 = arith.mulf %595, %596 : vector<16x32xf32>
    %cst_232 = arith.constant -1.000000e+30 : f32
    %598 = vector.broadcast %cst_232 : f32 to vector<16x32xf32>
    %599 = arith.select %77, %597, %598 : vector<16x32xi1>, vector<16x32xf32>
    %cst_233 = arith.constant dense<0xFF800000> : vector<16xf32>
    %600 = vector.multi_reduction <maximumf>, %599, %cst_233 [1] : vector<16x32xf32> to vector<16xf32>
    %601 = vector.shape_cast %600 : vector<16xf32> to vector<16x1xf32>
    %602 = vector.broadcast %601 : vector<16x1xf32> to vector<16x32xf32>
    %603 = arith.subf %599, %602 : vector<16x32xf32>
    %604 = math.exp %603 : vector<16x32xf32>
    %cst_234 = arith.constant dense<0.000000e+00> : vector<16xf32>
    %605 = vector.multi_reduction <add>, %604, %cst_234 [1] : vector<16x32xf32> to vector<16xf32>
    %606 = vector.shape_cast %605 : vector<16xf32> to vector<16x1xf32>
    %607 = tpu.reciprocal %606 {approx = true} : vector<16x1xf32> -> vector<16x1xf32>
    %608 = vector.broadcast %607 : vector<16x1xf32> to vector<16x32xf32>
    %609 = arith.mulf %604, %608 : vector<16x32xf32>
    %610 = tpu.transpose %609, [1, 0] : vector<16x32xf32> -> vector<32x16xf32>
    %cst_235 = arith.constant dense<0.000000e+00> : vector<8x16xf32>
    %611 = tpu.matmul %593, %610, %cst_235 {dimension_numbers = #tpu.dot_dimension_numbers<[1], [0], [0], [1], [0, 0, 1, 1], [], []>} : vector<8x32xf32>, vector<32x16xf32>, vector<8x16xf32> -> vector<8x16xf32>
    %612 = vector.extract_strided_slice %534 {offsets = [24, 0], sizes = [8, 16], strides = [1, 1]} : vector<32x16xf32> to vector<8x16xf32>
    %613 = vector.extract_strided_slice %539 {offsets = [24, 0], sizes = [8, 32], strides = [1, 1]} : vector<32x32xf32> to vector<8x32xf32>
    %614 = vector.extract_strided_slice %544 {offsets = [24, 0], sizes = [8, 32], strides = [1, 1]} : vector<32x32xf32> to vector<8x32xf32>
    %615 = tpu.transpose %612, [1, 0] : vector<8x16xf32> -> vector<16x8xf32>
    %cst_236 = arith.constant dense<0.000000e+00> : vector<16x32xf32>
    %616 = tpu.matmul %615, %613, %cst_236 {dimension_numbers = #tpu.dot_dimension_numbers<[1], [0], [0], [1], [0, 0, 1, 1], [], []>} : vector<16x8xf32>, vector<8x32xf32>, vector<16x32xf32> -> vector<16x32xf32>
    %cst_237 = arith.constant 0.353553385 : f32
    %617 = vector.broadcast %cst_237 : f32 to vector<16x32xf32>
    %618 = arith.mulf %616, %617 : vector<16x32xf32>
    %cst_238 = arith.constant -1.000000e+30 : f32
    %619 = vector.broadcast %cst_238 : f32 to vector<16x32xf32>
    %620 = arith.select %77, %618, %619 : vector<16x32xi1>, vector<16x32xf32>
    %cst_239 = arith.constant dense<0xFF800000> : vector<16xf32>
    %621 = vector.multi_reduction <maximumf>, %620, %cst_239 [1] : vector<16x32xf32> to vector<16xf32>
    %622 = vector.shape_cast %621 : vector<16xf32> to vector<16x1xf32>
    %623 = vector.broadcast %622 : vector<16x1xf32> to vector<16x32xf32>
    %624 = arith.subf %620, %623 : vector<16x32xf32>
    %625 = math.exp %624 : vector<16x32xf32>
    %cst_240 = arith.constant dense<0.000000e+00> : vector<16xf32>
    %626 = vector.multi_reduction <add>, %625, %cst_240 [1] : vector<16x32xf32> to vector<16xf32>
    %627 = vector.shape_cast %626 : vector<16xf32> to vector<16x1xf32>
    %628 = tpu.reciprocal %627 {approx = true} : vector<16x1xf32> -> vector<16x1xf32>
    %629 = vector.broadcast %628 : vector<16x1xf32> to vector<16x32xf32>
    %630 = arith.mulf %625, %629 : vector<16x32xf32>
    %631 = tpu.transpose %630, [1, 0] : vector<16x32xf32> -> vector<32x16xf32>
    %cst_241 = arith.constant dense<0.000000e+00> : vector<8x16xf32>
    %632 = tpu.matmul %614, %631, %cst_241 {dimension_numbers = #tpu.dot_dimension_numbers<[1], [0], [0], [1], [0, 0, 1, 1], [], []>} : vector<8x32xf32>, vector<32x16xf32>, vector<8x16xf32> -> vector<8x16xf32>
    %633 = tpu.concatenate %569, %590, %611, %632 in 0 : vector<8x16xf32>, vector<8x16xf32>, vector<8x16xf32>, vector<8x16xf32> -> vector<32x16xf32>
    %cst_242 = arith.constant dense<0.000000e+00> : vector<32x16xf32>
    %634 = tpu.matmul %546, %633, %cst_242 {dimension_numbers = #tpu.dot_dimension_numbers<[1], [0], [0], [1], [0, 0, 1, 1], [], []>} : vector<32x32xf32>, vector<32x16xf32>, vector<32x16xf32> -> vector<32x16xf32>
    %635 = vector.broadcast %548 : vector<32x1xf32> to vector<32x16xf32>
    %636 = arith.addf %634, %635 : vector<32x16xf32>
    %637 = arith.addf %524, %636 : vector<32x16xf32>
    %c1_243 = arith.constant 1 : index
    %c0_244 = arith.constant 0 : index
    %c0_245 = arith.constant 0 : index
    %638 = vector.load %arg18[%c1_243, %c0_244, %c0_245] : memref<2x32x1xf32, #tpu.memory_space<vmem>>, vector<1x32x1xf32>
    %639 = vector.shape_cast %638 : vector<1x32x1xf32> to vector<32x1xf32>
    %c1_246 = arith.constant 1 : index
    %c0_247 = arith.constant 0 : index
    %c0_248 = arith.constant 0 : index
    %640 = vector.load %arg19[%c1_246, %c0_247, %c0_248] : memref<2x32x1xf32, #tpu.memory_space<vmem>>, vector<1x32x1xf32>
    %641 = vector.shape_cast %640 : vector<1x32x1xf32> to vector<32x1xf32>
    %cst_249 = arith.constant dense<0.000000e+00> : vector<16xf32>
    %642 = vector.multi_reduction <add>, %637, %cst_249 [0] : vector<32x16xf32> to vector<16xf32>
    %643 = vector.shape_cast %642 : vector<16xf32> to vector<1x16xf32>
    %cst_250 = arith.constant 3.200000e+01 : f32
    %644 = vector.broadcast %cst_250 : f32 to vector<1x16xf32>
    %645 = arith.divf %643, %644 : vector<1x16xf32>
    %646 = vector.broadcast %645 : vector<1x16xf32> to vector<32x16xf32>
    %647 = arith.subf %637, %646 : vector<32x16xf32>
    %648 = arith.mulf %647, %647 : vector<32x16xf32>
    %cst_251 = arith.constant dense<0.000000e+00> : vector<16xf32>
    %649 = vector.multi_reduction <add>, %648, %cst_251 [0] : vector<32x16xf32> to vector<16xf32>
    %650 = vector.shape_cast %649 : vector<16xf32> to vector<1x16xf32>
    %cst_252 = arith.constant 3.200000e+01 : f32
    %651 = vector.broadcast %cst_252 : f32 to vector<1x16xf32>
    %652 = arith.divf %650, %651 : vector<1x16xf32>
    %cst_253 = arith.constant 9.99999974E-6 : f32
    %653 = vector.broadcast %cst_253 : f32 to vector<1x16xf32>
    %654 = arith.addf %652, %653 : vector<1x16xf32>
    %655 = math.rsqrt %654 : vector<1x16xf32>
    %656 = vector.broadcast %655 : vector<1x16xf32> to vector<32x16xf32>
    %657 = arith.mulf %647, %656 : vector<32x16xf32>
    %658 = vector.broadcast %639 : vector<32x1xf32> to vector<32x16xf32>
    %659 = arith.mulf %657, %658 : vector<32x16xf32>
    %660 = vector.broadcast %641 : vector<32x1xf32> to vector<32x16xf32>
    %661 = arith.addf %659, %660 : vector<32x16xf32>
    %c1_254 = arith.constant 1 : index
    %c0_255 = arith.constant 0 : index
    %c0_256 = arith.constant 0 : index
    %662 = vector.load %arg12[%c1_254, %c0_255, %c0_256] : memref<2x64x32xf32, #tpu.memory_space<vmem>>, vector<1x64x32xf32>
    %663 = vector.shape_cast %662 : vector<1x64x32xf32> to vector<64x32xf32>
    %cst_257 = arith.constant dense<0.000000e+00> : vector<64x16xf32>
    %664 = tpu.matmul %663, %661, %cst_257 {dimension_numbers = #tpu.dot_dimension_numbers<[1], [0], [0], [1], [0, 0, 1, 1], [], []>} : vector<64x32xf32>, vector<32x16xf32>, vector<64x16xf32> -> vector<64x16xf32>
    %c1_258 = arith.constant 1 : index
    %c0_259 = arith.constant 0 : index
    %c0_260 = arith.constant 0 : index
    %665 = vector.load %arg13[%c1_258, %c0_259, %c0_260] : memref<2x64x1xf32, #tpu.memory_space<vmem>>, vector<1x64x1xf32>
    %666 = vector.shape_cast %665 : vector<1x64x1xf32> to vector<64x1xf32>
    %667 = vector.broadcast %666 : vector<64x1xf32> to vector<64x16xf32>
    %668 = arith.addf %664, %667 : vector<64x16xf32>
    %cst_261 = arith.constant 0.000000e+00 : f32
    %669 = vector.broadcast %cst_261 : f32 to vector<64x16xf32>
    %670 = arith.maximumf %668, %669 : vector<64x16xf32>
    %c1_262 = arith.constant 1 : index
    %c0_263 = arith.constant 0 : index
    %c0_264 = arith.constant 0 : index
    %671 = vector.load %arg14[%c1_262, %c0_263, %c0_264] : memref<2x32x64xf32, #tpu.memory_space<vmem>>, vector<1x32x64xf32>
    %672 = vector.shape_cast %671 : vector<1x32x64xf32> to vector<32x64xf32>
    %cst_265 = arith.constant dense<0.000000e+00> : vector<32x16xf32>
    %673 = tpu.matmul %672, %670, %cst_265 {dimension_numbers = #tpu.dot_dimension_numbers<[1], [0], [0], [1], [0, 0, 1, 1], [], []>} : vector<32x64xf32>, vector<64x16xf32>, vector<32x16xf32> -> vector<32x16xf32>
    %c1_266 = arith.constant 1 : index
    %c0_267 = arith.constant 0 : index
    %c0_268 = arith.constant 0 : index
    %674 = vector.load %arg15[%c1_266, %c0_267, %c0_268] : memref<2x32x1xf32, #tpu.memory_space<vmem>>, vector<1x32x1xf32>
    %675 = vector.shape_cast %674 : vector<1x32x1xf32> to vector<32x1xf32>
    %676 = vector.broadcast %675 : vector<32x1xf32> to vector<32x16xf32>
    %677 = arith.addf %673, %676 : vector<32x16xf32>
    %678 = arith.addf %661, %677 : vector<32x16xf32>
    %c1_269 = arith.constant 1 : index
    %c0_270 = arith.constant 0 : index
    %c0_271 = arith.constant 0 : index
    %679 = vector.load %arg20[%c1_269, %c0_270, %c0_271] : memref<2x32x1xf32, #tpu.memory_space<vmem>>, vector<1x32x1xf32>
    %680 = vector.shape_cast %679 : vector<1x32x1xf32> to vector<32x1xf32>
    %c1_272 = arith.constant 1 : index
    %c0_273 = arith.constant 0 : index
    %c0_274 = arith.constant 0 : index
    %681 = vector.load %arg21[%c1_272, %c0_273, %c0_274] : memref<2x32x1xf32, #tpu.memory_space<vmem>>, vector<1x32x1xf32>
    %682 = vector.shape_cast %681 : vector<1x32x1xf32> to vector<32x1xf32>
    %cst_275 = arith.constant dense<0.000000e+00> : vector<16xf32>
    %683 = vector.multi_reduction <add>, %678, %cst_275 [0] : vector<32x16xf32> to vector<16xf32>
    %684 = vector.shape_cast %683 : vector<16xf32> to vector<1x16xf32>
    %cst_276 = arith.constant 3.200000e+01 : f32
    %685 = vector.broadcast %cst_276 : f32 to vector<1x16xf32>
    %686 = arith.divf %684, %685 : vector<1x16xf32>
    %687 = vector.broadcast %686 : vector<1x16xf32> to vector<32x16xf32>
    %688 = arith.subf %678, %687 : vector<32x16xf32>
    %689 = arith.mulf %688, %688 : vector<32x16xf32>
    %cst_277 = arith.constant dense<0.000000e+00> : vector<16xf32>
    %690 = vector.multi_reduction <add>, %689, %cst_277 [0] : vector<32x16xf32> to vector<16xf32>
    %691 = vector.shape_cast %690 : vector<16xf32> to vector<1x16xf32>
    %cst_278 = arith.constant 3.200000e+01 : f32
    %692 = vector.broadcast %cst_278 : f32 to vector<1x16xf32>
    %693 = arith.divf %691, %692 : vector<1x16xf32>
    %cst_279 = arith.constant 9.99999974E-6 : f32
    %694 = vector.broadcast %cst_279 : f32 to vector<1x16xf32>
    %695 = arith.addf %693, %694 : vector<1x16xf32>
    %696 = math.rsqrt %695 : vector<1x16xf32>
    %697 = vector.broadcast %696 : vector<1x16xf32> to vector<32x16xf32>
    %698 = arith.mulf %688, %697 : vector<32x16xf32>
    %699 = vector.broadcast %680 : vector<32x1xf32> to vector<32x16xf32>
    %700 = arith.mulf %698, %699 : vector<32x16xf32>
    %701 = vector.broadcast %682 : vector<32x1xf32> to vector<32x16xf32>
    %702 = arith.addf %700, %701 : vector<32x16xf32>
    %c0_280 = arith.constant 0 : index
    %c0_281 = arith.constant 0 : index
    %703 = vector.load %arg22[%c0_280, %c0_281] : memref<32x1xf32, #tpu.memory_space<vmem>>, vector<32x1xf32>
    %c0_282 = arith.constant 0 : index
    %c0_283 = arith.constant 0 : index
    %704 = vector.load %arg23[%c0_282, %c0_283] : memref<32x1xf32, #tpu.memory_space<vmem>>, vector<32x1xf32>
    %cst_284 = arith.constant dense<0.000000e+00> : vector<16xf32>
    %705 = vector.multi_reduction <add>, %702, %cst_284 [0] : vector<32x16xf32> to vector<16xf32>
    %706 = vector.shape_cast %705 : vector<16xf32> to vector<1x16xf32>
    %cst_285 = arith.constant 3.200000e+01 : f32
    %707 = vector.broadcast %cst_285 : f32 to vector<1x16xf32>
    %708 = arith.divf %706, %707 : vector<1x16xf32>
    %709 = vector.broadcast %708 : vector<1x16xf32> to vector<32x16xf32>
    %710 = arith.subf %702, %709 : vector<32x16xf32>
    %711 = arith.mulf %710, %710 : vector<32x16xf32>
    %cst_286 = arith.constant dense<0.000000e+00> : vector<16xf32>
    %712 = vector.multi_reduction <add>, %711, %cst_286 [0] : vector<32x16xf32> to vector<16xf32>
    %713 = vector.shape_cast %712 : vector<16xf32> to vector<1x16xf32>
    %cst_287 = arith.constant 3.200000e+01 : f32
    %714 = vector.broadcast %cst_287 : f32 to vector<1x16xf32>
    %715 = arith.divf %713, %714 : vector<1x16xf32>
    %cst_288 = arith.constant 9.99999974E-6 : f32
    %716 = vector.broadcast %cst_288 : f32 to vector<1x16xf32>
    %717 = arith.addf %715, %716 : vector<1x16xf32>
    %718 = math.rsqrt %717 : vector<1x16xf32>
    %719 = vector.broadcast %718 : vector<1x16xf32> to vector<32x16xf32>
    %720 = arith.mulf %710, %719 : vector<32x16xf32>
    %721 = vector.broadcast %703 : vector<32x1xf32> to vector<32x16xf32>
    %722 = arith.mulf %720, %721 : vector<32x16xf32>
    %723 = vector.broadcast %704 : vector<32x1xf32> to vector<32x16xf32>
    %724 = arith.addf %722, %723 : vector<32x16xf32>
    %725 = tpu.transpose %724, [1, 0] : vector<32x16xf32> -> vector<16x32xf32>
    %c0_289 = arith.constant 0 : index
    %c0_290 = arith.constant 0 : index
    %726 = vector.load %arg24[%c0_289, %c0_290] : memref<16x32xf32, #tpu.memory_space<vmem>>, vector<16x32xf32>
    tpu.vector_store %arg24[%c0_289, %c0_290], %725 {strides = array<i32>} : memref<16x32xf32, #tpu.memory_space<vmem>>, vector<16x32xf32>,
    return
  }
}

</mosaic_0001>

<bundles_post_ra>
// kernel: transformer_decoder.1
= control target key start
LH: loop header
LB: loop body
LE: loop exit
PB: predicated region body
PF: predicated region fallthrough
CT: control target
= control target key end

     0   :  { %s10155_s0 = inlined_call_operand.vmem [shape: f32[16,32], index: 0, kind: input, shape index: {}]   ;;  %s10156_s1 = inlined_call_operand.vmem [shape: f32[32,32], index: 1, kind: input, shape index: {}]   ;;  %s10157_s2 = inlined_call_operand.vmem [shape: f32[16,32], index: 2, kind: input, shape index: {}]   ;;  %s10158_s3 = inlined_call_operand.vmem [shape: f32[32,32], index: 3, kind: input, shape index: {}]   ;;  %s10159_s4 = inlined_call_operand.vmem [shape: f32[2,96,32], index: 4, kind: input, shape index: {}]   ;;  %s10160_s5 = inlined_call_operand.vmem [shape: f32[2,96,1], index: 5, kind: input, shape index: {}]   ;;  %s10161_s6 = inlined_call_operand.vmem [shape: f32[2,32,32], index: 6, kind: input, shape index: {}]   ;;  %s10162_s7 = inlined_call_operand.vmem [shape: f32[2,32,1], index: 7, kind: input, shape index: {}]   ;;  %s10163_s8 = inlined_call_operand.vmem [shape: f32[2,96,32], index: 8, kind: input, shape index: {}]   ;;  %s10164_s9 = inlined_call_operand.vmem [shape: f32[2,96,1], index: 9, kind: input, shape index: {}]   ;;  %s10165_s10 = inlined_call_operand.vmem [shape: f32[2,32,32], index: 10, kind: input, shape index: {}]   ;;  %s10166_s11 = inlined_call_operand.vmem [shape: f32[2,32,1], index: 11, kind: input, shape index: {}]   ;;  %s10167_s12 = inlined_call_operand.vmem [shape: f32[2,64,32], index: 12, kind: input, shape index: {}]   ;;  %s10168_s13 = inlined_call_operand.vmem [shape: f32[2,64,1], index: 13, kind: input, shape index: {}]   ;;  %s10169_s14 = inlined_call_operand.vmem [shape: f32[2,32,64], index: 14, kind: input, shape index: {}]   ;;  %s10170_s15 = inlined_call_operand.vmem [shape: f32[2,32,1], index: 15, kind: input, shape index: {}]   ;;  %s10171_s16 = inlined_call_operand.vmem [shape: f32[2,32,1], index: 16, kind: input, shape index: {}]   ;;  %s10172_s17 = inlined_call_operand.vmem [shape: f32[2,32,1], index: 17, kind: input, shape index: {}]   ;;  %s10173_s18 = inlined_call_operand.vmem [shape: f32[2,32,1], index: 18, kind: input, shape index: {}]   ;;  %s10174_s19 = inlined_call_operand.vmem [shape: f32[2,32,1], index: 19, kind: input, shape index: {}]   ;;  %s10175_s20 = inlined_call_operand.vmem [shape: f32[2,32,1], index: 20, kind: input, shape index: {}]   ;;  %s10176_s21 = inlined_call_operand.vmem [shape: f32[2,32,1], index: 21, kind: input, shape index: {}]   ;;  %s10177_s22 = inlined_call_operand.vmem [shape: f32[32,1], index: 22, kind: input, shape index: {}]   ;;  %s10178_s23 = inlined_call_operand.vmem [shape: f32[32,1], index: 23, kind: input, shape index: {}]   ;;  %s10179_s24 = inlined_call_operand.hbm [shape: f32[16,32], index: 24, kind: output, shape index: {}]  }
   0x1   :  { %10190 = sst [smem:[#allocation5_spill]] %s10155_s0 }
   0x2   :  { %10191 = sst [smem:[#allocation6_spill]] %s10156_s1 }
   0x3   :  { %10192 = sst [smem:[#allocation7_spill]] %s10157_s2 }
   0x4   :  { %10193 = sst [smem:[#allocation8_spill]] %s10158_s3 }
   0x5   :  { %10194 = sst [smem:[#allocation9_spill]] %s10159_s4 }
   0x6   :  { %10195 = sst [smem:[#allocation10_spill]] %s10160_s5 }
   0x7   :  { %10196 = sst [smem:[#allocation11_spill]] %s10161_s6 }
   0x8   :  { %10197 = sst [smem:[#allocation12_spill]] %s10162_s7 }
   0x9   :  { %10198 = sst [smem:[#allocation13_spill]] %s10163_s8 }
   0xa   :  { %10199 = sst [smem:[#allocation14_spill]] %s10169_s14 }
   0xb   :  { %s10200_s27 = sld [smem:[#allocation7_spill]]  ;;  %s10201_s14 = sld [smem:[#allocation5_spill]] }
  0x11   :  { %v148_v0 = vld [vmem:[%s10200_s27] sm:$0xff] }
  0x12   :  { %v78_v1 = vld [vmem:[%s10201_s14] sm:$0xff]  ;;  %150 = vxpose.xlu1.b32.start [1/2] (short) (narrow) %v148_v0, 32 }
  0x13   :  { %80 = vxpose.xlu0.b32.start [1/2] (short) (narrow) %v78_v1, 32 }
  0x14   :  { %29 = vsyncpa [#allocation3], 0  ;;  %v149_v2 = vld [vmem:[%s10200_s27 + $0x8] sm:$0xff]  ;;  %s10202_s25 = sld [smem:[#allocation9_spill]]  ;;  %vm333_vm0 = vcmask 261120   ;;  %v8485_v5 = vmov 0   ;;  %v218_v59 = vlaneseq }
  0x15   :  { %v79_v3 = vld [vmem:[%s10201_s14 + $0x8] sm:$0xff]  ;;  %s10203_s1 = sld [smem:[#allocation10_spill]]  ;;  %vm620_vm1 = vcmask 64512   ;;  %vm706_vm3 = vcmask 130048   ;;  %vm8487_vm5 = vmmov 0   ;;  %s10210_s14 = sld [smem:[#allocation12_spill]]  ;;  %vm9141_vm7 = vmpackc.low %vm333_vm0, %vm333_vm0 }
  0x16   :  { %151 = vxpose.xlu1.b32.end [2/2] (short) (narrow) %v149_v2, 32  ;;  %v219_v60 = vshrl.u32 %v218_v59, 7  ;;  %v246_v62 = vand.u32 127, %v218_v59  ;;  %vm8785_vm6 = vmpackc.low %vm706_vm3, %vm706_vm3  ;;  %s10211_s27 = sld [smem:[#allocation8_spill]]  ;;  %s10212_s0 = sld [smem:[#allocation6_spill]]  ;;  %vm3381_vm8 = vcmask 523264  }
  0x17   :  { %81 = vxpose.xlu0.b32.end [2/2] (short) (narrow) %v79_v3, 32  ;;  %s10213_s28 = sld [smem:[#allocation11_spill]]  ;;  %s10214_s4 = sld [smem:[#allocation13_spill]] }
  0x18   :  { %v220_v61 = vadd.s32 8, %v219_v60  ;;  %v251_v0 = vand.u32 1, %v246_v62  ;;  %v225_v1 = vand.u32 1, %v219_v60  ;;  %v8486_v62 = vmov 0.0|0.0   ;;  %s10217_s2 = sld [smem:[#allocation14_spill]] }
  0x1a   :  { %v265_v4 = vld [vmem:[%s10202_s25] sm:$0xff]  ;;  %v266_v26 = vld [vmem:[%s10202_s25 + $0x8] sm:$0xff]  ;;  %v267_v27 = vld [vmem:[%s10202_s25 + $0x10] sm:$0xff]  ;;  %v232_v63 = vand.u32 1, %v220_v61  ;;  %vm8737_vm4 = vcmp.eq.s32.totalorder %v225_v1, %v251_v0 }
  0x1b   :  { %7610 = vmatprep.mubr.msk.f32.mxu0 %vm333_vm0, %v265_v4  ;;  %v278_v6 = vld [vmem:[%s10203_s1 + $0x8] sm:$0xff]  ;;  %v281_v7 = vld [vmem:[%s10203_s1 + $0x20] sm:$0xff]  ;;  %v268_v28 = vld [vmem:[%s10202_s25 + $0x18] sm:$0xff] }
  0x1c   :  { %v282_v8 = vld [vmem:[%s10203_s1 + $0x28] sm:$0xff]  ;;  %v277_v9 = vld [vmem:[%s10203_s1] sm:$0xff]  ;;  %v275_v33 = vld [vmem:[%s10202_s25 + $0x50] sm:$0xff]  ;;  %vm8733_vm2 = vcmp.eq.s32.totalorder %v232_v63, %v251_v0  ;;  %v8488_v63 = vmov 0.0  }
  0x1d   :  { %v269_v29 = vld [vmem:[%s10202_s25 + $0x20] sm:$0xff]  ;;  %v270_v30 = vld [vmem:[%s10202_s25 + $0x28] sm:$0xff]  ;;  %v276_v34 = vld [vmem:[%s10202_s25 + $0x58] sm:$0xff] }
  0x1e   :  { %v273_v31 = vld [vmem:[%s10202_s25 + $0x40] sm:$0xff]  ;;  %v274_v32 = vld [vmem:[%s10202_s25 + $0x48] sm:$0xff]  ;;  %v271_v57 = vld [vmem:[%s10202_s25 + $0x30] sm:$0xff] }
  0x1f   :  { %7630 = vmatprep.mubr.msk.f32.mxu1 %vm333_vm0, %v273_v31  ;;  %v272_v58 = vld [vmem:[%s10202_s25 + $0x38] sm:$0xff]  ;;  %v285_v31 = vld [vmem:[%s10203_s1 + $0x40] sm:$0xff] }
  0x20   :  { %v284_v61 = vld [vmem:[%s10203_s1 + $0x38] sm:$0xff] }
  0x34   :  { %8318 = vset.pattern.permute.xlu1 %v8485_v5 }
  0x3c   :  { %300 = vperm.xlu1 %8318, %v278_v6  }
  0x40   :  { %8317 = vset.pattern.permute.xlu0 %v8485_v5  ;;  %315 = vperm.xlu1 %8318, %v281_v7  }
  0x44   :  { %320 = vperm.xlu1 %8318, %v282_v8  }
  0x48   :  { %295 = vperm.xlu0 %8317, %v277_v9  }
  0x92   :  { %v8645_v10 = vpop.trf.xlu1 }
  0x93   :  { %v8647_v11 = vpop.trf.xlu0 }
  0x94   :  { %v289_v15 = vadd.f32 %v8645_v10, %v8647_v11 }
  0x96   :  { %v8649_v12 = vpop.trf.xlu1 }
  0x97   :  { %v8651_v13 = vpop.trf.xlu0 }
  0x98   :  { %v8094_v14 = vpack.c.bf16 %v8651_v13, %v8647_v11  ;;  %v290_v16 = vadd.f32 %v8649_v12, %v8651_v13 }
  0x9a   :  { %8095 = vmatprep.subr.bf16.mxu1 %v8094_v14  ;;  %v8086_v17 = vpack.c.bf16 %v290_v16, %v289_v15  ;;  %v8659_v18 = vpop.trf.xlu1 }
  0x9b   :  { %8097 = vmatpush3.bf16.msra.mxu1 %v8094_v14  ;;  %v8661_v19 = vpop.trf.xlu0 }
  0x9c   :  { %8087 = vmatprep.subr.bf16.mxu0 %v8086_v17  ;;  %v291_v22 = vadd.f32 %v8659_v18, %v8661_v19 }
  0x9d   :  { %8089 = vmatpush3.bf16.msra.mxu0 %v8086_v17 }
  0x9e   :  { %v8663_v20 = vpop.trf.xlu1 }
  0x9f   :  { %v8665_v21 = vpop.trf.xlu0 }
  0xa0   :  { %v292_v23 = vadd.f32 %v8663_v20, %v8665_v21  ;;  %v8098_v24 = vpack.c.bf16 %v8665_v21, %v8661_v19 }
  0xa2   :  { %8099 = vmatprep.subr.bf16.mxu1 %v8098_v24  ;;  %v8090_v25 = vpack.c.bf16 %v292_v23, %v291_v22 }
  0xa3   :  { %8101 = vmatpush3.bf16.msra.mxu1 %v8098_v24 }
  0xa4   :  { %8091 = vmatprep.subr.bf16.mxu0 %v8090_v25 }
  0xa5   :  { %8093 = vmatpush3.bf16.msra.mxu0 %v8090_v25 }
  0xa6   :  { %7631 = vmatmul.mubr.msk.f32.vlgmr.msra.gmra.mrb[0].mxu1 %vm333_vm0, %v274_v32  ;;  %8102 = vmatprep.subr.bf16.mxu0 %v8486_v62 }
  0xa7   :  { %7633 = vmatprep.mubr.msk.f32.mxu1 %vm333_vm0, %v275_v33 }
  0xa8   :  { %7611 = vmatmul.mubr.msk.f32.vlgmr.msra.gmra.mrb[0].mxu0 %vm333_vm0, %v266_v26 }
  0xa9   :  { %7613 = vmatprep.mubr.msk.f32.mxu0 %vm333_vm0, %v267_v27 }
  0xaa   :  { %7634 = vmatmul.mubr.msk.f32.gmra.mrb[2].mxu1 %vm333_vm0, %v276_v34 }
  0xac   :  { %7614 = vmatmul.mubr.msk.f32.gmra.mrb[2].mxu0 %vm333_vm0, %v268_v28  ;;  %v280_v28 = vld [vmem:[%s10203_s1 + $0x18] sm:$0xff] }
  0xad   :  { %7616 = vmatprep.mubr.msk.f32.mxu0 %vm333_vm0, %v269_v29  ;;  %v286_v29 = vld [vmem:[%s10203_s1 + $0x48] sm:$0xff] }
  0xb0   :  { %7617 = vmatmul.mubr.msk.f32.gmra.mrb[4].mxu0 %vm333_vm0, %v270_v30  ;;  %v279_v30 = vld [vmem:[%s10203_s1 + $0x10] sm:$0xff] }
  0xb1   :  { %7619 = vmatprep.mubr.msk.f32.mxu0 %vm333_vm0, %v271_v57 }
  0xb4   :  { %7620 = vmatmul.mubr.msk.f32.gmra.mrb[6].mxu0 %vm333_vm0, %v272_v58  ;;  %v283_v58 = vld [vmem:[%s10203_s1 + $0x30] sm:$0xff] }
  0xb5   :  { %7645 = vmatprep.mubr.msk.f32.mxu0 %vm8487_vm5, %v8488_v63 }
  0xbb   :  { %v301_v35 = vpop.permute.xlu1 %300 }
  0xbf   :  { %v316_v42 = vpop.permute.xlu1 %315 }
  0xc3   :  { %v321_v47 = vpop.permute.xlu1 %320 }
  0xc7   :  { %v296_v36 = vpop.permute.xlu0 %295 }
 0x179   :  { %v8713_v49 = vpop.f32.mrb[0].mxu1 }
 0x17a   :  { %v8715_v50 = vpop.f32.mrb[1].mxu1 }
 0x17b   :  { %v7612_v37 = vpop.f32.mrb[0].mxu0 }
 0x17c   :  { %v430_v38 = vadd.f32 %v7612_v37, %v301_v35  ;;  %v424_v39 = vpop.f32.mrb[1].mxu0 }
 0x17d   :  { %v425_v40 = vadd.f32 %v424_v39, %v296_v36  ;;  %v8717_v51 = vpop.f32.mrb[2].mxu1 }
 0x17e   :  { %808 = vxpose.xlu0.b32.start.end [1/1] (short) (narrow) %v430_v38, 16  ;;  %v8719_v52 = vpop.f32.mrb[3].mxu1 }
 0x17f   :  { %588 = vxpose.xlu1.b32.start.end [1/1] (short) (narrow) %v425_v40, 16  ;;  %v8709_v41 = vpop.f32.mrb[2].mxu0 }
 0x180   :  { %v8711_v43 = vpop.f32.mrb[3].mxu0 }
 0x183   :  { %v7618_v44 = vpop.f32.mrb[4].mxu0 }
 0x184   :  { %v444_v45 = vpop.f32.mrb[5].mxu0  ;;  %v450_v48 = vadd.f32 %v7618_v44, %v321_v47 }
 0x185   :  { %v445_v46 = vadd.f32 %v444_v45, %v316_v42 }
 0x187   :  { %7636 = vmatprep.subr.mxu1 %v445_v46  ;;  %v7621_v59 = vpop.f32.mrb[6].mxu0 }
 0x188   :  { %7637 = vmatpush3.msra.mxu1 %v445_v46  ;;  %v454_v60 = vpop.f32.mrb[7].mxu0 }
 0x189   :  { %7648 = vmatprep.subr.mxu1 %v450_v48 }
 0x1fe   :  { %v824_v54 = vpop.trf.xlu0 }
 0x1ff   :  { %v604_v53 = vpop.trf.xlu1 }
 0x200   :  { %7638 = vmatprep.mubr.msk.f32.mxu1 %vm620_vm1, %v604_v53 }
 0x202   :  { %v825_v56 = vpop.trf.xlu0 }
 0x203   :  { %v605_v55 = vpop.trf.xlu1 }
 0x204   :  { %7639 = vmatmul.mubr.msk.f32.vlgmr.msra.gmra.mrb[4].mxu1 %vm620_vm1, %v605_v55 }
 0x205   :  { %7649 = vmatpush3.msra.mxu1 %v450_v48  ;;  %7650 = vmatprep.mubr.msk.f32.mxu1 %vm620_vm1, %v824_v54 }
 0x206   :  { %8106 = vmatprep.subr.bf16.mxu1 %v8486_v62 }
 0x208   :  { %7651 = vmatmul.mubr.msk.f32.vlgmr.msra.gmra.mrb[6].mxu1 %vm620_vm1, %v825_v56 }
 0x209   :  { %7657 = vmatprep.mubr.msk.f32.mxu1 %vm8487_vm5, %v8488_v63 }
 0x2d7   :  { %v7640_v2 = vpop.f32.mrb[4].mxu1 }
 0x2d8   :  { %v703_v4 = vmul.f32 0.35355338, %v7640_v2  ;;  %v693_v5 = vpop.f32.mrb[5].mxu1 }
 0x2d9   :  { %v702_v7 = vmul.f32 0.35355338, %v693_v5 }
 0x2da   :  { %v705_v8 = vsel %vm8733_vm2, %v703_v4, -1e+30 }
 0x2db   :  { %v7652_v9 = vpop.f32.mrb[6].mxu1  ;;  %v710_v14 = vsel %vm706_vm3, %v705_v8, -inf  ;;  %v704_v15 = vsel %vm8737_vm4, %v702_v7, -1e+30 }
 0x2dc   :  { %v922_v16 = vmul.f32 0.35355338, %v7652_v9  ;;  %711 = vmax.xlane.f32.xlu1 %v710_v14  ;;  %v912_v17 = vpop.f32.mrb[7].mxu1  ;;  %v707_v22 = vsel %vm706_vm3, %v704_v15, -inf }
 0x2dd   :  { %v921_v23 = vmul.f32 0.35355338, %v912_v17  ;;  %708 = vmax.xlane.f32.xlu0 %v707_v22 }
 0x2de   :  { %v924_v24 = vsel %vm8733_vm2, %v922_v16, -1e+30 }
 0x2df   :  { %v928_v25 = vsel %vm706_vm3, %v924_v24, -inf  ;;  %v923_v26 = vsel %vm8737_vm4, %v921_v23, -1e+30 }
 0x2e0   :  { %929 = vmax.xlane.f32.xlu1 %v928_v25  ;;  %v925_v27 = vsel %vm706_vm3, %v923_v26, -inf }
 0x2e1   :  { %926 = vmax.xlane.f32.xlu0 %v925_v27 }
 0x2f1   :  { %310 = vperm.xlu1 %8318, %v280_v28  }
 0x2f5   :  { %470 = vperm.xlu1 %8318, %v286_v29  }
 0x2f7   :  { %305 = vperm.xlu0 %8317, %v279_v30  }
 0x2fb   :  { %465 = vperm.xlu0 %8317, %v285_v31  }
 0x369   :  { %v712_v32 = vpop.xlane.xlu1 %711 }
 0x36a   :  { %v714_v33 = vsub.f32 %v705_v8, %v712_v32  ;;  %v709_v34 = vpop.xlane.xlu0 %708 }
 0x36b   :  { %v713_v35 = vsub.f32 %v704_v15, %v709_v34 }
 0x36c   :  { %v717_v36 = vmul.f32 1.442695, %v714_v33 }
 0x36d   :  { %v715_v37 = vmul.f32 1.442695, %v713_v35  ;;  %v930_v38 = vpop.xlane.xlu1 %929 }
 0x36e   :  { %8319 = vpow2.f32 %v717_v36  ;;  %v932_v39 = vsub.f32 %v924_v24, %v930_v38  ;;  %v927_v40 = vpop.xlane.xlu0 %926 }
 0x36f   :  { %8321 = vpow2.f32 %v715_v37  ;;  %v931_v42 = vsub.f32 %v923_v26, %v927_v40 }
 0x370   :  { %v935_v44 = vmul.f32 1.442695, %v932_v39 }
 0x371   :  { %v933_v45 = vmul.f32 1.442695, %v931_v42  ;;  %v311_v0 = vpop.permute.xlu1 %310 }
 0x372   :  { %8323 = vpow2.f32 %v935_v44  ;;  %v440_v1 = vadd.f32 %v8709_v41, %v311_v0 }
 0x373   :  { %8325 = vpow2.f32 %v933_v45 }
 0x375   :  { %v471_v7 = vpop.permute.xlu1 %470 }
 0x376   :  { %v306_v2 = vpop.permute.xlu0 %305  ;;  %v567_v34 = vadd.f32 %v8713_v49, %v471_v7 }
 0x377   :  { %v435_v4 = vadd.f32 %v8711_v43, %v306_v2 }
 0x378   :  { %v8320_v46 = vpop.eup %8319 }
 0x379   :  { %v8322_v47 = vpop.eup %8321  ;;  %v722_v48 = vsel %vm706_vm3, %v8320_v46, 0.0 }
 0x37a   :  { %723 = vadd.xlane.f32.xlu0 %v722_v48  ;;  %v719_v53 = vsel %vm706_vm3, %v8322_v47, 0.0  ;;  %v466_v5 = vpop.permute.xlu0 %465 }
 0x37b   :  { %720 = vadd.xlane.f32.xlu1 %v719_v53  ;;  %v562_v33 = vadd.f32 %v8715_v50, %v466_v5 }
 0x37c   :  { %v8324_v54 = vpop.eup %8323 }
 0x37d   :  { %v8326_v55 = vpop.eup %8325  ;;  %v940_v56 = vsel %vm706_vm3, %v8324_v54, 0.0 }
 0x37e   :  { %v937_v57 = vsel %vm706_vm3, %v8326_v55, 0.0 }
 0x37f   :  { %941 = vadd.xlane.f32.xlu1 %v940_v56  ;;  %938 = vadd.xlane.f32.xlu0 %v937_v57 }
 0x390   :  { %325 = vperm.xlu1 %8318, %v283_v58  }
 0x395   :  { %330 = vperm.xlu0 %8317, %v284_v61  }
 0x3b3   :  { %1244 = vxpose.xlu0.b32.start.end [1/1] (short) (narrow) %v440_v1, 16 }
 0x3b9   :  { %1026 = vxpose.xlu1.b32.start.end [1/1] (short) (narrow) %v435_v4, 16 }
 0x407   :  { %v724_v8 = vpop.xlane.xlu0 %723 }
 0x408   :  { %8327 = vrcp.f32 %v724_v8  ;;  %v721_v9 = vpop.xlane.xlu1 %720 }
 0x409   :  { %8329 = vrcp.f32 %v721_v9 }
 0x40c   :  { %v942_v14 = vpop.xlane.xlu1 %941  ;;  %v939_v15 = vpop.xlane.xlu0 %938 }
 0x40d   :  { %8331 = vrcp.f32 %v942_v14 }
 0x40e   :  { %8333 = vrcp.f32 %v939_v15 }
 0x410   :  { %v326_v41 = vpop.permute.xlu1 %325 }
 0x411   :  { %v455_v26 = vadd.f32 %v454_v60, %v326_v41 }
 0x412   :  { %v8328_v16 = vpop.eup %8327 }
 0x413   :  { %v8330_v17 = vpop.eup %8329  ;;  %v728_v22 = vmul.f32 %v8328_v16, %v8320_v46 }
 0x414   :  { %v727_v23 = vmul.f32 %v8330_v17, %v8322_v47  ;;  %v331_v30 = vpop.permute.xlu0 %330 }
 0x415   :  { %v460_v32 = vadd.f32 %v7621_v59, %v331_v30 }
 0x416   :  { %v8103_v24 = vpack.c.bf16 %v728_v22, %v727_v23 }
 0x417   :  { %v8332_v25 = vpop.eup %8331 }
 0x418   :  { %v8334_v27 = vpop.eup %8333  ;;  %v946_v28 = vmul.f32 %v8332_v25, %v8324_v54  ;;  %8105 = vmatpush3.bf16.xpose.msk.msra.mxu0 %vm8785_vm6, %v8103_v24 }
 0x419   :  { %v945_v29 = vmul.f32 %v8334_v27, %v8326_v55  ;;  %7660 = vmatprep.subr.mxu0 %v455_v26 }
 0x41b   :  { %v8107_v31 = vpack.c.bf16 %v946_v28, %v945_v29 }
 0x41d   :  { %8109 = vmatpush3.bf16.xpose.msk.msra.mxu1 %vm8785_vm6, %v8107_v31  ;;  %v288_v31 = vld [vmem:[%s10203_s1 + $0x58] sm:$0xff] }
 0x41e   :  { %7672 = vmatprep.subr.mxu1 %v460_v32 }
 0x41f   :  { %7646 = vmatmul.mubr.msk.f32.vlgmr.msra.gmra.mrb[8].mxu0 %vm706_vm3, %v562_v33  ;;  %v287_v33 = vld [vmem:[%s10203_s1 + $0x50] sm:$0xff] }
 0x420   :  { %7661 = vmatpush3.msra.mxu0 %v455_v26 }
 0x421   :  { %8110 = vmatprep.subr.bf16.mxu0 %v8486_v62 }
 0x424   :  { %7658 = vmatmul.mubr.msk.f32.vlgmr.msra.gmra.mrb[8].mxu1 %vm706_vm3, %v567_v34  ;;  %v586_v34 = vld [vmem:[%s10210_s14 + $0x10] sm:$0xff] }
 0x425   :  { %7673 = vmatpush3.msra.mxu1 %v460_v32  ;;  %v584_v32 = vld [vmem:[%s10210_s14] sm:$0xff] }
 0x426   :  { %8114 = vmatprep.subr.bf16.mxu1 %v8486_v62 }
 0x433   :  { %v1260_v35 = vpop.trf.xlu0 }
 0x434   :  { %7674 = vmatprep.mubr.msk.f32.mxu1 %vm620_vm1, %v1260_v35  ;;  %v585_v35 = vld [vmem:[%s10210_s14 + $0x8] sm:$0xff] }
 0x437   :  { %v1261_v50 = vpop.trf.xlu0 }
 0x438   :  { %7675 = vmatmul.mubr.msk.f32.vlgmr.msra.gmra.mrb[10].mxu1 %vm620_vm1, %v1261_v50  ;;  %v1583_v50 = vld [vmem:[%s10171_s16] sm:$0xff] }
 0x439   :  { %v1042_v36 = vpop.trf.xlu1  ;;  %7681 = vmatprep.mubr.msk.f32.mxu1 %vm8487_vm5, %v8488_v63 }
 0x43a   :  { %7662 = vmatprep.mubr.msk.f32.mxu0 %vm620_vm1, %v1042_v36  ;;  %v587_v36 = vld [vmem:[%s10210_s14 + $0x18] sm:$0xff] }
 0x43d   :  { %v1043_v37 = vpop.trf.xlu1 }
 0x43e   :  { %7663 = vmatmul.mubr.msk.f32.vlgmr.msra.gmra.mrb[10].mxu0 %vm620_vm1, %v1043_v37  ;;  %v1587_v37 = vld [vmem:[%s10172_s17] sm:$0xff] }
 0x43f   :  { %7669 = vmatprep.mubr.msk.f32.mxu0 %vm8487_vm5, %v8488_v63 }
 0x4f2   :  { %v804_v49 = vpop.f32.mrb[8].mxu0 }
 0x4f3   :  { %v7647_v38 = vpop.f32.mrb[9].mxu0 }
 0x4f4   :  { %v1585_v38 = vld [vmem:[%s10171_s16 + $0x10] sm:$0xff] }
 0x4f7   :  { %v1022_v39 = vpop.f32.mrb[8].mxu1 }
 0x4f8   :  { %v8807_v40 = vpack.c.bf16 %v1022_v39, %v804_v49  ;;  %v7659_v42 = vpop.f32.mrb[9].mxu1  ;;  %v1584_v49 = vld [vmem:[%s10171_s16 + $0x8] sm:$0xff] }
 0x4f9   :  { %v1588_v39 = vld [vmem:[%s10172_s17 + $0x8] sm:$0xff]  ;;  %v1589_v42 = vld [vmem:[%s10172_s17 + $0x10] sm:$0xff] }
 0x50b   :  { %v7676_v44 = vpop.f32.mrb[10].mxu1 }
 0x50c   :  { %v1348_v45 = vpop.f32.mrb[11].mxu1  ;;  %v1358_v46 = vmul.f32 0.35355338, %v7676_v44  ;;  %v1586_v44 = vld [vmem:[%s10171_s16 + $0x18] sm:$0xff] }
 0x50d   :  { %v1357_v48 = vmul.f32 0.35355338, %v1348_v45  ;;  %v1590_v45 = vld [vmem:[%s10172_s17 + $0x18] sm:$0xff] }
 0x50e   :  { %v1360_v57 = vsel %vm8733_vm2, %v1358_v46, -1e+30  ;;  %v182_v46 = vld [vmem:[%s10211_s27] sm:$0xff] }
 0x50f   :  { %v1359_v60 = vsel %vm8737_vm4, %v1357_v48, -1e+30  ;;  %v1364_v0 = vsel %vm706_vm3, %v1360_v57, -inf  ;;  %v112_v48 = vld [vmem:[%s10212_s0] sm:$0xff] }
 0x510   :  { %v1361_v1 = vsel %vm706_vm3, %v1359_v60, -inf }
 0x511   :  { %v7664_v47 = vpop.f32.mrb[10].mxu0 }
 0x512   :  { %v1140_v53 = vmul.f32 0.35355338, %v7664_v47  ;;  %v1130_v54 = vpop.f32.mrb[11].mxu0  ;;  %v183_v47 = vld [vmem:[%s10211_s27 + $0x8] sm:$0xff] }
 0x513   :  { %v1139_v55 = vmul.f32 0.35355338, %v1130_v54  ;;  %v113_v54 = vld [vmem:[%s10212_s0 + $0x8] sm:$0xff] }
 0x514   :  { %v1142_v56 = vsel %vm8733_vm2, %v1140_v53, -1e+30  ;;  %v184_v53 = vld [vmem:[%s10211_s27 + $0x10] sm:$0xff] }
 0x515   :  { %v1146_v58 = vsel %vm706_vm3, %v1142_v56, -inf  ;;  %v1141_v59 = vsel %vm8737_vm4, %v1139_v55, -1e+30  ;;  %v185_v55 = vld [vmem:[%s10211_s27 + $0x18] sm:$0xff] }
 0x516   :  { %1147 = vmax.xlane.f32.xlu1 %v1146_v58  ;;  %v1143_v61 = vsel %vm706_vm3, %v1141_v59, -inf  ;;  %v1695_v58 = vld [vmem:[%s10164_s9 + $0x8] sm:$0xff] }
 0x517   :  { %1144 = vmax.xlane.f32.xlu0 %v1143_v61  ;;  %v1699_v61 = vld [vmem:[%s10164_s9 + $0x28] sm:$0xff] }
 0x51a   :  { %1365 = vmax.xlane.f32.xlu1 %v1364_v0 }
 0x51b   :  { %1362 = vmax.xlane.f32.xlu0 %v1361_v1 }
 0x5a3   :  { %v1148_v2 = vpop.xlane.xlu1 %1147 }
 0x5a4   :  { %v1150_v4 = vsub.f32 %v1142_v56, %v1148_v2  ;;  %v1145_v5 = vpop.xlane.xlu0 %1144  ;;  %v114_v56 = vld [vmem:[%s10212_s0 + $0x10] sm:$0xff] }
 0x5a5   :  { %v1149_v7 = vsub.f32 %v1141_v59, %v1145_v5  ;;  %v1698_v59 = vld [vmem:[%s10164_s9 + $0x20] sm:$0xff] }
 0x5a6   :  { %v1153_v8 = vmul.f32 1.442695, %v1150_v4 }
 0x5a7   :  { %v1151_v9 = vmul.f32 1.442695, %v1149_v7  ;;  %v1366_v14 = vpop.xlane.xlu1 %1365 }
 0x5a8   :  { %8335 = vpow2.f32 %v1153_v8  ;;  %v1368_v15 = vsub.f32 %v1360_v57, %v1366_v14  ;;  %v1363_v16 = vpop.xlane.xlu0 %1362  ;;  %v115_v57 = vld [vmem:[%s10212_s0 + $0x18] sm:$0xff] }
 0x5a9   :  { %8337 = vpow2.f32 %v1151_v9  ;;  %v1367_v17 = vsub.f32 %v1359_v60, %v1363_v16  ;;  %v1694_v60 = vld [vmem:[%s10164_s9] sm:$0xff] }
 0x5aa   :  { %v1371_v22 = vmul.f32 1.442695, %v1368_v15 }
 0x5ab   :  { %v1369_v23 = vmul.f32 1.442695, %v1367_v17 }
 0x5ac   :  { %8339 = vpow2.f32 %v1371_v22 }
 0x5ad   :  { %8341 = vpow2.f32 %v1369_v23 }
 0x5b2   :  { %v8821_v41 = vpop.eup %8335 }
 0x5b3   :  { %v8823_v24 = vpop.eup %8337  ;;  %v1158_v25 = vsel %vm706_vm3, %v8821_v41, 0.0 }
 0x5b4   :  { %1159 = vadd.xlane.f32.xlu1 %v1158_v25  ;;  %v1155_v26 = vsel %vm706_vm3, %v8823_v24, 0.0 }
 0x5b5   :  { %1156 = vadd.xlane.f32.xlu0 %v1155_v26 }
 0x5b6   :  { %v8829_v27 = vpop.eup %8339 }
 0x5b7   :  { %v8831_v28 = vpop.eup %8341  ;;  %v1376_v29 = vsel %vm706_vm3, %v8829_v27, 0.0 }
 0x5b8   :  { %1377 = vadd.xlane.f32.xlu1 %v1376_v29  ;;  %v1373_v30 = vsel %vm706_vm3, %v8831_v28, 0.0 }
 0x5b9   :  { %1374 = vadd.xlane.f32.xlu0 %v1373_v30 }
 0x5c9   :  { %480 = vperm.xlu1 %8318, %v288_v31  }
 0x5cd   :  { %1464 = vperm.xlu1 %8318, %v584_v32  }
 0x5cf   :  { %475 = vperm.xlu0 %8317, %v287_v33  }
 0x5d1   :  { %1474 = vperm.xlu1 %8318, %v586_v34  }
 0x5d3   :  { %1469 = vperm.xlu0 %8317, %v585_v35  }
 0x5d5   :  { %1636 = vperm.xlu1 %8318, %v1583_v50  }
 0x5d7   :  { %1479 = vperm.xlu0 %8317, %v587_v36  }
 0x5d9   :  { %1660 = vperm.xlu1 %8318, %v1587_v37  }
 0x5db   :  { %1641 = vperm.xlu0 %8317, %v1584_v49  }
 0x5dd   :  { %1646 = vperm.xlu1 %8318, %v1585_v38  }
 0x5df   :  { %1665 = vperm.xlu0 %8317, %v1588_v39  }
 0x5e1   :  { %1670 = vperm.xlu1 %8318, %v1589_v42  }
 0x5e3   :  { %1651 = vperm.xlu0 %8317, %v1586_v44  }
 0x5e7   :  { %1675 = vperm.xlu0 %8317, %v1590_v45  }
 0x605   :  { %186 = vxpose.xlu0.b32.start [1/4] (short) (narrow) %v182_v46, 32 }
 0x609   :  { %187 = vxpose.xlu0.b32.cont [2/4] (short) (narrow) %v183_v47, 32 }
 0x60a   :  { %116 = vxpose.xlu1.b32.start [1/4] (short) (narrow) %v112_v48, 32 }
 0x60d   :  { %188 = vxpose.xlu0.b32.cont [3/4] (short) (narrow) %v184_v53, 32 }
 0x60e   :  { %117 = vxpose.xlu1.b32.cont [2/4] (short) (narrow) %v113_v54, 32 }
 0x611   :  { %189 = vxpose.xlu0.b32.end [4/4] (short) (narrow) %v185_v55, 32 }
 0x612   :  { %118 = vxpose.xlu1.b32.cont [3/4] (short) (narrow) %v114_v56, 32 }
 0x616   :  { %119 = vxpose.xlu1.b32.end [4/4] (short) (narrow) %v115_v57, 32 }
 0x634   :  { %1717 = vperm.xlu1 %8318, %v1695_v58  }
 0x638   :  { %1829 = vperm.xlu1 %8318, %v1698_v59  }
 0x63a   :  { %1712 = vperm.xlu0 %8317, %v1694_v60   ;;  %v581_v60 = vld [vmem:[%s10213_s28 + $0x8] sm:$0xff] }
 0x63e   :  { %1834 = vperm.xlu0 %8317, %v1699_v61  }
 0x641   :  { %v1160_v0 = vpop.xlane.xlu1 %1159 }
 0x642   :  { %8343 = vrcp.f32 %v1160_v0  ;;  %v1157_v1 = vpop.xlane.xlu0 %1156  ;;  %v582_v0 = vld [vmem:[%s10213_s28 + $0x10] sm:$0xff] }
 0x643   :  { %8345 = vrcp.f32 %v1157_v1  ;;  %v583_v1 = vld [vmem:[%s10213_s28 + $0x18] sm:$0xff] }
 0x645   :  { %v1378_v2 = vpop.xlane.xlu1 %1377 }
 0x646   :  { %8347 = vrcp.f32 %v1378_v2  ;;  %v1375_v4 = vpop.xlane.xlu0 %1374  ;;  %v1686_v2 = vld [vmem:[%s10214_s4 + $0x20] sm:$0xff] }
 0x647   :  { %8349 = vrcp.f32 %v1375_v4  ;;  %v1687_v4 = vld [vmem:[%s10214_s4 + $0x28] sm:$0xff] }
 0x64c   :  { %v8344_v5 = vpop.eup %8343 }
 0x64d   :  { %v8346_v7 = vpop.eup %8345  ;;  %v1164_v8 = vmul.f32 %v8344_v5, %v8821_v41  ;;  %v1682_v5 = vld [vmem:[%s10214_s4] sm:$0xff] }
 0x64e   :  { %v1163_v9 = vmul.f32 %v8346_v7, %v8823_v24  ;;  %v476_v23 = vpop.permute.xlu0 %475  ;;  %v481_v24 = vpop.permute.xlu1 %480 }
 0x64f   :  { %v572_v41 = vadd.f32 %v8719_v52, %v476_v23  ;;  %v577_v26 = vadd.f32 %v8717_v51, %v481_v24 }
 0x650   :  { %v8348_v14 = vpop.eup %8347  ;;  %v8111_v15 = vpack.c.bf16 %v1164_v8, %v1163_v9 }
 0x651   :  { %v8350_v16 = vpop.eup %8349  ;;  %v1382_v17 = vmul.f32 %v8348_v14, %v8829_v27  ;;  %v580_v27 = vld [vmem:[%s10213_s28] sm:$0xff] }
 0x652   :  { %v1381_v22 = vmul.f32 %v8350_v16, %v8831_v28  ;;  %8113 = vmatpush3.bf16.xpose.msk.msra.mxu0 %vm8785_vm6, %v8111_v15  ;;  %v1470_v28 = vpop.permute.xlu0 %1469  ;;  %v1465_v29 = vpop.permute.xlu1 %1464 }
 0x653   :  { %8119 = vmatprep.subr.bf16.mxu0 %v8807_v40 }
 0x654   :  { %v8115_v25 = vpack.c.bf16 %v1382_v17, %v1381_v22 }
 0x656   :  { %8117 = vmatpush3.bf16.xpose.msk.msra.mxu1 %vm8785_vm6, %v8115_v25  ;;  %v1480_v30 = vpop.permute.xlu0 %1479  ;;  %v1475_v31 = vpop.permute.xlu1 %1474 }
 0x659   :  { %7670 = vmatmul.mubr.msk.f32.vlgmr.msra.gmra.mrb[12].mxu0 %vm706_vm3, %v572_v41 }
 0x65a   :  { %8121 = vmatpush3.bf16.msra.mxu0 %v8807_v40  ;;  %7692 = vmatprep.mubr.msk.f32.mxu0 %vm333_vm0, %v580_v27  ;;  %v8933_v52 = vpop.permute.xlu0 %1641  ;;  %v8935_v32 = vpop.permute.xlu1 %1636 }
 0x65d   :  { %7682 = vmatmul.mubr.msk.f32.vlgmr.msra.gmra.mrb[12].mxu1 %vm706_vm3, %v577_v26 }
 0x65e   :  { %v8937_v33 = vpop.permute.xlu0 %1665  ;;  %v8939_v40 = vpop.permute.xlu1 %1660  ;;  %7706 = vmatprep.mubr.msk.f32.mxu1 %vm333_vm0, %v1682_v5 }
 0x662   :  { %v8941_v51 = vpop.permute.xlu0 %1651  ;;  %v8943_v34 = vpop.permute.xlu1 %1646 }
 0x666   :  { %v8945_v35 = vpop.permute.xlu0 %1675  ;;  %v8947_v50 = vpop.permute.xlu1 %1670 }
 0x685   :  { %v202_v36 = vpop.trf.xlu0 }
 0x689   :  { %v203_v49 = vpop.trf.xlu0 }
 0x68a   :  { %v8949_v37 = vpop.trf.xlu1 }
 0x68b   :  { %v261_v45 = vadd.f32 %v202_v36, %v8949_v37 }
 0x68d   :  { %v204_v39 = vpop.trf.xlu0 }
 0x68e   :  { %v8951_v38 = vpop.trf.xlu1 }
 0x68f   :  { %v262_v46 = vadd.f32 %v203_v49, %v8951_v38 }
 0x691   :  { %v205_v48 = vpop.trf.xlu0  ;;  %v8959_v55 = vpack.c.bf16 %v262_v46, %v261_v45 }
 0x692   :  { %v8953_v42 = vpop.trf.xlu1 }
 0x693   :  { %v263_v56 = vadd.f32 %v204_v39, %v8953_v42 }
 0x696   :  { %v8957_v53 = vpop.trf.xlu1 }
 0x697   :  { %v264_v57 = vadd.f32 %v205_v48, %v8957_v53 }
 0x699   :  { %v8966_v61 = vpack.c.bf16 %v264_v57, %v263_v56 }
 0x6b3   :  { %v8993_v15 = vpop.permute.xlu1 %1717 }
 0x6b7   :  { %v1830_v39 = vpop.permute.xlu1 %1829 }
 0x6b9   :  { %v8997_v23 = vpop.permute.xlu0 %1712 }
 0x6bd   :  { %v1835_v45 = vpop.permute.xlu0 %1834 }
 0x72c   :  { %v1240_v44 = vpop.f32.mrb[12].mxu0 }
 0x72d   :  { %v7671_v47 = vpop.f32.mrb[13].mxu0 }
 0x730   :  { %v1458_v54 = vpop.f32.mrb[12].mxu1 }
 0x731   :  { %v8122_v58 = vpack.c.bf16 %v1458_v54, %v1240_v44  ;;  %v7683_v59 = vpop.f32.mrb[13].mxu1 }
 0x733   :  { %8123 = vmatprep.subr.bf16.mxu0 %v8122_v58 }
 0x734   :  { %8125 = vmatpush3.bf16.msra.mxu0 %v8122_v58 }
 0x735   :  { %8135 = vmatprep.subr.bf16.mxu0 %v8959_v55 }
 0x737   :  { %7693 = vmatmul.mubr.msk.f32.vlgmr.msra.gmra.mrb[14].mxu0 %vm333_vm0, %v581_v60 }
 0x738   :  { %8137 = vmatpush3.bf16.msra.mxu0 %v8959_v55  ;;  %7695 = vmatprep.mubr.msk.f32.mxu0 %vm333_vm0, %v582_v0 }
 0x739   :  { %8139 = vmatprep.subr.bf16.mxu0 %v8966_v61 }
 0x73b   :  { %7696 = vmatmul.mubr.msk.f32.gmra.mrb[16].mxu0 %vm333_vm0, %v583_v1 }
 0x73c   :  { %8141 = vmatpush3.bf16.msra.mxu0 %v8966_v61  ;;  %7720 = vmatprep.mubr.msk.f32.mxu0 %vm333_vm0, %v1686_v2 }
 0x73f   :  { %7721 = vmatmul.mubr.msk.f32.vlgmr.msra.gmra.mrb[18].mxu0 %vm333_vm0, %v1687_v4 }
 0x80a   :  { %v7694_v7 = vpop.f32.mrb[14].mxu0 }
 0x80b   :  { %v1566_v8 = vadd.f32 %v7694_v7, %v1470_v28  ;;  %v1560_v9 = vpop.f32.mrb[15].mxu0 }
 0x80c   :  { %v1561_v14 = vadd.f32 %v1560_v9, %v1465_v29 }
 0x80d   :  { %v1580_v16 = vadd.f32 %v1566_v8, %v8651_v13 }
 0x80e   :  { %v1579_v17 = vadd.f32 %v1561_v14, %v8647_v11  ;;  %v7697_v22 = vpop.f32.mrb[16].mxu0 }
 0x80f   :  { %v1592_v25 = vsel %vm706_vm3, %v1580_v16, 0.0  ;;  %v1576_v41 = vadd.f32 %v7697_v22, %v1480_v30  ;;  %v1570_v24 = vpop.f32.mrb[17].mxu0 }
 0x810   :  { %v1591_v26 = vsel %vm706_vm3, %v1579_v17, 0.0  ;;  %v1571_v27 = vadd.f32 %v1570_v24, %v1475_v31 }
 0x811   :  { %v1593_v36 = vadd.f32 %v1592_v25, %v1591_v26  ;;  %v1582_v28 = vadd.f32 %v1576_v41, %v8665_v21 }
 0x812   :  { %v1581_v29 = vadd.f32 %v1571_v27, %v8661_v19  ;;  %v7722_v49 = vpop.f32.mrb[18].mxu0 }
 0x813   :  { %v1925_v13 = vpop.f32.mrb[19].mxu0  ;;  %v1596_v47 = vsel %vm706_vm3, %v1582_v28, 0.0  ;;  %v9005_v30 = vadd.f32 %v7722_v49, %v1835_v45 }
 0x814   :  { %v1594_v11 = vsel %vm706_vm3, %v1581_v29, 0.0  ;;  %v1926_v44 = vadd.f32 %v1925_v13, %v1830_v39 }
 0x815   :  { %v1595_v46 = vadd.f32 %v1594_v11, %v1593_v36 }
 0x816   :  { %7740 = vmatprep.subr.mxu0 %v1926_v44 }
 0x817   :  { %v1597_v48 = vadd.f32 %v1596_v47, %v1595_v46  ;;  %7741 = vmatpush3.msra.mxu0 %v1926_v44 }
 0x818   :  { %7752 = vmatprep.subr.mxu0 %v9005_v30 }
 0x819   :  { %v1598_v21 = vrot.slane %v1597_v48, 4 }
 0x81b   :  { %v1599_v31 = vadd.f32 %v1598_v21, %v1597_v48 }
 0x81d   :  { %v1600_v19 = vrot.slane %v1599_v31, 2 }
 0x81f   :  { %v1601_v54 = vadd.f32 %v1600_v19, %v1599_v31 }
 0x821   :  { %v1602_v56 = vrot.slane %v1601_v54, 1 }
 0x823   :  { %v1603_v57 = vadd.f32 %v1602_v56, %v1601_v54 }
 0x825   :  { %v1605_v58 = vmul.f32 0.03125, %v1603_v57  ;;  %v9045_v57 = vpack.c.bf16 %v8957_v53, %v8953_v42 }
 0x827   :  { %v1606_v59 = vsub.f32 %v1579_v17, %v1605_v58  ;;  %v1607_v60 = vsub.f32 %v1580_v16, %v1605_v58  ;;  %v1608_v0 = vsub.f32 %v1581_v29, %v1605_v58  ;;  %v1609_v1 = vsub.f32 %v1582_v28, %v1605_v58 }
 0x829   :  { %v1610_v2 = vmul.f32 %v1606_v59, %v1606_v59  ;;  %v1611_v4 = vmul.f32 %v1607_v60, %v1607_v60  ;;  %v1612_v5 = vmul.f32 %v1608_v0, %v1608_v0  ;;  %v1613_v7 = vmul.f32 %v1609_v1, %v1609_v1 }
 0x82b   :  { %v1614_v8 = vsel %vm706_vm3, %v1610_v2, 0.0  ;;  %v1615_v9 = vsel %vm706_vm3, %v1611_v4, 0.0  ;;  %v1617_v22 = vsel %vm706_vm3, %v1612_v5, 0.0  ;;  %v1619_v41 = vsel %vm706_vm3, %v1613_v7, 0.0 }
 0x82c   :  { %v1616_v14 = vadd.f32 %v1615_v9, %v1614_v8 }
 0x82e   :  { %v1618_v25 = vadd.f32 %v1617_v22, %v1616_v14 }
 0x830   :  { %v1620_v24 = vadd.f32 %v1619_v41, %v1618_v25 }
 0x832   :  { %v1621_v26 = vrot.slane %v1620_v24, 4 }
 0x834   :  { %v1622_v17 = vadd.f32 %v1621_v26, %v1620_v24 }
 0x836   :  { %v1623_v16 = vrot.slane %v1622_v17, 2 }
 0x838   :  { %v1624_v27 = vadd.f32 %v1623_v16, %v1622_v17 }
 0x83a   :  { %v1625_v36 = vrot.slane %v1624_v27, 1 }
 0x83c   :  { %v1626_v28 = vadd.f32 %v1625_v36, %v1624_v27 }
 0x83e   :  { %v1627_v29 = vmul.f32 0.03125, %v1626_v28 }
 0x840   :  { %v1628_v49 = vadd.f32 1e-05, %v1627_v29 }
 0x842   :  { %8351 = vrsqrt.f32 %v1628_v49 }
 0x84c   :  { %v8352_v39 = vpop.eup %8351 }
 0x84d   :  { %v1632_v13 = vmul.f32 %v8352_v39, %v1608_v0  ;;  %v1630_v11 = vmul.f32 %v8352_v39, %v1606_v59  ;;  %v1631_v44 = vmul.f32 %v8352_v39, %v1607_v60  ;;  %v1633_v45 = vmul.f32 %v8352_v39, %v1609_v1  ;;  %v1684_v60 = vld [vmem:[%s10214_s4 + $0x10] sm:$0xff]  ;;  %v1685_v0 = vld [vmem:[%s10214_s4 + $0x18] sm:$0xff]  ;;  %v1690_v1 = vld [vmem:[%s10214_s4 + $0x40] sm:$0xff] }
 0x84f   :  { %v1656_v46 = vmul.f32 %v8943_v34, %v1632_v13  ;;  %v1654_v47 = vmul.f32 %v8935_v32, %v1630_v11  ;;  %v1655_v48 = vmul.f32 %v8933_v52, %v1631_v44  ;;  %v1657_v21 = vmul.f32 %v8941_v51, %v1633_v45  ;;  %v1697_v13 = vld [vmem:[%s10164_s9 + $0x18] sm:$0xff]  ;;  %v1703_v11 = vld [vmem:[%s10164_s9 + $0x48] sm:$0xff] }
 0x851   :  { %v9017_v31 = vadd.f32 %v8939_v40, %v1654_v47  ;;  %v9020_v19 = vadd.f32 %v8937_v33, %v1655_v48  ;;  %v9023_v54 = vadd.f32 %v8947_v50, %v1656_v46  ;;  %v9026_v56 = vadd.f32 %v8945_v35, %v1657_v21  ;;  %v1683_v50 = vld [vmem:[%s10214_s4 + $0x8] sm:$0xff]  ;;  %v1696_v46 = vld [vmem:[%s10164_s9 + $0x10] sm:$0xff]  ;;  %v1702_v21 = vld [vmem:[%s10164_s9 + $0x40] sm:$0xff] }
 0x852   :  { %v9038_v35 = vpack.c.bf16 %v8951_v38, %v8949_v37  ;;  %v1688_v37 = vld [vmem:[%s10214_s4 + $0x30] sm:$0xff]  ;;  %v1689_v38 = vld [vmem:[%s10214_s4 + $0x38] sm:$0xff] }
 0x853   :  { %v1706_v34 = vadd.f32 %v9017_v31, %v8645_v10  ;;  %v1707_v52 = vadd.f32 %v9020_v19, %v8649_v12  ;;  %v1708_v32 = vadd.f32 %v9023_v54, %v8659_v18  ;;  %v1709_v40 = vadd.f32 %v9026_v56, %v8663_v20  ;;  %7723 = vmatprep.mubr.msk.f32.mxu0 %vm333_vm0, %v1688_v37 }
 0x854   :  { %7724 = vmatmul.mubr.msk.f32.gmra.mrb[20].mxu0 %vm333_vm0, %v1689_v38 }
 0x855   :  { %v8126_v33 = vpack.c.bf16 %v1707_v52, %v1706_v34  ;;  %v8130_v51 = vpack.c.bf16 %v1709_v40, %v1708_v32 }
 0x857   :  { %8127 = vmatprep.subr.bf16.mxu1 %v8126_v33 }
 0x858   :  { %8129 = vmatpush3.bf16.msra.mxu1 %v8126_v33 }
 0x859   :  { %8131 = vmatprep.subr.bf16.mxu1 %v8130_v51 }
 0x85c   :  { %8133 = vmatpush3.bf16.msra.mxu1 %v8130_v51 }
 0x85d   :  { %8143 = vmatprep.subr.bf16.mxu1 %v9038_v35 }
 0x85f   :  { %7707 = vmatmul.mubr.msk.f32.vlgmr.msra.gmra.mrb[14].mxu1 %vm333_vm0, %v1683_v50 }
 0x860   :  { %8145 = vmatpush3.bf16.msra.mxu1 %v9038_v35  ;;  %7709 = vmatprep.mubr.msk.f32.mxu1 %vm333_vm0, %v1684_v60 }
 0x861   :  { %8147 = vmatprep.subr.bf16.mxu1 %v9045_v57 }
 0x863   :  { %7710 = vmatmul.mubr.msk.f32.gmra.mrb[16].mxu1 %vm333_vm0, %v1685_v0 }
 0x864   :  { %8149 = vmatpush3.bf16.msra.mxu1 %v9045_v57  ;;  %7734 = vmatprep.mubr.msk.f32.mxu1 %vm333_vm0, %v1690_v1 }
 0x865   :  { %8150 = vmatprep.subr.bf16.mxu1 %v8486_v62 }
 0x932   :  { %v7708_v42 = vpop.f32.mrb[14].mxu1 }
 0x933   :  { %v1814_v53 = vadd.f32 %v7708_v42, %v8993_v15  ;;  %v1808_v58 = vpop.f32.mrb[15].mxu1  ;;  %v1691_v15 = vld [vmem:[%s10214_s4 + $0x48] sm:$0xff] }
 0x934   :  { %v1809_v59 = vadd.f32 %v1808_v58, %v8997_v23  ;;  %7735 = vmatmul.mubr.msk.f32.vlgmr.msra.gmra.mrb[18].mxu1 %vm333_vm0, %v1691_v15  ;;  %v9079_v23 = vpop.f32.mrb[20].mxu0 }
 0x935   :  { %2287 = vxpose.xlu0.b32.start.end [1/1] (short) (narrow) %v1814_v53, 16  ;;  %v9081_v2 = vpop.f32.mrb[21].mxu0 }
 0x936   :  { %2069 = vxpose.xlu1.b32.start.end [1/1] (short) (narrow) %v1809_v59, 16  ;;  %v7711_v44 = vpop.f32.mrb[16].mxu1 }
 0x937   :  { %v1818_v45 = vpop.f32.mrb[17].mxu1 }
 0x9b5   :  { %v2303_v5 = vpop.trf.xlu0 }
 0x9b6   :  { %v2085_v4 = vpop.trf.xlu1 }
 0x9b7   :  { %7742 = vmatprep.mubr.msk.f32.mxu0 %vm620_vm1, %v2085_v4 }
 0x9b9   :  { %v2304_v8 = vpop.trf.xlu0 }
 0x9ba   :  { %v2086_v7 = vpop.trf.xlu1 }
 0x9bb   :  { %7743 = vmatmul.mubr.msk.f32.vlgmr.msra.gmra.mrb[22].mxu0 %vm620_vm1, %v2086_v7 }
 0x9bc   :  { %7753 = vmatpush3.msra.mxu0 %v9005_v30  ;;  %7754 = vmatprep.mubr.msk.f32.mxu0 %vm620_vm1, %v2303_v5 }
 0x9bd   :  { %8154 = vmatprep.subr.bf16.mxu0 %v8486_v62 }
 0x9bf   :  { %7755 = vmatmul.mubr.msk.f32.vlgmr.msra.gmra.mrb[24].mxu0 %vm620_vm1, %v2304_v8  ;;  %v1700_v8 = vld [vmem:[%s10164_s9 + $0x30] sm:$0xff] }
 0x9c0   :  { %7761 = vmatprep.mubr.msk.f32.mxu0 %vm8487_vm5, %v8488_v63 }
 0xa07   :  { %v9112_v47 = vpop.f32.mrb[18].mxu1 }
 0xa08   :  { %v9114_v48 = vpop.f32.mrb[19].mxu1 }
 0xa8e   :  { %v7744_v9 = vpop.f32.mrb[22].mxu0 }
 0xa8f   :  { %v2183_v14 = vmul.f32 0.35355338, %v7744_v9  ;;  %v2173_v22 = vpop.f32.mrb[23].mxu0  ;;  %v1701_v9 = vld [vmem:[%s10164_s9 + $0x38] sm:$0xff] }
 0xa90   :  { %v2182_v25 = vmul.f32 0.35355338, %v2173_v22  ;;  %v1693_v22 = vld [vmem:[%s10214_s4 + $0x58] sm:$0xff] }
 0xa91   :  { %v2185_v41 = vsel %vm8733_vm2, %v2183_v14, -1e+30  ;;  %v1692_v14 = vld [vmem:[%s10214_s4 + $0x50] sm:$0xff] }
 0xa92   :  { %v7756_v24 = vpop.f32.mrb[24].mxu0  ;;  %v2189_v30 = vsel %vm333_vm0, %v2185_v41, -inf  ;;  %v2184_v26 = vsel %vm8737_vm4, %v2182_v25, -1e+30  ;;  %7737 = vmatprep.mubr.msk.f32.mxu1 %vm333_vm0, %v1692_v14 }
 0xa93   :  { %v2401_v17 = vmul.f32 0.35355338, %v7756_v24  ;;  %2190 = vmax.xlane.f32.xlu1 %v2189_v30  ;;  %v2391_v16 = vpop.f32.mrb[25].mxu0  ;;  %v2186_v27 = vsel %vm333_vm0, %v2184_v26, -inf  ;;  %7738 = vmatmul.mubr.msk.f32.gmra.mrb[20].mxu1 %vm333_vm0, %v1693_v22 }
 0xa94   :  { %v2400_v36 = vmul.f32 0.35355338, %v2391_v16  ;;  %2187 = vmax.xlane.f32.xlu0 %v2186_v27  ;;  %7749 = vmatprep.mubr.msk.f32.mxu1 %vm8487_vm5, %v8488_v63 }
 0xa95   :  { %v2403_v28 = vsel %vm8733_vm2, %v2401_v17, -1e+30 }
 0xa96   :  { %v2407_v29 = vsel %vm333_vm0, %v2403_v28, -inf  ;;  %v2402_v49 = vsel %vm8737_vm4, %v2400_v36, -1e+30 }
 0xa97   :  { %2408 = vmax.xlane.f32.xlu1 %v2407_v29  ;;  %v2404_v39 = vsel %vm333_vm0, %v2402_v49, -inf }
 0xa98   :  { %2405 = vmax.xlane.f32.xlu0 %v2404_v39 }
 0xaa8   :  { %1727 = vperm.xlu1 %8318, %v1697_v13  }
 0xaac   :  { %1951 = vperm.xlu1 %8318, %v1703_v11  }
 0xaae   :  { %1722 = vperm.xlu0 %8317, %v1696_v46  }
 0xab2   :  { %1946 = vperm.xlu0 %8317, %v1702_v21  }
 0xb20   :  { %v2191_v34 = vpop.xlane.xlu1 %2190 }
 0xb21   :  { %v2193_v52 = vsub.f32 %v2185_v41, %v2191_v34  ;;  %v2188_v32 = vpop.xlane.xlu0 %2187 }
 0xb22   :  { %v2192_v40 = vsub.f32 %v2184_v26, %v2188_v32 }
 0xb23   :  { %v2196_v33 = vmul.f32 1.442695, %v2193_v52 }
 0xb24   :  { %v2194_v51 = vmul.f32 1.442695, %v2192_v40  ;;  %v2409_v50 = vpop.xlane.xlu1 %2408 }
 0xb25   :  { %8353 = vpow2.f32 %v2196_v33  ;;  %v2411_v37 = vsub.f32 %v2403_v28, %v2409_v50  ;;  %v2406_v38 = vpop.xlane.xlu0 %2405 }
 0xb26   :  { %8355 = vpow2.f32 %v2194_v51  ;;  %v2410_v42 = vsub.f32 %v2402_v49, %v2406_v38 }
 0xb27   :  { %v2414_v53 = vmul.f32 1.442695, %v2411_v37 }
 0xb28   :  { %v2412_v58 = vmul.f32 1.442695, %v2410_v42  ;;  %v1728_v25 = vpop.permute.xlu1 %1727 }
 0xb29   :  { %8357 = vpow2.f32 %v2414_v53  ;;  %v1824_v41 = vadd.f32 %v7711_v44, %v1728_v25 }
 0xb2a   :  { %8359 = vpow2.f32 %v2412_v58 }
 0xb2c   :  { %v1952_v17 = vpop.permute.xlu1 %1951 }
 0xb2d   :  { %v1723_v24 = vpop.permute.xlu0 %1722 }
 0xb2e   :  { %v1819_v30 = vadd.f32 %v1818_v45, %v1723_v24 }
 0xb2f   :  { %v8354_v59 = vpop.eup %8353 }
 0xb30   :  { %v8356_v60 = vpop.eup %8355  ;;  %v2201_v0 = vsel %vm333_vm0, %v8354_v59, 0.0 }
 0xb31   :  { %2202 = vadd.xlane.f32.xlu0 %v2201_v0  ;;  %v2198_v1 = vsel %vm333_vm0, %v8356_v60, 0.0  ;;  %v1947_v26 = vpop.permute.xlu0 %1946 }
 0xb32   :  { %2199 = vadd.xlane.f32.xlu1 %v2198_v1  ;;  %v2043_v50 = vadd.f32 %v9114_v48, %v1947_v26 }
 0xb33   :  { %v8358_v15 = vpop.eup %8357 }
 0xb34   :  { %v8360_v4 = vpop.eup %8359  ;;  %v2419_v5 = vsel %vm333_vm0, %v8358_v15, 0.0 }
 0xb35   :  { %v2416_v7 = vsel %vm333_vm0, %v8360_v4, 0.0 }
 0xb36   :  { %2420 = vadd.xlane.f32.xlu1 %v2419_v5  ;;  %2417 = vadd.xlane.f32.xlu0 %v2416_v7 }
 0xb47   :  { %1839 = vperm.xlu1 %8318, %v1700_v8  }
 0xb4c   :  { %1844 = vperm.xlu0 %8317, %v1701_v9  }
 0xb6a   :  { %2723 = vxpose.xlu0.b32.start.end [1/1] (short) (narrow) %v1824_v41, 16 }
 0xb70   :  { %2505 = vxpose.xlu1.b32.start.end [1/1] (short) (narrow) %v1819_v30, 16 }
 0xbbe   :  { %v2203_v16 = vpop.xlane.xlu0 %2202 }
 0xbbf   :  { %8361 = vrcp.f32 %v2203_v16  ;;  %v2200_v27 = vpop.xlane.xlu1 %2199 }
 0xbc0   :  { %8363 = vrcp.f32 %v2200_v27 }
 0xbc3   :  { %v2421_v36 = vpop.xlane.xlu1 %2420  ;;  %v2418_v28 = vpop.xlane.xlu0 %2417 }
 0xbc4   :  { %8365 = vrcp.f32 %v2421_v36 }
 0xbc5   :  { %8367 = vrcp.f32 %v2418_v28 }
 0xbc7   :  { %v1840_v11 = vpop.permute.xlu1 %1839 }
 0xbc8   :  { %v1936_v21 = vadd.f32 %v9081_v2, %v1840_v11  ;;  %v2048_v2 = vadd.f32 %v9112_v47, %v1952_v17  ;;  %v9165_v47 = vpop.f32.mrb[20].mxu1 }
 0xbc9   :  { %v8362_v29 = vpop.eup %8361  ;;  %v9167_v42 = vpop.f32.mrb[21].mxu1 }
 0xbca   :  { %v8364_v49 = vpop.eup %8363  ;;  %v2207_v39 = vmul.f32 %v8362_v29, %v8354_v59 }
 0xbcb   :  { %v2206_v13 = vmul.f32 %v8364_v49, %v8356_v60  ;;  %v1845_v40 = vpop.permute.xlu0 %1844 }
 0xbcc   :  { %v1941_v51 = vadd.f32 %v9079_v23, %v1845_v40 }
 0xbcd   :  { %v8151_v45 = vpack.c.bf16 %v2207_v39, %v2206_v13 }
 0xbce   :  { %v8366_v46 = vpop.eup %8365 }
 0xbcf   :  { %v8368_v34 = vpop.eup %8367  ;;  %v2425_v52 = vmul.f32 %v8366_v46, %v8358_v15  ;;  %8153 = vmatpush3.bf16.xpose.msk.msra.mxu1 %vm9141_vm7, %v8151_v45 }
 0xbd0   :  { %v2424_v32 = vmul.f32 %v8368_v34, %v8360_v4  ;;  %7764 = vmatprep.subr.mxu1 %v1936_v21 }
 0xbd2   :  { %v8155_v33 = vpack.c.bf16 %v2425_v52, %v2424_v32 }
 0xbd4   :  { %8157 = vmatpush3.bf16.xpose.msk.msra.mxu0 %vm9141_vm7, %v8155_v33 }
 0xbd5   :  { %7776 = vmatprep.subr.mxu0 %v1941_v51 }
 0xbd6   :  { %7750 = vmatmul.mubr.msk.f32.vlgmr.msra.gmra.mrb[22].mxu1 %vm333_vm0, %v2043_v50 }
 0xbd7   :  { %7765 = vmatpush3.msra.mxu1 %v1936_v21 }
 0xbd8   :  { %8158 = vmatprep.subr.bf16.mxu1 %v8486_v62 }
 0xbdb   :  { %7762 = vmatmul.mubr.msk.f32.vlgmr.msra.gmra.mrb[26].mxu0 %vm333_vm0, %v2048_v2 }
 0xbdc   :  { %7777 = vmatpush3.msra.mxu0 %v1941_v51 }
 0xbdd   :  { %8162 = vmatprep.subr.bf16.mxu0 %v8486_v62 }
 0xbea   :  { %v2739_v37 = vpop.trf.xlu0 }
 0xbeb   :  { %7778 = vmatprep.mubr.msk.f32.mxu0 %vm620_vm1, %v2739_v37 }
 0xbee   :  { %v2740_v23 = vpop.trf.xlu0 }
 0xbef   :  { %7779 = vmatmul.mubr.msk.f32.vlgmr.msra.gmra.mrb[28].mxu0 %vm620_vm1, %v2740_v23  ;;  %v1705_v23 = vld [vmem:[%s10164_s9 + $0x58] sm:$0xff] }
 0xbf0   :  { %v2521_v48 = vpop.trf.xlu1  ;;  %7785 = vmatprep.mubr.msk.f32.mxu0 %vm8487_vm5, %v8488_v63 }
 0xbf1   :  { %7766 = vmatprep.mubr.msk.f32.mxu1 %vm620_vm1, %v2521_v48  ;;  %v2065_v48 = vld [vmem:[%s10166_s11] sm:$0xff] }
 0xbf4   :  { %v2522_v38 = vpop.trf.xlu1 }
 0xbf5   :  { %7767 = vmatmul.mubr.msk.f32.vlgmr.msra.gmra.mrb[24].mxu1 %vm620_vm1, %v2522_v38  ;;  %v1704_v38 = vld [vmem:[%s10164_s9 + $0x50] sm:$0xff] }
 0xbf6   :  { %7773 = vmatprep.mubr.msk.f32.mxu1 %vm8487_vm5, %v8488_v63 }
 0xca9   :  { %v2283_v53 = vpop.f32.mrb[22].mxu1 }
 0xcaa   :  { %v7751_v58 = vpop.f32.mrb[23].mxu1 }
 0xcab   :  { %v2066_v58 = vld [vmem:[%s10166_s11 + $0x8] sm:$0xff] }
 0xcae   :  { %v2501_v59 = vpop.f32.mrb[26].mxu0 }
 0xcaf   :  { %v9169_v60 = vpack.c.bf16 %v2501_v59, %v2283_v53  ;;  %v7763_v0 = vpop.f32.mrb[27].mxu0  ;;  %v2067_v53 = vld [vmem:[%s10166_s11 + $0x10] sm:$0xff]  ;;  %v3062_v59 = vld [vmem:[%s10173_s18] sm:$0xff] }
 0xcb0   :  { %v2068_v0 = vld [vmem:[%s10166_s11 + $0x18] sm:$0xff] }
 0xcc2   :  { %v7780_v1 = vpop.f32.mrb[28].mxu0 }
 0xcc3   :  { %v2827_v15 = vpop.f32.mrb[29].mxu0  ;;  %v2837_v4 = vmul.f32 0.35355338, %v7780_v1  ;;  %v3066_v1 = vld [vmem:[%s10174_s19] sm:$0xff] }
 0xcc4   :  { %v2836_v7 = vmul.f32 0.35355338, %v2827_v15  ;;  %v3063_v15 = vld [vmem:[%s10173_s18 + $0x8] sm:$0xff] }
 0xcc5   :  { %v2839_v25 = vsel %vm8733_vm2, %v2837_v4, -1e+30  ;;  %v3064_v4 = vld [vmem:[%s10173_s18 + $0x10] sm:$0xff] }
 0xcc6   :  { %v2838_v30 = vsel %vm8737_vm4, %v2836_v7, -1e+30  ;;  %v2843_v17 = vsel %vm333_vm0, %v2839_v25, -inf  ;;  %v3068_v7 = vld [vmem:[%s10174_s19 + $0x10] sm:$0xff] }
 0xcc7   :  { %v2840_v16 = vsel %vm333_vm0, %v2838_v30, -inf }
 0xcc8   :  { %v7768_v5 = vpop.f32.mrb[24].mxu1 }
 0xcc9   :  { %v2619_v8 = vmul.f32 0.35355338, %v7768_v5  ;;  %v2609_v9 = vpop.f32.mrb[25].mxu1  ;;  %v3067_v5 = vld [vmem:[%s10174_s19 + $0x8] sm:$0xff] }
 0xcca   :  { %v2618_v14 = vmul.f32 0.35355338, %v2609_v9  ;;  %v3168_v9 = vld [vmem:[%s10168_s13] sm:$0xff] }
 0xccb   :  { %v2621_v22 = vsel %vm8733_vm2, %v2619_v8, -1e+30  ;;  %v3065_v8 = vld [vmem:[%s10173_s18 + $0x18] sm:$0xff] }
 0xccc   :  { %v2625_v41 = vsel %vm333_vm0, %v2621_v22, -inf  ;;  %v2620_v24 = vsel %vm8737_vm4, %v2618_v14, -1e+30  ;;  %v3069_v14 = vld [vmem:[%s10174_s19 + $0x18] sm:$0xff] }
 0xccd   :  { %2626 = vmax.xlane.f32.xlu1 %v2625_v41  ;;  %v2622_v26 = vsel %vm333_vm0, %v2620_v24, -inf  ;;  %v3172_v41 = vld [vmem:[%s10168_s13 + $0x20] sm:$0xff] }
 0xcce   :  { %2623 = vmax.xlane.f32.xlu0 %v2622_v26  ;;  %v3173_v26 = vld [vmem:[%s10168_s13 + $0x28] sm:$0xff] }
 0xcd1   :  { %2844 = vmax.xlane.f32.xlu1 %v2843_v17  ;;  %v3357_v17 = vld [vmem:[%s10170_s15] sm:$0xff] }
 0xcd2   :  { %2841 = vmax.xlane.f32.xlu0 %v2840_v16  ;;  %v3175_v16 = vld [vmem:[%s10168_s13 + $0x38] sm:$0xff] }
 0xd5a   :  { %v2627_v27 = vpop.xlane.xlu1 %2626 }
 0xd5b   :  { %v2629_v36 = vsub.f32 %v2621_v22, %v2627_v27  ;;  %v2624_v28 = vpop.xlane.xlu0 %2623  ;;  %v3170_v22 = vld [vmem:[%s10168_s13 + $0x10] sm:$0xff] }
 0xd5c   :  { %v2628_v29 = vsub.f32 %v2620_v24, %v2624_v28  ;;  %v3171_v24 = vld [vmem:[%s10168_s13 + $0x18] sm:$0xff]  ;;  %v3359_v27 = vld [vmem:[%s10170_s15 + $0x10] sm:$0xff]  ;;  %v3483_v28 = vld [vmem:[%s10175_s20] sm:$0xff] }
 0xd5d   :  { %v2632_v49 = vmul.f32 1.442695, %v2629_v36  ;;  %v3358_v36 = vld [vmem:[%s10170_s15 + $0x8] sm:$0xff] }
 0xd5e   :  { %v2630_v39 = vmul.f32 1.442695, %v2628_v29  ;;  %v2845_v13 = vpop.xlane.xlu1 %2844  ;;  %v3360_v29 = vld [vmem:[%s10170_s15 + $0x18] sm:$0xff] }
 0xd5f   :  { %8369 = vpow2.f32 %v2632_v49  ;;  %v2847_v11 = vsub.f32 %v2839_v25, %v2845_v13  ;;  %v2842_v45 = vpop.xlane.xlu0 %2841  ;;  %v3169_v25 = vld [vmem:[%s10168_s13 + $0x8] sm:$0xff]  ;;  %v3487_v49 = vld [vmem:[%s10176_s21] sm:$0xff]  ;;  %v3485_v13 = vld [vmem:[%s10175_s20 + $0x10] sm:$0xff] }
 0xd60   :  { %8371 = vpow2.f32 %v2630_v39  ;;  %v2846_v46 = vsub.f32 %v2838_v30, %v2842_v45  ;;  %v3174_v30 = vld [vmem:[%s10168_s13 + $0x30] sm:$0xff]  ;;  %v3484_v39 = vld [vmem:[%s10175_s20 + $0x8] sm:$0xff] }
 0xd61   :  { %v2850_v21 = vmul.f32 1.442695, %v2847_v11  ;;  %v3488_v11 = vld [vmem:[%s10176_s21 + $0x8] sm:$0xff]  ;;  %v3489_v45 = vld [vmem:[%s10176_s21 + $0x10] sm:$0xff] }
 0xd62   :  { %v2848_v34 = vmul.f32 1.442695, %v2846_v46  ;;  %v3486_v46 = vld [vmem:[%s10175_s20 + $0x18] sm:$0xff] }
 0xd63   :  { %8373 = vpow2.f32 %v2850_v21  ;;  %v7154_v21 = vld [vmem:[%s10203_s1 + $0x60] sm:$0xff] }
 0xd64   :  { %8375 = vpow2.f32 %v2848_v34  ;;  %v3490_v34 = vld [vmem:[%s10176_s21 + $0x18] sm:$0xff] }
 0xd69   :  { %v9183_v52 = vpop.eup %8369 }
 0xd6a   :  { %v9185_v32 = vpop.eup %8371  ;;  %v2637_v40 = vsel %vm333_vm0, %v9183_v52, 0.0 }
 0xd6b   :  { %2638 = vadd.xlane.f32.xlu1 %v2637_v40  ;;  %v2634_v33 = vsel %vm333_vm0, %v9185_v32, 0.0  ;;  %v7158_v40 = vld [vmem:[%s10203_s1 + $0x80] sm:$0xff] }
 0xd6c   :  { %2635 = vadd.xlane.f32.xlu0 %v2634_v33  ;;  %v7155_v33 = vld [vmem:[%s10203_s1 + $0x68] sm:$0xff] }
 0xd6d   :  { %v9191_v51 = vpop.eup %8373 }
 0xd6e   :  { %v9193_v50 = vpop.eup %8375  ;;  %v2855_v2 = vsel %vm333_vm0, %v9191_v51, 0.0 }
 0xd6f   :  { %2856 = vadd.xlane.f32.xlu1 %v2855_v2  ;;  %v2852_v37 = vsel %vm333_vm0, %v9193_v50, 0.0  ;;  %v7159_v2 = vld [vmem:[%s10203_s1 + $0x88] sm:$0xff] }
 0xd70   :  { %2853 = vadd.xlane.f32.xlu0 %v2852_v37 }
 0xd80   :  { %1961 = vperm.xlu1 %8318, %v1705_v23  }
 0xd84   :  { %2943 = vperm.xlu1 %8318, %v2065_v48  }
 0xd86   :  { %1956 = vperm.xlu0 %8317, %v1704_v38  }
 0xd88   :  { %2953 = vperm.xlu1 %8318, %v2067_v53  }
 0xd8a   :  { %2948 = vperm.xlu0 %8317, %v2066_v58  }
 0xd8c   :  { %3114 = vperm.xlu1 %8318, %v3062_v59  }
 0xd8e   :  { %2958 = vperm.xlu0 %8317, %v2068_v0  }
 0xd90   :  { %3138 = vperm.xlu1 %8318, %v3066_v1  }
 0xd92   :  { %3119 = vperm.xlu0 %8317, %v3063_v15  }
 0xd94   :  { %3124 = vperm.xlu1 %8318, %v3064_v4  }
 0xd96   :  { %3143 = vperm.xlu0 %8317, %v3067_v5  }
 0xd98   :  { %3148 = vperm.xlu1 %8318, %v3068_v7  }
 0xd9a   :  { %3129 = vperm.xlu0 %8317, %v3065_v8  }
 0xd9c   :  { %3178 = vperm.xlu1 %8318, %v3168_v9  }
 0xd9e   :  { %3153 = vperm.xlu0 %8317, %v3069_v14  }
 0xda0   :  { %3188 = vperm.xlu1 %8318, %v3170_v22  }
 0xda2   :  { %3183 = vperm.xlu0 %8317, %v3169_v25  }
 0xda4   :  { %3198 = vperm.xlu1 %8318, %v3172_v41  }
 0xda6   :  { %3193 = vperm.xlu0 %8317, %v3171_v24   ;;  %v2064_v24 = vld [vmem:[%s10165_s10 + $0x18] sm:$0xff] }
 0xda8   :  { %3208 = vperm.xlu1 %8318, %v3174_v30   ;;  %v3160_v30 = vld [vmem:[%s10167_s12] sm:$0xff] }
 0xdaa   :  { %3203 = vperm.xlu0 %8317, %v3173_v26  }
 0xdac   :  { %3363 = vperm.xlu1 %8318, %v3357_v17  }
 0xdae   :  { %3213 = vperm.xlu0 %8317, %v3175_v16  }
 0xdb0   :  { %3373 = vperm.xlu1 %8318, %v3359_v27  }
 0xdb2   :  { %3368 = vperm.xlu0 %8317, %v3358_v36  }
 0xdb4   :  { %3535 = vperm.xlu1 %8318, %v3483_v28  }
 0xdb6   :  { %3378 = vperm.xlu0 %8317, %v3360_v29  }
 0xdb8   :  { %3559 = vperm.xlu1 %8318, %v3487_v49  }
 0xdba   :  { %3540 = vperm.xlu0 %8317, %v3484_v39  }
 0xdbc   :  { %3545 = vperm.xlu1 %8318, %v3485_v13  }
 0xdbe   :  { %3564 = vperm.xlu0 %8317, %v3488_v11  }
 0xdc0   :  { %3569 = vperm.xlu1 %8318, %v3489_v45  }
 0xdc2   :  { %3550 = vperm.xlu0 %8317, %v3486_v46  }
 0xdc4   :  { %3613 = vperm.xlu1 %8318, %v7154_v21  }
 0xdc6   :  { %3574 = vperm.xlu0 %8317, %v3490_v34  }
 0xdc8   :  { %3633 = vperm.xlu1 %8318, %v7158_v40  }
 0xdca   :  { %3618 = vperm.xlu0 %8317, %v7155_v33  }
 0xdce   :  { %3638 = vperm.xlu0 %8317, %v7159_v2  }
 0xdf8   :  { %v2639_v37 = vpop.xlane.xlu1 %2638 }
 0xdf9   :  { %8377 = vrcp.f32 %v2639_v37  ;;  %v2636_v23 = vpop.xlane.xlu0 %2635 }
 0xdfa   :  { %8379 = vrcp.f32 %v2636_v23 }
 0xdfc   :  { %v2857_v48 = vpop.xlane.xlu1 %2856 }
 0xdfd   :  { %8381 = vrcp.f32 %v2857_v48  ;;  %v2854_v38 = vpop.xlane.xlu0 %2853 }
 0xdfe   :  { %8383 = vrcp.f32 %v2854_v38 }
 0xe03   :  { %v8378_v53 = vpop.eup %8377 }
 0xe04   :  { %v8380_v58 = vpop.eup %8379  ;;  %v2643_v59 = vmul.f32 %v8378_v53, %v9183_v52 }
 0xe05   :  { %v2642_v0 = vmul.f32 %v8380_v58, %v9185_v32  ;;  %v1957_v8 = vpop.permute.xlu0 %1956  ;;  %v1962_v32 = vpop.permute.xlu1 %1961 }
 0xe06   :  { %v2053_v52 = vadd.f32 %v9167_v42, %v1957_v8 }
 0xe07   :  { %v8382_v1 = vpop.eup %8381  ;;  %v8159_v15 = vpack.c.bf16 %v2643_v59, %v2642_v0 }
 0xe08   :  { %v8384_v4 = vpop.eup %8383  ;;  %v2861_v5 = vmul.f32 %v8382_v1, %v9191_v51  ;;  %v2058_v51 = vadd.f32 %v9165_v47, %v1962_v32  ;;  %v2063_v47 = vld [vmem:[%s10165_s10 + $0x10] sm:$0xff] }
 0xe09   :  { %v2860_v7 = vmul.f32 %v8384_v4, %v9193_v50  ;;  %8161 = vmatpush3.bf16.xpose.msk.msra.mxu1 %vm9141_vm7, %v8159_v15  ;;  %v2061_v50 = vld [vmem:[%s10165_s10] sm:$0xff]  ;;  %v2949_v26 = vpop.permute.xlu0 %2948  ;;  %v2944_v17 = vpop.permute.xlu1 %2943 }
 0xe0a   :  { %8167 = vmatprep.subr.bf16.mxu1 %v9169_v60 }
 0xe0b   :  { %v8163_v9 = vpack.c.bf16 %v2861_v5, %v2860_v7 }
 0xe0d   :  { %8165 = vmatpush3.bf16.xpose.msk.msra.mxu0 %vm9141_vm7, %v8163_v9  ;;  %v2959_v49 = vpop.permute.xlu0 %2958  ;;  %v2954_v11 = vpop.permute.xlu1 %2953 }
 0xe10   :  { %7774 = vmatmul.mubr.msk.f32.vlgmr.msra.gmra.mrb[26].mxu1 %vm333_vm0, %v2053_v52 }
 0xe11   :  { %8169 = vmatpush3.bf16.msra.mxu1 %v9169_v60  ;;  %7796 = vmatprep.mubr.msk.f32.mxu1 %vm333_vm0, %v2061_v50  ;;  %v2062_v60 = vld [vmem:[%s10165_s10 + $0x8] sm:$0xff] }
 0xe14   :  { %7786 = vmatmul.mubr.msk.f32.vlgmr.msra.gmra.mrb[30].mxu0 %vm333_vm0, %v2058_v51 }
 0xe15   :  { %7810 = vmatprep.mubr.msk.f32.mxu0 %vm333_vm0, %v3160_v30 }
 0xee3   :  { %v2719_v14 = vpop.f32.mrb[26].mxu1 }
 0xee4   :  { %v7775_v22 = vpop.f32.mrb[27].mxu1 }
 0xee7   :  { %v2937_v25 = vpop.f32.mrb[30].mxu0 }
 0xee8   :  { %v8170_v41 = vpack.c.bf16 %v2937_v25, %v2719_v14  ;;  %v7787_v42 = vpop.f32.mrb[31].mxu0 }
 0xeea   :  { %8171 = vmatprep.subr.bf16.mxu1 %v8170_v41 }
 0xeeb   :  { %8173 = vmatpush3.bf16.msra.mxu1 %v8170_v41 }
 0xeee   :  { %7797 = vmatmul.mubr.msk.f32.vlgmr.msra.gmra.mrb[28].mxu1 %vm333_vm0, %v2062_v60 }
 0xeef   :  { %7799 = vmatprep.mubr.msk.f32.mxu1 %vm333_vm0, %v2063_v47 }
 0xef2   :  { %7800 = vmatmul.mubr.msk.f32.gmra.mrb[30].mxu1 %vm333_vm0, %v2064_v24 }
 0xfc1   :  { %v7798_v16 = vpop.f32.mrb[28].mxu1 }
 0xfc2   :  { %v3045_v27 = vadd.f32 %v7798_v16, %v2949_v26  ;;  %v3039_v36 = vpop.f32.mrb[29].mxu1  ;;  %v3120_v16 = vpop.permute.xlu0 %3119 }
 0xfc3   :  { %v3040_v28 = vadd.f32 %v3039_v36, %v2944_v17  ;;  %v3115_v17 = vpop.permute.xlu1 %3114 }
 0xfc4   :  { %v3059_v29 = vadd.f32 %v3045_v27, %v9020_v19 }
 0xfc5   :  { %v3058_v39 = vadd.f32 %v3040_v28, %v9017_v31  ;;  %v7801_v13 = vpop.f32.mrb[30].mxu1 }
 0xfc6   :  { %v3071_v45 = vsel %vm706_vm3, %v3059_v29, 0.0  ;;  %v3055_v46 = vadd.f32 %v7801_v13, %v2959_v49  ;;  %v3049_v21 = vpop.f32.mrb[31].mxu1 }
 0xfc7   :  { %v3070_v34 = vsel %vm706_vm3, %v3058_v39, 0.0  ;;  %v3050_v40 = vadd.f32 %v3049_v21, %v2954_v11  ;;  %v3139_v28 = vpop.permute.xlu1 %3138 }
 0xfc8   :  { %v3072_v33 = vadd.f32 %v3071_v45, %v3070_v34  ;;  %v3061_v2 = vadd.f32 %v3055_v46, %v9026_v56 }
 0xfc9   :  { %v3060_v37 = vadd.f32 %v3050_v40, %v9023_v54 }
 0xfca   :  { %v3075_v48 = vsel %vm706_vm3, %v3061_v2, 0.0 }
 0xfcb   :  { %v3073_v23 = vsel %vm706_vm3, %v3060_v37, 0.0  ;;  %v3125_v49 = vpop.permute.xlu1 %3124 }
 0xfcc   :  { %v3074_v19 = vadd.f32 %v3073_v23, %v3072_v33 }
 0xfce   :  { %v3076_v31 = vadd.f32 %v3075_v48, %v3074_v19 }
 0xfd0   :  { %v3077_v38 = vrot.slane %v3076_v31, 4 }
 0xfd2   :  { %v3078_v53 = vadd.f32 %v3077_v38, %v3076_v31 }
 0xfd4   :  { %v3079_v58 = vrot.slane %v3078_v53, 2 }
 0xfd6   :  { %v3080_v59 = vadd.f32 %v3079_v58, %v3078_v53 }
 0xfd8   :  { %v3081_v0 = vrot.slane %v3080_v59, 1 }
 0xfda   :  { %v3082_v1 = vadd.f32 %v3081_v0, %v3080_v59  ;;  %v3161_v59 = vld [vmem:[%s10167_s12 + $0x8] sm:$0xff]  ;;  %v3162_v0 = vld [vmem:[%s10167_s12 + $0x10] sm:$0xff] }
 0xfdc   :  { %v3083_v15 = vmul.f32 0.03125, %v3082_v1  ;;  %v3163_v1 = vld [vmem:[%s10167_s12 + $0x18] sm:$0xff] }
 0xfde   :  { %v3084_v4 = vsub.f32 %v3058_v39, %v3083_v15  ;;  %v3085_v5 = vsub.f32 %v3059_v29, %v3083_v15  ;;  %v3086_v7 = vsub.f32 %v3060_v37, %v3083_v15  ;;  %v3087_v8 = vsub.f32 %v3061_v2, %v3083_v15  ;;  %v3144_v29 = vpop.permute.xlu0 %3143  ;;  %v3149_v37 = vpop.permute.xlu1 %3148  ;;  %v3164_v15 = vld [vmem:[%s10167_s12 + $0x20] sm:$0xff] }
 0xfe0   :  { %v3088_v56 = vmul.f32 %v3084_v4, %v3084_v4  ;;  %v3089_v9 = vmul.f32 %v3085_v5, %v3085_v5  ;;  %v3090_v54 = vmul.f32 %v3086_v7, %v3086_v7  ;;  %v3091_v52 = vmul.f32 %v3087_v8, %v3087_v8 }
 0xfe2   :  { %v3092_v32 = vsel %vm706_vm3, %v3088_v56, 0.0  ;;  %v3093_v51 = vsel %vm706_vm3, %v3089_v9, 0.0  ;;  %v3095_v14 = vsel %vm706_vm3, %v3090_v54, 0.0  ;;  %v3097_v25 = vsel %vm706_vm3, %v3091_v52, 0.0  ;;  %v3130_v39 = vpop.permute.xlu0 %3129  ;;  %v3179_v9 = vpop.permute.xlu1 %3178 }
 0xfe3   :  { %v3094_v50 = vadd.f32 %v3093_v51, %v3092_v32 }
 0xfe5   :  { %v3096_v22 = vadd.f32 %v3095_v14, %v3094_v50 }
 0xfe6   :  { %v3154_v23 = vpop.permute.xlu0 %3153  ;;  %v3189_v32 = vpop.permute.xlu1 %3188 }
 0xfe7   :  { %v3098_v41 = vadd.f32 %v3097_v25, %v3096_v22 }
 0xfe9   :  { %v3099_v42 = vrot.slane %v3098_v41, 4 }
 0xfea   :  { %v3184_v56 = vpop.permute.xlu0 %3183 }
 0xfeb   :  { %v3100_v60 = vadd.f32 %v3099_v42, %v3098_v41 }
 0xfed   :  { %v3101_v47 = vrot.slane %v3100_v60, 2 }
 0xfee   :  { %v3194_v54 = vpop.permute.xlu0 %3193 }
 0xfef   :  { %v3102_v24 = vadd.f32 %v3101_v47, %v3100_v60 }
 0xff1   :  { %v3103_v30 = vrot.slane %v3102_v24, 1 }
 0xff2   :  { %v3204_v47 = vpop.permute.xlu0 %3203 }
 0xff3   :  { %v3104_v26 = vadd.f32 %v3103_v30, %v3102_v24 }
 0xff5   :  { %v3105_v27 = vmul.f32 0.03125, %v3104_v26  ;;  %v3199_v26 = vpop.permute.xlu1 %3198 }
 0xff7   :  { %v3106_v36 = vadd.f32 1e-05, %v3105_v27 }
 0xff9   :  { %8385 = vrsqrt.f32 %v3106_v36 }
0x1003   :  { %v8386_v13 = vpop.eup %8385 }
0x1004   :  { %v3110_v11 = vmul.f32 %v8386_v13, %v3086_v7  ;;  %v3108_v45 = vmul.f32 %v8386_v13, %v3084_v4  ;;  %v3109_v46 = vmul.f32 %v8386_v13, %v3085_v5  ;;  %v3111_v21 = vmul.f32 %v8386_v13, %v3087_v8  ;;  %v3165_v4 = vld [vmem:[%s10167_s12 + $0x28] sm:$0xff]  ;;  %v3166_v5 = vld [vmem:[%s10167_s12 + $0x30] sm:$0xff]  ;;  %v3167_v7 = vld [vmem:[%s10167_s12 + $0x38] sm:$0xff]  ;;  %v3214_v13 = vpop.permute.xlu0 %3213 }
0x1005   :  { %v3353_v8 = vld [vmem:[%s10217_s2] sm:$0xff] }
0x1006   :  { %v3132_v34 = vmul.f32 %v3115_v17, %v3108_v45  ;;  %v3133_v40 = vmul.f32 %v3120_v16, %v3109_v46  ;;  %v3134_v33 = vmul.f32 %v3125_v49, %v3110_v11  ;;  %v3135_v2 = vmul.f32 %v3130_v39, %v3111_v21  ;;  %7838 = vmatprep.mubr.msk.f32.mxu1 %vm3381_vm8, %v3353_v8  ;;  %v3209_v46 = vpop.permute.xlu1 %3208 }
0x1008   :  { %v9359_v19 = vadd.f32 %v3139_v28, %v3132_v34  ;;  %v9361_v48 = vadd.f32 %v3144_v29, %v3133_v40  ;;  %v9363_v31 = vadd.f32 %v3149_v37, %v3134_v33  ;;  %v9365_v38 = vadd.f32 %v3154_v23, %v3135_v2 }
0x100a   :  { %v8174_v53 = vpack.c.bf16 %v9361_v48, %v9359_v19  ;;  %v8178_v58 = vpack.c.bf16 %v9365_v38, %v9363_v31 }
0x100c   :  { %8175 = vmatprep.subr.bf16.mxu0 %v8174_v53 }
0x100d   :  { %8177 = vmatpush3.bf16.msra.mxu0 %v8174_v53  ;;  %v3354_v53 = vld [vmem:[%s10217_s2 + $0x8] sm:$0xff] }
0x100e   :  { %8179 = vmatprep.subr.bf16.mxu0 %v8178_v58 }
0x1011   :  { %8181 = vmatpush3.bf16.msra.mxu0 %v8178_v58  ;;  %v3355_v58 = vld [vmem:[%s10217_s2 + $0x10] sm:$0xff] }
0x1014   :  { %7811 = vmatmul.mubr.msk.f32.vlgmr.msra.gmra.mrb[32].mxu0 %vm333_vm0, %v3161_v59  ;;  %v3356_v59 = vld [vmem:[%s10217_s2 + $0x18] sm:$0xff] }
0x1015   :  { %7813 = vmatprep.mubr.msk.f32.mxu0 %vm333_vm0, %v3162_v0  ;;  %v7142_v0 = vld [vmem:[%s10202_s25 + $0x60] sm:$0xff] }
0x1018   :  { %7814 = vmatmul.mubr.msk.f32.gmra.mrb[34].mxu0 %vm333_vm0, %v3163_v1  ;;  %v3369_v1 = vpop.permute.xlu0 %3368 }
0x1019   :  { %7816 = vmatprep.mubr.msk.f32.mxu0 %vm333_vm0, %v3164_v15  ;;  %v3364_v15 = vpop.permute.xlu1 %3363 }
0x101c   :  { %7817 = vmatmul.mubr.msk.f32.gmra.mrb[36].mxu0 %vm333_vm0, %v3165_v4 }
0x101d   :  { %7819 = vmatprep.mubr.msk.f32.mxu0 %vm333_vm0, %v3166_v5 }
0x1020   :  { %7820 = vmatmul.mubr.msk.f32.gmra.mrb[38].mxu0 %vm333_vm0, %v3167_v7 }
0x1021   :  { %7852 = vmatprep.mubr.msk.f32.mxu0 %vm333_vm0, %v7142_v0 }
0x10e7   :  { %v7812_v52 = vpop.f32.mrb[32].mxu0 }
0x10e8   :  { %v3312_v51 = vadd.f32 %v7812_v52, %v3184_v56  ;;  %v3306_v50 = vpop.f32.mrb[33].mxu0 }
0x10e9   :  { %v3307_v14 = vadd.f32 %v3306_v50, %v3179_v9  ;;  %v3379_v9 = vpop.permute.xlu0 %3378 }
0x10ea   :  { %v3346_v22 = vmax.f32 %v3312_v51, 0.0 }
0x10eb   :  { %v3345_v25 = vmax.f32 %v3307_v14, 0.0  ;;  %v7815_v41 = vpop.f32.mrb[34].mxu0 }
0x10ec   :  { %v3322_v42 = vadd.f32 %v7815_v41, %v3194_v54  ;;  %v3316_v60 = vpop.f32.mrb[35].mxu0 }
0x10ed   :  { %v8182_v24 = vpack.c.bf16 %v3346_v22, %v3345_v25  ;;  %v3317_v30 = vadd.f32 %v3316_v60, %v3189_v32  ;;  %v3374_v32 = vpop.permute.xlu1 %3373 }
0x10ee   :  { %v3348_v17 = vmax.f32 %v3322_v42, 0.0 }
0x10ef   :  { %v3347_v16 = vmax.f32 %v3317_v30, 0.0  ;;  %v7818_v27 = vpop.f32.mrb[36].mxu0  ;;  %8183 = vmatprep.subr.bf16.mxu1 %v8182_v24 }
0x10f0   :  { %v3332_v36 = vadd.f32 %v7818_v27, %v3204_v47  ;;  %v3326_v28 = vpop.f32.mrb[37].mxu0  ;;  %8185 = vmatpush3.bf16.msra.mxu1 %v8182_v24 }
0x10f1   :  { %v8186_v29 = vpack.c.bf16 %v3348_v17, %v3347_v16  ;;  %v3327_v49 = vadd.f32 %v3326_v28, %v3199_v26 }
0x10f2   :  { %v3350_v39 = vmax.f32 %v3332_v36, 0.0 }
0x10f3   :  { %v3349_v11 = vmax.f32 %v3327_v49, 0.0  ;;  %v7821_v45 = vpop.f32.mrb[38].mxu0  ;;  %8187 = vmatprep.subr.bf16.mxu1 %v8186_v29 }
0x10f4   :  { %v3342_v21 = vadd.f32 %v7821_v45, %v3214_v13  ;;  %v3336_v34 = vpop.f32.mrb[39].mxu0  ;;  %8189 = vmatpush3.bf16.msra.mxu1 %v8186_v29 }
0x10f5   :  { %v8190_v40 = vpack.c.bf16 %v3350_v39, %v3349_v11  ;;  %v3337_v33 = vadd.f32 %v3336_v34, %v3209_v46 }
0x10f6   :  { %v3352_v2 = vmax.f32 %v3342_v21, 0.0 }
0x10f7   :  { %v3351_v37 = vmax.f32 %v3337_v33, 0.0  ;;  %8191 = vmatprep.subr.bf16.mxu1 %v8190_v40 }
0x10f8   :  { %8193 = vmatpush3.bf16.msra.mxu1 %v8190_v40 }
0x10f9   :  { %v8194_v23 = vpack.c.bf16 %v3352_v2, %v3351_v37 }
0x10fb   :  { %8195 = vmatprep.subr.bf16.mxu1 %v8194_v23 }
0x10fc   :  { %8197 = vmatpush3.bf16.msra.mxu1 %v8194_v23 }
0x10ff   :  { %7839 = vmatmul.mubr.msk.f32.vlgmr.msra.gmra.mrb[32].mxu1 %vm3381_vm8, %v3354_v53 }
0x1100   :  { %7841 = vmatprep.mubr.msk.f32.mxu1 %vm3381_vm8, %v3355_v58 }
0x1103   :  { %7842 = vmatmul.mubr.msk.f32.gmra.mrb[34].mxu1 %vm3381_vm8, %v3356_v59 }
0x11d2   :  { %v7840_v4 = vpop.f32.mrb[32].mxu1 }
0x11d3   :  { %v3466_v5 = vadd.f32 %v7840_v4, %v3369_v1  ;;  %v3460_v7 = vpop.f32.mrb[33].mxu1  ;;  %v3541_v4 = vpop.permute.xlu0 %3540 }
0x11d4   :  { %v3461_v8 = vadd.f32 %v3460_v7, %v3364_v15  ;;  %v3536_v15 = vpop.permute.xlu1 %3535 }
0x11d5   :  { %v3480_v56 = vadd.f32 %v3466_v5, %v9361_v48 }
0x11d6   :  { %v3479_v54 = vadd.f32 %v3461_v8, %v9359_v19  ;;  %v7843_v52 = vpop.f32.mrb[34].mxu1 }
0x11d7   :  { %v3492_v51 = vsel %vm706_vm3, %v3480_v56, 0.0  ;;  %v3476_v50 = vadd.f32 %v7843_v52, %v3379_v9  ;;  %v3470_v14 = vpop.f32.mrb[35].mxu1 }
0x11d8   :  { %v3491_v22 = vsel %vm706_vm3, %v3479_v54, 0.0  ;;  %v3471_v25 = vadd.f32 %v3470_v14, %v3374_v32  ;;  %v3560_v8 = vpop.permute.xlu1 %3559 }
0x11d9   :  { %v3493_v41 = vadd.f32 %v3492_v51, %v3491_v22  ;;  %v3482_v42 = vadd.f32 %v3476_v50, %v9365_v38 }
0x11da   :  { %v3481_v60 = vadd.f32 %v3471_v25, %v9363_v31 }
0x11db   :  { %v3496_v24 = vsel %vm706_vm3, %v3482_v42, 0.0 }
0x11dc   :  { %v3494_v47 = vsel %vm706_vm3, %v3481_v60, 0.0  ;;  %v3546_v9 = vpop.permute.xlu1 %3545 }
0x11dd   :  { %v3495_v48 = vadd.f32 %v3494_v47, %v3493_v41 }
0x11df   :  { %v3497_v19 = vadd.f32 %v3496_v24, %v3495_v48 }
0x11e1   :  { %v3498_v30 = vrot.slane %v3497_v19, 4 }
0x11e3   :  { %v3499_v26 = vadd.f32 %v3498_v30, %v3497_v19 }
0x11e5   :  { %v3500_v17 = vrot.slane %v3499_v26, 2 }
0x11e7   :  { %v3501_v16 = vadd.f32 %v3500_v17, %v3499_v26 }
0x11e9   :  { %v3502_v27 = vrot.slane %v3501_v16, 1 }
0x11eb   :  { %v3503_v36 = vadd.f32 %v3502_v27, %v3501_v16 }
0x11ed   :  { %v3504_v28 = vmul.f32 0.03125, %v3503_v36 }
0x11ef   :  { %v3505_v29 = vsub.f32 %v3479_v54, %v3504_v28  ;;  %v3506_v49 = vsub.f32 %v3480_v56, %v3504_v28  ;;  %v3507_v39 = vsub.f32 %v3481_v60, %v3504_v28  ;;  %v3508_v13 = vsub.f32 %v3482_v42, %v3504_v28  ;;  %v3565_v56 = vpop.permute.xlu0 %3564  ;;  %v3570_v60 = vpop.permute.xlu1 %3569 }
0x11f1   :  { %v3509_v38 = vmul.f32 %v3505_v29, %v3505_v29  ;;  %v3510_v11 = vmul.f32 %v3506_v49, %v3506_v49  ;;  %v3511_v31 = vmul.f32 %v3507_v39, %v3507_v39  ;;  %v3512_v45 = vmul.f32 %v3508_v13, %v3508_v13 }
0x11f3   :  { %v3513_v46 = vsel %vm706_vm3, %v3509_v38, 0.0  ;;  %v3514_v21 = vsel %vm706_vm3, %v3510_v11, 0.0  ;;  %v3516_v40 = vsel %vm706_vm3, %v3511_v31, 0.0  ;;  %v3518_v2 = vsel %vm706_vm3, %v3512_v45, 0.0  ;;  %v3551_v54 = vpop.permute.xlu0 %3550  ;;  %v7145_v38 = vld [vmem:[%s10202_s25 + $0x78] sm:$0xff]  ;;  %v7146_v11 = vld [vmem:[%s10202_s25 + $0x80] sm:$0xff] }
0x11f4   :  { %v3515_v34 = vadd.f32 %v3514_v21, %v3513_v46  ;;  %v7147_v31 = vld [vmem:[%s10202_s25 + $0x88] sm:$0xff]  ;;  %v7150_v45 = vld [vmem:[%s10202_s25 + $0xa0] sm:$0xff]  ;;  %v7152_v21 = vld [vmem:[%s10202_s25 + $0xb0] sm:$0xff] }
0x11f5   :  { %7872 = vmatprep.mubr.msk.f32.mxu1 %vm333_vm0, %v7150_v45  ;;  %v7151_v46 = vld [vmem:[%s10202_s25 + $0xa8] sm:$0xff]  ;;  %v7156_v45 = vld [vmem:[%s10203_s1 + $0x70] sm:$0xff] }
0x11f6   :  { %v3517_v33 = vadd.f32 %v3516_v40, %v3515_v34 }
0x11f7   :  { %v3575_v47 = vpop.permute.xlu0 %3574 }
0x11f8   :  { %v3519_v37 = vadd.f32 %v3518_v2, %v3517_v33  ;;  %v3614_v33 = vpop.permute.xlu1 %3613 }
0x11fa   :  { %v3520_v23 = vrot.slane %v3519_v37, 4 }
0x11fb   :  { %v3619_v34 = vpop.permute.xlu0 %3618 }
0x11fc   :  { %v3521_v53 = vadd.f32 %v3520_v23, %v3519_v37 }
0x11fe   :  { %v3522_v58 = vrot.slane %v3521_v53, 2 }
0x1200   :  { %v3523_v59 = vadd.f32 %v3522_v58, %v3521_v53  ;;  %v7153_v58 = vld [vmem:[%s10202_s25 + $0xb8] sm:$0xff] }
0x1202   :  { %v3524_v0 = vrot.slane %v3523_v59, 1 }
0x1204   :  { %v3525_v1 = vadd.f32 %v3524_v0, %v3523_v59 }
0x1206   :  { %v3526_v5 = vmul.f32 0.03125, %v3525_v1  ;;  %v3634_v1 = vpop.permute.xlu1 %3633 }
0x1208   :  { %v3527_v7 = vadd.f32 1e-05, %v3526_v5  ;;  %v3639_v5 = vpop.permute.xlu0 %3638 }
0x120a   :  { %8387 = vrsqrt.f32 %v3527_v7 }
0x1214   :  { %v8388_v52 = vpop.eup %8387 }
0x1215   :  { %v3531_v32 = vmul.f32 %v8388_v52, %v3507_v39  ;;  %v3529_v51 = vmul.f32 %v8388_v52, %v3505_v29  ;;  %v3530_v50 = vmul.f32 %v8388_v52, %v3506_v49  ;;  %v3532_v14 = vmul.f32 %v8388_v52, %v3508_v13  ;;  %v7143_v39 = vld [vmem:[%s10202_s25 + $0x68] sm:$0xff]  ;;  %v7144_v13 = vld [vmem:[%s10202_s25 + $0x70] sm:$0xff] }
0x1217   :  { %v3555_v22 = vmul.f32 %v3546_v9, %v3531_v32  ;;  %v3553_v25 = vmul.f32 %v3536_v15, %v3529_v51  ;;  %v3554_v41 = vmul.f32 %v3541_v4, %v3530_v50  ;;  %v3556_v42 = vmul.f32 %v3551_v54, %v3532_v14  ;;  %v7148_v14 = vld [vmem:[%s10202_s25 + $0x90] sm:$0xff] }
0x1219   :  { %v9431_v48 = vadd.f32 %v3560_v8, %v3553_v25  ;;  %v9433_v24 = vadd.f32 %v3565_v56, %v3554_v41  ;;  %v9435_v19 = vadd.f32 %v3570_v60, %v3555_v22  ;;  %v9437_v30 = vadd.f32 %v3575_v47, %v3556_v42  ;;  %v7149_v22 = vld [vmem:[%s10202_s25 + $0x98] sm:$0xff] }
0x121b   :  { %v8206_v26 = vpack.c.bf16 %v9433_v24, %v9431_v48  ;;  %v3607_v17 = vadd.f32 %v9431_v48, %v8645_v10  ;;  %v3608_v16 = vadd.f32 %v9433_v24, %v8649_v12  ;;  %v3609_v27 = vadd.f32 %v9435_v19, %v8659_v18 }
0x121c   :  { %v3610_v36 = vadd.f32 %v9437_v30, %v8663_v20  ;;  %v8210_v29 = vpack.c.bf16 %v9437_v30, %v9435_v19 }
0x121d   :  { %8207 = vmatprep.subr.bf16.mxu1 %v8206_v26  ;;  %v8198_v28 = vpack.c.bf16 %v3608_v16, %v3607_v17 }
0x121e   :  { %8209 = vmatpush3.bf16.msra.mxu1 %v8206_v26  ;;  %v8202_v49 = vpack.c.bf16 %v3610_v36, %v3609_v27 }
0x121f   :  { %8199 = vmatprep.subr.bf16.mxu0 %v8198_v28  ;;  %8211 = vmatprep.subr.bf16.mxu1 %v8210_v29 }
0x1220   :  { %8201 = vmatpush3.bf16.msra.mxu0 %v8198_v28 }
0x1221   :  { %8203 = vmatprep.subr.bf16.mxu0 %v8202_v49 }
0x1222   :  { %8213 = vmatpush3.bf16.msra.mxu1 %v8210_v29 }
0x1224   :  { %8205 = vmatpush3.bf16.msra.mxu0 %v8202_v49 }
0x1225   :  { %8214 = vmatprep.subr.bf16.mxu0 %v8486_v62  ;;  %7873 = vmatmul.mubr.msk.f32.vlgmr.msra.gmra.mrb[36].mxu1 %vm333_vm0, %v7151_v46  ;;  %v7162_v46 = vld [vmem:[%s10203_s1 + $0xa0] sm:$0xff] }
0x1226   :  { %7875 = vmatprep.mubr.msk.f32.mxu1 %vm333_vm0, %v7152_v21 }
0x1227   :  { %7853 = vmatmul.mubr.msk.f32.vlgmr.msra.gmra.mrb[40].mxu0 %vm333_vm0, %v7143_v39 }
0x1228   :  { %7855 = vmatprep.mubr.msk.f32.mxu0 %vm333_vm0, %v7144_v13 }
0x1229   :  { %7876 = vmatmul.mubr.msk.f32.gmra.mrb[38].mxu1 %vm333_vm0, %v7153_v58 }
0x122b   :  { %7856 = vmatmul.mubr.msk.f32.gmra.mrb[42].mxu0 %vm333_vm0, %v7145_v38 }
0x122c   :  { %7858 = vmatprep.mubr.msk.f32.mxu0 %vm333_vm0, %v7146_v11  ;;  %v7157_v11 = vld [vmem:[%s10203_s1 + $0x78] sm:$0xff] }
0x122f   :  { %7859 = vmatmul.mubr.msk.f32.gmra.mrb[44].mxu0 %vm333_vm0, %v7147_v31  ;;  %v7163_v31 = vld [vmem:[%s10203_s1 + $0xa8] sm:$0xff] }
0x1230   :  { %7861 = vmatprep.mubr.msk.f32.mxu0 %vm333_vm0, %v7148_v14 }
0x1233   :  { %7862 = vmatmul.mubr.msk.f32.gmra.mrb[46].mxu0 %vm333_vm0, %v7149_v22 }
0x1234   :  { %7887 = vmatprep.mubr.msk.f32.mxu0 %vm8487_vm5, %v8488_v63 }
0x12f8   :  { %v9492_v8 = vpop.f32.mrb[36].mxu1 }
0x12f9   :  { %v9494_v56 = vpop.f32.mrb[37].mxu1 }
0x12fa   :  { %v7854_v40 = vpop.f32.mrb[40].mxu0 }
0x12fb   :  { %v3747_v2 = vadd.f32 %v7854_v40, %v3619_v34  ;;  %v3741_v37 = vpop.f32.mrb[41].mxu0 }
0x12fc   :  { %v3742_v23 = vadd.f32 %v3741_v37, %v3614_v33  ;;  %v9503_v51 = vpop.f32.mrb[38].mxu1 }
0x12fd   :  { %4125 = vxpose.xlu0.b32.start.end [1/1] (short) (narrow) %v3747_v2, 16  ;;  %v9505_v50 = vpop.f32.mrb[39].mxu1 }
0x12fe   :  { %3907 = vxpose.xlu1.b32.start.end [1/1] (short) (narrow) %v3742_v23, 16  ;;  %v9484_v53 = vpop.f32.mrb[42].mxu0 }
0x12ff   :  { %v9489_v59 = vpop.f32.mrb[43].mxu0 }
0x1302   :  { %v7860_v0 = vpop.f32.mrb[44].mxu0 }
0x1303   :  { %v3761_v15 = vpop.f32.mrb[45].mxu0  ;;  %v3767_v7 = vadd.f32 %v7860_v0, %v3639_v5 }
0x1304   :  { %v3762_v4 = vadd.f32 %v3761_v15, %v3634_v1 }
0x1306   :  { %7878 = vmatprep.subr.mxu1 %v3762_v4 }
0x1307   :  { %7879 = vmatpush3.msra.mxu1 %v3762_v4 }
0x1308   :  { %7890 = vmatprep.subr.mxu1 %v3767_v7 }
0x137d   :  { %v4141_v54 = vpop.trf.xlu0 }
0x137e   :  { %v3923_v9 = vpop.trf.xlu1 }
0x137f   :  { %7880 = vmatprep.mubr.msk.f32.mxu1 %vm620_vm1, %v3923_v9 }
0x1381   :  { %v4142_v32 = vpop.trf.xlu0 }
0x1382   :  { %v3924_v52 = vpop.trf.xlu1 }
0x1383   :  { %7881 = vmatmul.mubr.msk.f32.vlgmr.msra.gmra.mrb[40].mxu1 %vm620_vm1, %v3924_v52 }
0x1384   :  { %7891 = vmatpush3.msra.mxu1 %v3767_v7  ;;  %7892 = vmatprep.mubr.msk.f32.mxu1 %vm620_vm1, %v4141_v54 }
0x1385   :  { %8218 = vmatprep.subr.bf16.mxu1 %v8486_v62 }
0x1387   :  { %7893 = vmatmul.mubr.msk.f32.vlgmr.msra.gmra.mrb[42].mxu1 %vm620_vm1, %v4142_v32 }
0x1388   :  { %7899 = vmatprep.mubr.msk.f32.mxu1 %vm8487_vm5, %v8488_v63 }
0x1456   :  { %v7882_v25 = vpop.f32.mrb[40].mxu1 }
0x1457   :  { %v4021_v41 = vmul.f32 0.35355338, %v7882_v25  ;;  %v4011_v42 = vpop.f32.mrb[41].mxu1  ;;  %v7160_v25 = vld [vmem:[%s10203_s1 + $0x90] sm:$0xff] }
0x1458   :  { %v4020_v60 = vmul.f32 0.35355338, %v4011_v42 }
0x1459   :  { %v4023_v47 = vsel %vm8733_vm2, %v4021_v41, -1e+30  ;;  %v7863_v41 = vpop.f32.mrb[46].mxu0 }
0x145a   :  { %v4022_v26 = vsel %vm8737_vm4, %v4020_v60, -1e+30  ;;  %v7894_v17 = vpop.f32.mrb[42].mxu1  ;;  %v4027_v16 = vsel %vm706_vm3, %v4023_v47, -inf  ;;  %v3771_v42 = vpop.f32.mrb[47].mxu0  ;;  %v7161_v60 = vld [vmem:[%s10203_s1 + $0x98] sm:$0xff] }
0x145b   :  { %v4239_v27 = vmul.f32 0.35355338, %v7894_v17  ;;  %4028 = vmax.xlane.f32.xlu1 %v4027_v16  ;;  %v4229_v36 = vpop.f32.mrb[43].mxu1  ;;  %v4024_v28 = vsel %vm706_vm3, %v4022_v26, -inf }
0x145c   :  { %v4238_v29 = vmul.f32 0.35355338, %v4229_v36  ;;  %4025 = vmax.xlane.f32.xlu0 %v4024_v28 }
0x145d   :  { %v4241_v49 = vsel %vm8733_vm2, %v4239_v27, -1e+30 }
0x145e   :  { %v4240_v39 = vsel %vm8737_vm4, %v4238_v29, -1e+30  ;;  %v4245_v13 = vsel %vm706_vm3, %v4241_v49, -inf }
0x145f   :  { %4246 = vmax.xlane.f32.xlu1 %v4245_v13  ;;  %v4242_v38 = vsel %vm706_vm3, %v4240_v39, -inf }
0x1460   :  { %4243 = vmax.xlane.f32.xlu0 %v4242_v38 }
0x1470   :  { %3628 = vperm.xlu1 %8318, %v7157_v11  }
0x1474   :  { %3787 = vperm.xlu1 %8318, %v7163_v31  }
0x1476   :  { %3623 = vperm.xlu0 %8317, %v7156_v45  }
0x147a   :  { %3782 = vperm.xlu0 %8317, %v7162_v46  }
0x14e8   :  { %v4029_v21 = vpop.xlane.xlu1 %4028 }
0x14e9   :  { %v4031_v34 = vsub.f32 %v4023_v47, %v4029_v21  ;;  %v4026_v40 = vpop.xlane.xlu0 %4025 }
0x14ea   :  { %v4030_v33 = vsub.f32 %v4022_v26, %v4026_v40 }
0x14eb   :  { %v4034_v2 = vmul.f32 1.442695, %v4031_v34 }
0x14ec   :  { %v4032_v37 = vmul.f32 1.442695, %v4030_v33  ;;  %v4247_v23 = vpop.xlane.xlu1 %4246 }
0x14ed   :  { %8389 = vpow2.f32 %v4034_v2  ;;  %v4249_v58 = vsub.f32 %v4241_v49, %v4247_v23  ;;  %v4244_v0 = vpop.xlane.xlu0 %4243 }
0x14ee   :  { %8391 = vpow2.f32 %v4032_v37  ;;  %v4248_v1 = vsub.f32 %v4240_v39, %v4244_v0 }
0x14ef   :  { %v4252_v15 = vmul.f32 1.442695, %v4249_v58 }
0x14f0   :  { %v4250_v4 = vmul.f32 1.442695, %v4248_v1  ;;  %v3629_v47 = vpop.permute.xlu1 %3628 }
0x14f1   :  { %8393 = vpow2.f32 %v4252_v15  ;;  %v3757_v26 = vadd.f32 %v9484_v53, %v3629_v47 }
0x14f2   :  { %8395 = vpow2.f32 %v4250_v4 }
0x14f4   :  { %v3788_v36 = vpop.permute.xlu1 %3787 }
0x14f5   :  { %v3624_v17 = vpop.permute.xlu0 %3623  ;;  %v3884_v58 = vadd.f32 %v9492_v8, %v3788_v36 }
0x14f6   :  { %v3752_v16 = vadd.f32 %v9489_v59, %v3624_v17 }
0x14f7   :  { %v8390_v5 = vpop.eup %8389 }
0x14f8   :  { %v8392_v7 = vpop.eup %8391  ;;  %v4039_v9 = vsel %vm706_vm3, %v8390_v5, 0.0 }
0x14f9   :  { %4040 = vadd.xlane.f32.xlu0 %v4039_v9  ;;  %v4036_v54 = vsel %vm706_vm3, %v8392_v7, 0.0  ;;  %v3783_v27 = vpop.permute.xlu0 %3782 }
0x14fa   :  { %4037 = vadd.xlane.f32.xlu1 %v4036_v54  ;;  %v3879_v23 = vadd.f32 %v9494_v56, %v3783_v27 }
0x14fb   :  { %v8394_v52 = vpop.eup %8393 }
0x14fc   :  { %v8396_v32 = vpop.eup %8395  ;;  %v4257_v14 = vsel %vm706_vm3, %v8394_v52, 0.0 }
0x14fd   :  { %v4254_v22 = vsel %vm706_vm3, %v8396_v32, 0.0 }
0x14fe   :  { %4258 = vadd.xlane.f32.xlu1 %v4257_v14  ;;  %4255 = vadd.xlane.f32.xlu0 %v4254_v22 }
0x150f   :  { %3643 = vperm.xlu1 %8318, %v7160_v25  }
0x1514   :  { %3648 = vperm.xlu0 %8317, %v7161_v60  }
0x1532   :  { %4561 = vxpose.xlu0.b32.start.end [1/1] (short) (narrow) %v3757_v26, 16 }
0x1538   :  { %4343 = vxpose.xlu1.b32.start.end [1/1] (short) (narrow) %v3752_v16, 16 }
0x1586   :  { %v4041_v28 = vpop.xlane.xlu0 %4040 }
0x1587   :  { %8397 = vrcp.f32 %v4041_v28  ;;  %v4038_v29 = vpop.xlane.xlu1 %4037 }
0x1588   :  { %8399 = vrcp.f32 %v4038_v29 }
0x158b   :  { %v4259_v49 = vpop.xlane.xlu1 %4258  ;;  %v4256_v39 = vpop.xlane.xlu0 %4255 }
0x158c   :  { %8401 = vrcp.f32 %v4259_v49 }
0x158d   :  { %8403 = vrcp.f32 %v4256_v39 }
0x158f   :  { %v3644_v53 = vpop.permute.xlu1 %3643 }
0x1590   :  { %v3772_v21 = vadd.f32 %v3771_v42, %v3644_v53 }
0x1591   :  { %v8398_v13 = vpop.eup %8397 }
0x1592   :  { %v8400_v38 = vpop.eup %8399  ;;  %v4045_v11 = vmul.f32 %v8398_v13, %v8390_v5 }
0x1593   :  { %v4044_v31 = vmul.f32 %v8400_v38, %v8392_v7  ;;  %v3649_v33 = vpop.permute.xlu0 %3648 }
0x1594   :  { %v3777_v37 = vadd.f32 %v7863_v41, %v3649_v33 }
0x1595   :  { %v8215_v45 = vpack.c.bf16 %v4045_v11, %v4044_v31 }
0x1596   :  { %v8402_v46 = vpop.eup %8401 }
0x1597   :  { %v8404_v59 = vpop.eup %8403  ;;  %v4263_v34 = vmul.f32 %v8402_v46, %v8394_v52  ;;  %8217 = vmatpush3.bf16.xpose.msk.msra.mxu0 %vm8785_vm6, %v8215_v45 }
0x1598   :  { %v4262_v40 = vmul.f32 %v8404_v59, %v8396_v32  ;;  %7902 = vmatprep.subr.mxu0 %v3772_v21 }
0x159a   :  { %v8219_v2 = vpack.c.bf16 %v4263_v34, %v4262_v40 }
0x159c   :  { %8221 = vmatpush3.bf16.xpose.msk.msra.mxu1 %vm8785_vm6, %v8219_v2 }
0x159d   :  { %7914 = vmatprep.subr.mxu1 %v3777_v37 }
0x159e   :  { %7888 = vmatmul.mubr.msk.f32.vlgmr.msra.gmra.mrb[48].mxu0 %vm706_vm3, %v3879_v23 }
0x159f   :  { %7903 = vmatpush3.msra.mxu0 %v3772_v21 }
0x15a0   :  { %8222 = vmatprep.subr.bf16.mxu0 %v8486_v62 }
0x15a3   :  { %7900 = vmatmul.mubr.msk.f32.vlgmr.msra.gmra.mrb[44].mxu1 %vm706_vm3, %v3884_v58 }
0x15a4   :  { %7915 = vmatpush3.msra.mxu1 %v3777_v37 }
0x15a5   :  { %8226 = vmatprep.subr.bf16.mxu1 %v8486_v62 }
0x15b2   :  { %v4577_v0 = vpop.trf.xlu0 }
0x15b3   :  { %7916 = vmatprep.mubr.msk.f32.mxu1 %vm620_vm1, %v4577_v0 }
0x15b6   :  { %v4578_v56 = vpop.trf.xlu0 }
0x15b7   :  { %7917 = vmatmul.mubr.msk.f32.vlgmr.msra.gmra.mrb[46].mxu1 %vm620_vm1, %v4578_v56  ;;  %v7165_v56 = vld [vmem:[%s10203_s1 + $0xb8] sm:$0xff] }
0x15b8   :  { %v4359_v1 = vpop.trf.xlu1  ;;  %7923 = vmatprep.mubr.msk.f32.mxu1 %vm8487_vm5, %v8488_v63 }
0x15b9   :  { %7904 = vmatprep.mubr.msk.f32.mxu0 %vm620_vm1, %v4359_v1  ;;  %v7182_v1 = vld [vmem:[%s10210_s14 + $0x20] sm:$0xff] }
0x15bc   :  { %v4360_v15 = vpop.trf.xlu1 }
0x15bd   :  { %7905 = vmatmul.mubr.msk.f32.vlgmr.msra.gmra.mrb[50].mxu0 %vm620_vm1, %v4360_v15  ;;  %v7164_v15 = vld [vmem:[%s10203_s1 + $0xb0] sm:$0xff] }
0x15be   :  { %7911 = vmatprep.mubr.msk.f32.mxu0 %vm8487_vm5, %v8488_v63 }
0x1671   :  { %v4121_v8 = vpop.f32.mrb[48].mxu0 }
0x1672   :  { %v7889_v4 = vpop.f32.mrb[49].mxu0 }
0x1673   :  { %v7183_v4 = vld [vmem:[%s10210_s14 + $0x28] sm:$0xff] }
0x1676   :  { %v4339_v5 = vpop.f32.mrb[44].mxu1 }
0x1677   :  { %v9571_v7 = vpack.c.bf16 %v4339_v5, %v4121_v8  ;;  %v7901_v9 = vpop.f32.mrb[45].mxu1  ;;  %v7184_v8 = vld [vmem:[%s10210_s14 + $0x30] sm:$0xff]  ;;  %v7210_v5 = vld [vmem:[%s10171_s16 + $0x20] sm:$0xff] }
0x1678   :  { %v7185_v9 = vld [vmem:[%s10210_s14 + $0x38] sm:$0xff] }
0x168a   :  { %v7918_v54 = vpop.f32.mrb[46].mxu1 }
0x168b   :  { %v4665_v52 = vpop.f32.mrb[47].mxu1  ;;  %v4675_v32 = vmul.f32 0.35355338, %v7918_v54  ;;  %v7214_v54 = vld [vmem:[%s10172_s17 + $0x20] sm:$0xff] }
0x168c   :  { %v4674_v22 = vmul.f32 0.35355338, %v4665_v52  ;;  %v7211_v52 = vld [vmem:[%s10171_s16 + $0x28] sm:$0xff] }
0x168d   :  { %v4677_v47 = vsel %vm8733_vm2, %v4675_v32, -1e+30  ;;  %v7212_v32 = vld [vmem:[%s10171_s16 + $0x30] sm:$0xff] }
0x168e   :  { %v4676_v16 = vsel %vm8737_vm4, %v4674_v22, -1e+30  ;;  %v4681_v36 = vsel %vm706_vm3, %v4677_v47, -inf  ;;  %v7216_v22 = vld [vmem:[%s10172_s17 + $0x30] sm:$0xff] }
0x168f   :  { %v4678_v28 = vsel %vm706_vm3, %v4676_v16, -inf }
0x1690   :  { %v7906_v14 = vpop.f32.mrb[50].mxu0 }
0x1691   :  { %v4457_v25 = vmul.f32 0.35355338, %v7906_v14  ;;  %v4447_v41 = vpop.f32.mrb[51].mxu0  ;;  %v7215_v14 = vld [vmem:[%s10172_s17 + $0x28] sm:$0xff] }
0x1692   :  { %v4456_v42 = vmul.f32 0.35355338, %v4447_v41  ;;  %v7230_v41 = vld [vmem:[%s10164_s9 + $0x60] sm:$0xff] }
0x1693   :  { %v4459_v60 = vsel %vm8733_vm2, %v4457_v25, -1e+30  ;;  %v7213_v25 = vld [vmem:[%s10171_s16 + $0x38] sm:$0xff] }
0x1694   :  { %v4458_v26 = vsel %vm8737_vm4, %v4456_v42, -1e+30  ;;  %v4463_v17 = vsel %vm706_vm3, %v4459_v60, -inf  ;;  %v7217_v42 = vld [vmem:[%s10172_s17 + $0x38] sm:$0xff] }
0x1695   :  { %4464 = vmax.xlane.f32.xlu1 %v4463_v17  ;;  %v4460_v27 = vsel %vm706_vm3, %v4458_v26, -inf }
0x1696   :  { %4461 = vmax.xlane.f32.xlu0 %v4460_v27 }
0x1699   :  { %4682 = vmax.xlane.f32.xlu1 %v4681_v36 }
0x169a   :  { %4679 = vmax.xlane.f32.xlu0 %v4678_v28 }
0x1722   :  { %v4465_v29 = vpop.xlane.xlu1 %4464 }
0x1723   :  { %v4467_v49 = vsub.f32 %v4459_v60, %v4465_v29  ;;  %v4462_v39 = vpop.xlane.xlu0 %4461  ;;  %v7234_v60 = vld [vmem:[%s10164_s9 + $0x80] sm:$0xff] }
0x1724   :  { %v4466_v13 = vsub.f32 %v4458_v26, %v4462_v39  ;;  %v7235_v26 = vld [vmem:[%s10164_s9 + $0x88] sm:$0xff] }
0x1725   :  { %v4470_v38 = vmul.f32 1.442695, %v4467_v49 }
0x1726   :  { %v4468_v11 = vmul.f32 1.442695, %v4466_v13  ;;  %v4683_v31 = vpop.xlane.xlu1 %4682 }
0x1727   :  { %8405 = vpow2.f32 %v4470_v38  ;;  %v4685_v53 = vsub.f32 %v4677_v47, %v4683_v31  ;;  %v4680_v45 = vpop.xlane.xlu0 %4679  ;;  %v7231_v47 = vld [vmem:[%s10164_s9 + $0x68] sm:$0xff] }
0x1728   :  { %8407 = vpow2.f32 %v4468_v11  ;;  %v4684_v46 = vsub.f32 %v4676_v16, %v4680_v45 }
0x1729   :  { %v4688_v21 = vmul.f32 1.442695, %v4685_v53 }
0x172a   :  { %v4686_v59 = vmul.f32 1.442695, %v4684_v46 }
0x172b   :  { %8409 = vpow2.f32 %v4688_v21 }
0x172c   :  { %8411 = vpow2.f32 %v4686_v59 }
0x1731   :  { %v8406_v34 = vpop.eup %8405 }
0x1732   :  { %v8408_v40 = vpop.eup %8407  ;;  %v4475_v33 = vsel %vm706_vm3, %v8406_v34, 0.0 }
0x1733   :  { %4476 = vadd.xlane.f32.xlu1 %v4475_v33  ;;  %v4472_v2 = vsel %vm706_vm3, %v8408_v40, 0.0 }
0x1734   :  { %4473 = vadd.xlane.f32.xlu0 %v4472_v2 }
0x1735   :  { %v8410_v37 = vpop.eup %8409 }
0x1736   :  { %v8412_v23 = vpop.eup %8411  ;;  %v4693_v58 = vsel %vm706_vm3, %v8410_v37, 0.0 }
0x1737   :  { %4694 = vadd.xlane.f32.xlu1 %v4693_v58  ;;  %v4690_v0 = vsel %vm706_vm3, %v8412_v23, 0.0  ;;  %v7222_v58 = vld [vmem:[%s10214_s4 + $0x80] sm:$0xff] }
0x1738   :  { %4691 = vadd.xlane.f32.xlu0 %v4690_v0  ;;  %v7218_v0 = vld [vmem:[%s10214_s4 + $0x60] sm:$0xff] }
0x1748   :  { %3797 = vperm.xlu1 %8318, %v7165_v56  }
0x174c   :  { %4781 = vperm.xlu1 %8318, %v7182_v1  }
0x174e   :  { %3792 = vperm.xlu0 %8317, %v7164_v15  }
0x1750   :  { %4791 = vperm.xlu1 %8318, %v7184_v8  }
0x1752   :  { %4786 = vperm.xlu0 %8317, %v7183_v4  }
0x1754   :  { %4954 = vperm.xlu1 %8318, %v7210_v5  }
0x1756   :  { %4796 = vperm.xlu0 %8317, %v7185_v9  }
0x1758   :  { %4978 = vperm.xlu1 %8318, %v7214_v54  }
0x175a   :  { %4959 = vperm.xlu0 %8317, %v7211_v52  }
0x175c   :  { %4964 = vperm.xlu1 %8318, %v7212_v32  }
0x175e   :  { %4983 = vperm.xlu0 %8317, %v7215_v14  }
0x1760   :  { %4988 = vperm.xlu1 %8318, %v7216_v22  }
0x1762   :  { %4969 = vperm.xlu0 %8317, %v7213_v25  }
0x1764   :  { %5032 = vperm.xlu1 %8318, %v7230_v41  }
0x1766   :  { %4993 = vperm.xlu0 %8317, %v7217_v42  }
0x1768   :  { %5149 = vperm.xlu1 %8318, %v7234_v60  }
0x176a   :  { %5037 = vperm.xlu0 %8317, %v7231_v47  }
0x176e   :  { %5154 = vperm.xlu0 %8317, %v7235_v26  }
0x17c0   :  { %v4477_v17 = vpop.xlane.xlu1 %4476 }
0x17c1   :  { %8413 = vrcp.f32 %v4477_v17  ;;  %v4474_v16 = vpop.xlane.xlu0 %4473 }
0x17c2   :  { %8415 = vrcp.f32 %v4474_v16 }
0x17c4   :  { %v4695_v27 = vpop.xlane.xlu1 %4694 }
0x17c5   :  { %8417 = vrcp.f32 %v4695_v27  ;;  %v4692_v36 = vpop.xlane.xlu0 %4691 }
0x17c6   :  { %8419 = vrcp.f32 %v4692_v36 }
0x17c8   :  { %v3798_v59 = vpop.permute.xlu1 %3797 }
0x17cb   :  { %v8414_v28 = vpop.eup %8413 }
0x17cc   :  { %v8416_v29 = vpop.eup %8415  ;;  %v4481_v49 = vmul.f32 %v8414_v28, %v8406_v34  ;;  %v3894_v34 = vadd.f32 %v9503_v51, %v3798_v59  ;;  %v7180_v51 = vld [vmem:[%s10213_s28 + $0x30] sm:$0xff]  ;;  %v4782_v56 = vpop.permute.xlu1 %4781 }
0x17cd   :  { %v4480_v39 = vmul.f32 %v8416_v29, %v8408_v40  ;;  %v3793_v45 = vpop.permute.xlu0 %3792  ;;  %v7178_v40 = vld [vmem:[%s10213_s28 + $0x20] sm:$0xff] }
0x17ce   :  { %v3889_v21 = vadd.f32 %v9505_v50, %v3793_v45 }
0x17cf   :  { %v8418_v13 = vpop.eup %8417  ;;  %v8223_v38 = vpack.c.bf16 %v4481_v49, %v4480_v39 }
0x17d0   :  { %v8420_v11 = vpop.eup %8419  ;;  %v4699_v31 = vmul.f32 %v8418_v13, %v8410_v37  ;;  %v4792_v15 = vpop.permute.xlu1 %4791 }
0x17d1   :  { %v4698_v53 = vmul.f32 %v8420_v11, %v8412_v23  ;;  %8225 = vmatpush3.bf16.xpose.msk.msra.mxu0 %vm8785_vm6, %v8223_v38  ;;  %v7181_v23 = vld [vmem:[%s10213_s28 + $0x38] sm:$0xff]  ;;  %v4787_v1 = vpop.permute.xlu0 %4786 }
0x17d2   :  { %8231 = vmatprep.subr.bf16.mxu0 %v9571_v7 }
0x17d3   :  { %v8227_v46 = vpack.c.bf16 %v4699_v31, %v4698_v53 }
0x17d4   :  { %v9685_v4 = vpop.permute.xlu1 %4954 }
0x17d5   :  { %8229 = vmatpush3.bf16.xpose.msk.msra.mxu1 %vm8785_vm6, %v8227_v46  ;;  %v4797_v8 = vpop.permute.xlu0 %4796 }
0x17d8   :  { %7912 = vmatmul.mubr.msk.f32.vlgmr.msra.gmra.mrb[52].mxu0 %vm706_vm3, %v3889_v21  ;;  %v9689_v5 = vpop.permute.xlu1 %4978 }
0x17d9   :  { %8233 = vmatpush3.bf16.msra.mxu0 %v9571_v7  ;;  %7934 = vmatprep.mubr.msk.f32.mxu0 %vm333_vm0, %v7178_v40  ;;  %v7179_v7 = vld [vmem:[%s10213_s28 + $0x28] sm:$0xff] }
0x17dc   :  { %7924 = vmatmul.mubr.msk.f32.vlgmr.msra.gmra.mrb[48].mxu1 %vm706_vm3, %v3894_v34  ;;  %v9693_v54 = vpop.permute.xlu1 %4964 }
0x17dd   :  { %7948 = vmatprep.mubr.msk.f32.mxu1 %vm333_vm0, %v7218_v0 }
0x17e0   :  { %v9697_v32 = vpop.permute.xlu1 %4988 }
0x17e4   :  { %v9701_v60 = vpop.permute.xlu1 %5032 }
0x17e8   :  { %v5150_v31 = vpop.permute.xlu1 %5149 }
0x18ab   :  { %v4557_v33 = vpop.f32.mrb[52].mxu0 }
0x18ac   :  { %v7913_v43 = vpop.f32.mrb[53].mxu0 }
0x18af   :  { %v4775_v2 = vpop.f32.mrb[48].mxu1 }
0x18b0   :  { %v8234_v37 = vpack.c.bf16 %v4775_v2, %v4557_v33  ;;  %v7925_v50 = vpop.f32.mrb[49].mxu1 }
0x18b2   :  { %8235 = vmatprep.subr.bf16.mxu0 %v8234_v37 }
0x18b3   :  { %8237 = vmatpush3.bf16.msra.mxu0 %v8234_v37 }
0x18b4   :  { %8247 = vmatprep.subr.bf16.mxu0 %v8959_v55 }
0x18b6   :  { %7935 = vmatmul.mubr.msk.f32.vlgmr.msra.gmra.mrb[54].mxu0 %vm333_vm0, %v7179_v7 }
0x18b7   :  { %8249 = vmatpush3.bf16.msra.mxu0 %v8959_v55  ;;  %7937 = vmatprep.mubr.msk.f32.mxu0 %vm333_vm0, %v7180_v51  ;;  %v7223_v55 = vld [vmem:[%s10214_s4 + $0x88] sm:$0xff] }
0x18b8   :  { %8251 = vmatprep.subr.bf16.mxu0 %v8966_v61 }
0x18ba   :  { %7938 = vmatmul.mubr.msk.f32.gmra.mrb[56].mxu0 %vm333_vm0, %v7181_v23 }
0x18bb   :  { %8253 = vmatpush3.bf16.msra.mxu0 %v8966_v61  ;;  %7962 = vmatprep.mubr.msk.f32.mxu0 %vm333_vm0, %v7222_v58  ;;  %v9687_v61 = vpop.permute.xlu0 %4959 }
0x18be   :  { %7963 = vmatmul.mubr.msk.f32.vlgmr.msra.gmra.mrb[58].mxu0 %vm333_vm0, %v7223_v55 }
0x18bf   :  { %v9691_v9 = vpop.permute.xlu0 %4983 }
0x18c3   :  { %v9695_v52 = vpop.permute.xlu0 %4969 }
0x18c7   :  { %v9699_v14 = vpop.permute.xlu0 %4993 }
0x18cb   :  { %v9705_v16 = vpop.permute.xlu0 %5037 }
0x18cf   :  { %v5155_v45 = vpop.permute.xlu0 %5154 }
0x1989   :  { %v7936_v22 = vpop.f32.mrb[54].mxu0 }
0x198a   :  { %v4883_v25 = vadd.f32 %v7936_v22, %v4787_v1  ;;  %v4877_v41 = vpop.f32.mrb[55].mxu0 }
0x198b   :  { %v4878_v42 = vadd.f32 %v4877_v41, %v4782_v56 }
0x198c   :  { %v4897_v47 = vadd.f32 %v4883_v25, %v9433_v24 }
0x198d   :  { %v4896_v26 = vadd.f32 %v4878_v42, %v9431_v48  ;;  %v7939_v17 = vpop.f32.mrb[56].mxu0 }
0x198e   :  { %v4911_v27 = vsel %vm706_vm3, %v4897_v47, 0.0  ;;  %v4893_v36 = vadd.f32 %v7939_v17, %v4797_v8  ;;  %v4887_v28 = vpop.f32.mrb[57].mxu0 }
0x198f   :  { %v4910_v29 = vsel %vm706_vm3, %v4896_v26, 0.0  ;;  %v4888_v49 = vadd.f32 %v4887_v28, %v4792_v15 }
0x1990   :  { %v4912_v39 = vadd.f32 %v4911_v27, %v4910_v29  ;;  %v4899_v13 = vadd.f32 %v4893_v36, %v9437_v30 }
0x1991   :  { %v4898_v38 = vadd.f32 %v4888_v49, %v9435_v19  ;;  %v7964_v11 = vpop.f32.mrb[58].mxu0 }
0x1992   :  { %v5245_v24 = vpop.f32.mrb[59].mxu0  ;;  %v4915_v21 = vsel %vm706_vm3, %v4899_v13, 0.0  ;;  %v9713_v59 = vadd.f32 %v7964_v11, %v5155_v45 }
0x1993   :  { %v4913_v48 = vsel %vm706_vm3, %v4898_v38, 0.0  ;;  %v5246_v53 = vadd.f32 %v5245_v24, %v5150_v31 }
0x1994   :  { %v4914_v46 = vadd.f32 %v4913_v48, %v4912_v39 }
0x1995   :  { %7982 = vmatprep.subr.mxu0 %v5246_v53 }
0x1996   :  { %v4916_v34 = vadd.f32 %v4915_v21, %v4914_v46  ;;  %7983 = vmatpush3.msra.mxu0 %v5246_v53 }
0x1997   :  { %7994 = vmatprep.subr.mxu0 %v9713_v59 }
0x1998   :  { %v4917_v30 = vrot.slane %v4916_v34, 4 }
0x199a   :  { %v4918_v40 = vadd.f32 %v4917_v30, %v4916_v34 }
0x199c   :  { %v4919_v19 = vrot.slane %v4918_v40, 2 }
0x199e   :  { %v4920_v33 = vadd.f32 %v4919_v19, %v4918_v40  ;;  %v7221_v40 = vld [vmem:[%s10214_s4 + $0x78] sm:$0xff] }
0x19a0   :  { %v4921_v43 = vrot.slane %v4920_v33, 1 }
0x19a2   :  { %v4922_v2 = vadd.f32 %v4921_v43, %v4920_v33 }
0x19a4   :  { %v4923_v37 = vmul.f32 0.03125, %v4922_v2 }
0x19a6   :  { %v4924_v50 = vsub.f32 %v4896_v26, %v4923_v37  ;;  %v4925_v7 = vsub.f32 %v4897_v47, %v4923_v37  ;;  %v4926_v51 = vsub.f32 %v4898_v38, %v4923_v37  ;;  %v4927_v23 = vsub.f32 %v4899_v13, %v4923_v37 }
0x19a8   :  { %v4928_v58 = vmul.f32 %v4924_v50, %v4924_v50  ;;  %v4929_v55 = vmul.f32 %v4925_v7, %v4925_v7  ;;  %v4930_v0 = vmul.f32 %v4926_v51, %v4926_v51  ;;  %v4931_v56 = vmul.f32 %v4927_v23, %v4927_v23 }
0x19aa   :  { %v4932_v1 = vsel %vm706_vm3, %v4928_v58, 0.0  ;;  %v4933_v15 = vsel %vm706_vm3, %v4929_v55, 0.0  ;;  %v4935_v22 = vsel %vm706_vm3, %v4930_v0, 0.0  ;;  %v4937_v41 = vsel %vm706_vm3, %v4931_v56, 0.0 }
0x19ab   :  { %v4934_v8 = vadd.f32 %v4933_v15, %v4932_v1 }
0x19ad   :  { %v4936_v25 = vadd.f32 %v4935_v22, %v4934_v8 }
0x19af   :  { %v4938_v42 = vadd.f32 %v4937_v41, %v4936_v25 }
0x19b1   :  { %v4939_v17 = vrot.slane %v4938_v42, 4 }
0x19b3   :  { %v4940_v26 = vadd.f32 %v4939_v17, %v4938_v42 }
0x19b5   :  { %v4941_v47 = vrot.slane %v4940_v26, 2 }
0x19b7   :  { %v4942_v27 = vadd.f32 %v4941_v47, %v4940_v26  ;;  %v7233_v26 = vld [vmem:[%s10164_s9 + $0x78] sm:$0xff]  ;;  %v7239_v47 = vld [vmem:[%s10164_s9 + $0xa8] sm:$0xff] }
0x19b9   :  { %v4943_v36 = vrot.slane %v4942_v27, 1 }
0x19bb   :  { %v4944_v28 = vadd.f32 %v4943_v36, %v4942_v27 }
0x19bd   :  { %v4945_v29 = vmul.f32 0.03125, %v4944_v28  ;;  %v7232_v28 = vld [vmem:[%s10164_s9 + $0x70] sm:$0xff] }
0x19bf   :  { %v4946_v49 = vadd.f32 1e-05, %v4945_v29 }
0x19c1   :  { %8421 = vrsqrt.f32 %v4946_v49 }
0x19cb   :  { %v8422_v39 = vpop.eup %8421 }
0x19cc   :  { %v4950_v13 = vmul.f32 %v8422_v39, %v4926_v51  ;;  %v4948_v38 = vmul.f32 %v8422_v39, %v4924_v50  ;;  %v4949_v11 = vmul.f32 %v8422_v39, %v4925_v7  ;;  %v4951_v31 = vmul.f32 %v8422_v39, %v4927_v23  ;;  %v7238_v39 = vld [vmem:[%s10164_s9 + $0xa0] sm:$0xff] }
0x19ce   :  { %v4974_v24 = vmul.f32 %v9693_v54, %v4950_v13  ;;  %v4972_v48 = vmul.f32 %v9685_v4, %v4948_v38  ;;  %v4973_v53 = vmul.f32 %v9687_v61, %v4949_v11  ;;  %v4975_v45 = vmul.f32 %v9695_v52, %v4951_v31 }
0x19d0   :  { %v9725_v46 = vadd.f32 %v9689_v5, %v4972_v48  ;;  %v9728_v21 = vadd.f32 %v9691_v9, %v4973_v53  ;;  %v9731_v34 = vadd.f32 %v9697_v32, %v4974_v24  ;;  %v9734_v30 = vadd.f32 %v9699_v14, %v4975_v45  ;;  %v7219_v32 = vld [vmem:[%s10214_s4 + $0x68] sm:$0xff] }
0x19d2   :  { %v5026_v54 = vadd.f32 %v9725_v46, %v8645_v10  ;;  %v5027_v4 = vadd.f32 %v9728_v21, %v8649_v12  ;;  %v5028_v61 = vadd.f32 %v9731_v34, %v8659_v18  ;;  %v5029_v5 = vadd.f32 %v9734_v30, %v8663_v20  ;;  %v7224_v10 = vld [vmem:[%s10214_s4 + $0x90] sm:$0xff] }
0x19d3   :  { %7965 = vmatprep.mubr.msk.f32.mxu0 %vm333_vm0, %v7224_v10 }
0x19d4   :  { %v8238_v9 = vpack.c.bf16 %v5027_v4, %v5026_v54  ;;  %v8242_v52 = vpack.c.bf16 %v5029_v5, %v5028_v61 }
0x19d6   :  { %8239 = vmatprep.subr.bf16.mxu1 %v8238_v9 }
0x19d7   :  { %8241 = vmatpush3.bf16.msra.mxu1 %v8238_v9 }
0x19d8   :  { %8243 = vmatprep.subr.bf16.mxu1 %v8242_v52 }
0x19db   :  { %8245 = vmatpush3.bf16.msra.mxu1 %v8242_v52 }
0x19dc   :  { %8255 = vmatprep.subr.bf16.mxu1 %v9038_v35 }
0x19de   :  { %7949 = vmatmul.mubr.msk.f32.vlgmr.msra.gmra.mrb[50].mxu1 %vm333_vm0, %v7219_v32 }
0x19df   :  { %8257 = vmatpush3.bf16.msra.mxu1 %v9038_v35  ;;  %v7225_v35 = vld [vmem:[%s10214_s4 + $0x98] sm:$0xff] }
0x19e0   :  { %8259 = vmatprep.subr.bf16.mxu1 %v9045_v57  ;;  %7966 = vmatmul.mubr.msk.f32.gmra.mrb[60].mxu0 %vm333_vm0, %v7225_v35  ;;  %v7236_v35 = vld [vmem:[%s10164_s9 + $0x90] sm:$0xff] }
0x19e3   :  { %8261 = vmatpush3.bf16.msra.mxu1 %v9045_v57  ;;  %v7220_v57 = vld [vmem:[%s10214_s4 + $0x70] sm:$0xff] }
0x19e4   :  { %8262 = vmatprep.subr.bf16.mxu1 %v8486_v62  ;;  %7951 = vmatprep.mubr.msk.f32.mxu1 %vm333_vm0, %v7220_v57  ;;  %v7237_v57 = vld [vmem:[%s10164_s9 + $0x98] sm:$0xff] }
0x19e5   :  { %7952 = vmatmul.mubr.msk.f32.gmra.mrb[52].mxu1 %vm333_vm0, %v7221_v40  ;;  %v7228_v40 = vld [vmem:[%s10214_s4 + $0xb0] sm:$0xff] }
0x1ab1   :  { %v7950_v12 = vpop.f32.mrb[50].mxu1 }
0x1ab2   :  { %v5134_v18 = vadd.f32 %v7950_v12, %v9705_v16  ;;  %v5128_v20 = vpop.f32.mrb[51].mxu1  ;;  %v7227_v16 = vld [vmem:[%s10214_s4 + $0xa8] sm:$0xff] }
0x1ab3   :  { %v5129_v14 = vadd.f32 %v5128_v20, %v9701_v60  ;;  %v7226_v60 = vld [vmem:[%s10214_s4 + $0xa0] sm:$0xff]  ;;  %v9787_v37 = vpop.f32.mrb[60].mxu0 }
0x1ab4   :  { %5609 = vxpose.xlu0.b32.start.end [1/1] (short) (narrow) %v5134_v18, 16  ;;  %7976 = vmatprep.mubr.msk.f32.mxu1 %vm333_vm0, %v7226_v60  ;;  %v9789_v50 = vpop.f32.mrb[61].mxu0  ;;  %v7229_v60 = vld [vmem:[%s10214_s4 + $0xb8] sm:$0xff] }
0x1ab5   :  { %5391 = vxpose.xlu1.b32.start.end [1/1] (short) (narrow) %v5129_v14, 16  ;;  %7977 = vmatmul.mubr.msk.f32.vlgmr.msra.gmra.mrb[54].mxu1 %vm333_vm0, %v7227_v16 }
0x1ab6   :  { %7979 = vmatprep.mubr.msk.f32.mxu1 %vm333_vm0, %v7228_v40 }
0x1ab8   :  { %v7953_v27 = vpop.f32.mrb[52].mxu1 }
0x1ab9   :  { %v5138_v36 = vpop.f32.mrb[53].mxu1  ;;  %7980 = vmatmul.mubr.msk.f32.gmra.mrb[56].mxu1 %vm333_vm0, %v7229_v60 }
0x1aba   :  { %7991 = vmatprep.mubr.msk.f32.mxu1 %vm8487_vm5, %v8488_v63 }
0x1b34   :  { %v5625_v33 = vpop.trf.xlu0 }
0x1b35   :  { %v5407_v19 = vpop.trf.xlu1 }
0x1b36   :  { %7984 = vmatprep.mubr.msk.f32.mxu0 %vm620_vm1, %v5407_v19 }
0x1b38   :  { %v5626_v2 = vpop.trf.xlu0 }
0x1b39   :  { %v5408_v43 = vpop.trf.xlu1 }
0x1b3a   :  { %7985 = vmatmul.mubr.msk.f32.vlgmr.msra.gmra.mrb[62].mxu0 %vm620_vm1, %v5408_v43 }
0x1b3b   :  { %7995 = vmatpush3.msra.mxu0 %v9713_v59  ;;  %7996 = vmatprep.mubr.msk.f32.mxu0 %vm620_vm1, %v5625_v33 }
0x1b3c   :  { %8266 = vmatprep.subr.bf16.mxu0 %v8486_v62 }
0x1b3e   :  { %7997 = vmatmul.mubr.msk.f32.vlgmr.msra.gmra.mrb[64].mxu0 %vm620_vm1, %v5626_v2 }
0x1b3f   :  { %8003 = vmatprep.mubr.msk.f32.mxu0 %vm8487_vm5, %v8488_v63 }
0x1b88   :  { %v9812_v29 = vpop.f32.mrb[54].mxu1 }
0x1b89   :  { %v9814_v49 = vpop.f32.mrb[55].mxu1 }
0x1c0d   :  { %v7986_v7 = vpop.f32.mrb[62].mxu0 }
0x1c0e   :  { %v5505_v51 = vmul.f32 0.35355338, %v7986_v7  ;;  %v5495_v23 = vpop.f32.mrb[63].mxu0 }
0x1c0f   :  { %v5504_v58 = vmul.f32 0.35355338, %v5495_v23 }
0x1c10   :  { %v5507_v59 = vsel %vm8733_vm2, %v5505_v51, -1e+30 }
0x1c11   :  { %v5506_v55 = vsel %vm8737_vm4, %v5504_v58, -1e+30  ;;  %v7998_v0 = vpop.f32.mrb[64].mxu0  ;;  %v5511_v56 = vsel %vm333_vm0, %v5507_v59, -inf }
0x1c12   :  { %v5723_v1 = vmul.f32 0.35355338, %v7998_v0  ;;  %5512 = vmax.xlane.f32.xlu1 %v5511_v56  ;;  %v5713_v15 = vpop.f32.mrb[65].mxu0  ;;  %v5508_v8 = vsel %vm333_vm0, %v5506_v55, -inf }
0x1c13   :  { %v5722_v22 = vmul.f32 0.35355338, %v5713_v15  ;;  %5509 = vmax.xlane.f32.xlu0 %v5508_v8 }
0x1c14   :  { %v5725_v25 = vsel %vm8733_vm2, %v5723_v1, -1e+30 }
0x1c15   :  { %v5724_v41 = vsel %vm8737_vm4, %v5722_v22, -1e+30  ;;  %v5729_v42 = vsel %vm333_vm0, %v5725_v25, -inf }
0x1c16   :  { %5730 = vmax.xlane.f32.xlu1 %v5729_v42  ;;  %v5726_v17 = vsel %vm333_vm0, %v5724_v41, -inf }
0x1c17   :  { %5727 = vmax.xlane.f32.xlu0 %v5726_v17 }
0x1c27   :  { %5047 = vperm.xlu1 %8318, %v7233_v26  }
0x1c2b   :  { %5271 = vperm.xlu1 %8318, %v7239_v47  }
0x1c2d   :  { %5042 = vperm.xlu0 %8317, %v7232_v28  }
0x1c31   :  { %5266 = vperm.xlu0 %8317, %v7238_v39  }
0x1c9f   :  { %v5513_v13 = vpop.xlane.xlu1 %5512 }
0x1ca0   :  { %v5515_v38 = vsub.f32 %v5507_v59, %v5513_v13  ;;  %v5510_v11 = vpop.xlane.xlu0 %5509 }
0x1ca1   :  { %v5514_v31 = vsub.f32 %v5506_v55, %v5510_v11 }
0x1ca2   :  { %v5518_v24 = vmul.f32 1.442695, %v5515_v38 }
0x1ca3   :  { %v5516_v48 = vmul.f32 1.442695, %v5514_v31  ;;  %v5731_v53 = vpop.xlane.xlu1 %5730 }
0x1ca4   :  { %8423 = vpow2.f32 %v5518_v24  ;;  %v5733_v45 = vsub.f32 %v5725_v25, %v5731_v53  ;;  %v5728_v54 = vpop.xlane.xlu0 %5727 }
0x1ca5   :  { %8425 = vpow2.f32 %v5516_v48  ;;  %v5732_v4 = vsub.f32 %v5724_v41, %v5728_v54 }
0x1ca6   :  { %v5736_v61 = vmul.f32 1.442695, %v5733_v45 }
0x1ca7   :  { %v5734_v5 = vmul.f32 1.442695, %v5732_v4  ;;  %v5048_v16 = vpop.permute.xlu1 %5047 }
0x1ca8   :  { %8427 = vpow2.f32 %v5736_v61  ;;  %v5144_v19 = vadd.f32 %v7953_v27, %v5048_v16 }
0x1ca9   :  { %8429 = vpow2.f32 %v5734_v5 }
0x1cab   :  { %v5272_v7 = vpop.permute.xlu1 %5271 }
0x1cac   :  { %v5043_v33 = vpop.permute.xlu0 %5042 }
0x1cad   :  { %v5139_v43 = vadd.f32 %v5138_v36, %v5043_v33 }
0x1cae   :  { %v8424_v9 = vpop.eup %8423 }
0x1caf   :  { %v8426_v52 = vpop.eup %8425  ;;  %v5523_v32 = vsel %vm333_vm0, %v8424_v9, 0.0 }
0x1cb0   :  { %5524 = vadd.xlane.f32.xlu0 %v5523_v32  ;;  %v5520_v10 = vsel %vm333_vm0, %v8426_v52, 0.0  ;;  %v5267_v2 = vpop.permute.xlu0 %5266 }
0x1cb1   :  { %5521 = vadd.xlane.f32.xlu1 %v5520_v10  ;;  %v5363_v36 = vadd.f32 %v9814_v49, %v5267_v2 }
0x1cb2   :  { %v8428_v12 = vpop.eup %8427 }
0x1cb3   :  { %v8430_v18 = vpop.eup %8429  ;;  %v5741_v20 = vsel %vm333_vm0, %v8428_v12, 0.0 }
0x1cb4   :  { %v5738_v14 = vsel %vm333_vm0, %v8430_v18, 0.0 }
0x1cb5   :  { %5742 = vadd.xlane.f32.xlu1 %v5741_v20  ;;  %5739 = vadd.xlane.f32.xlu0 %v5738_v14 }
0x1cc6   :  { %5159 = vperm.xlu1 %8318, %v7236_v35  }
0x1ccb   :  { %5164 = vperm.xlu0 %8317, %v7237_v57  }
0x1ce9   :  { %6045 = vxpose.xlu0.b32.start.end [1/1] (short) (narrow) %v5144_v19, 16 }
0x1cef   :  { %5827 = vxpose.xlu1.b32.start.end [1/1] (short) (narrow) %v5139_v43, 16 }
0x1d3d   :  { %v5525_v51 = vpop.xlane.xlu0 %5524 }
0x1d3e   :  { %8431 = vrcp.f32 %v5525_v51  ;;  %v5522_v23 = vpop.xlane.xlu1 %5521 }
0x1d3f   :  { %8433 = vrcp.f32 %v5522_v23 }
0x1d42   :  { %v5743_v58 = vpop.xlane.xlu1 %5742  ;;  %v5740_v59 = vpop.xlane.xlu0 %5739 }
0x1d43   :  { %8435 = vrcp.f32 %v5743_v58 }
0x1d44   :  { %8437 = vrcp.f32 %v5740_v59 }
0x1d46   :  { %v5160_v15 = vpop.permute.xlu1 %5159 }
0x1d47   :  { %v5256_v25 = vadd.f32 %v9789_v50, %v5160_v15  ;;  %v5368_v50 = vadd.f32 %v9812_v29, %v5272_v7  ;;  %v9859_v29 = vpop.f32.mrb[56].mxu1  ;;  %v7241_v15 = vld [vmem:[%s10164_s9 + $0xb8] sm:$0xff] }
0x1d48   :  { %v8432_v55 = vpop.eup %8431 }
0x1d49   :  { %v8434_v0 = vpop.eup %8433  ;;  %v5529_v56 = vmul.f32 %v8432_v55, %v8424_v9 }
0x1d4a   :  { %v5528_v1 = vmul.f32 %v8434_v0, %v8426_v52  ;;  %v5165_v26 = vpop.permute.xlu0 %5164 }
0x1d4b   :  { %v5261_v27 = vadd.f32 %v9787_v37, %v5165_v26  ;;  %v7290_v26 = vld [vmem:[%s10174_s19 + $0x20] sm:$0xff] }
0x1d4c   :  { %v8263_v8 = vpack.c.bf16 %v5529_v56, %v5528_v1 }
0x1d4d   :  { %v8436_v22 = vpop.eup %8435 }
0x1d4e   :  { %v8438_v41 = vpop.eup %8437  ;;  %v5747_v42 = vmul.f32 %v8436_v22, %v8428_v12  ;;  %8265 = vmatpush3.bf16.xpose.msk.msra.mxu1 %vm9141_vm7, %v8263_v8  ;;  %v7258_v8 = vld [vmem:[%s10166_s11 + $0x20] sm:$0xff]  ;;  %v7240_v22 = vld [vmem:[%s10164_s9 + $0xb0] sm:$0xff] }
0x1d4f   :  { %v5746_v17 = vmul.f32 %v8438_v41, %v8430_v18  ;;  %8006 = vmatprep.subr.mxu1 %v5256_v25  ;;  %v7259_v41 = vld [vmem:[%s10166_s11 + $0x28] sm:$0xff] }
0x1d51   :  { %v8267_v47 = vpack.c.bf16 %v5747_v42, %v5746_v17  ;;  %v7286_v42 = vld [vmem:[%s10173_s18 + $0x20] sm:$0xff]  ;;  %v7261_v17 = vld [vmem:[%s10166_s11 + $0x38] sm:$0xff] }
0x1d53   :  { %8269 = vmatpush3.bf16.xpose.msk.msra.mxu0 %vm9141_vm7, %v8267_v47  ;;  %v7287_v47 = vld [vmem:[%s10173_s18 + $0x28] sm:$0xff] }
0x1d54   :  { %8018 = vmatprep.subr.mxu0 %v5261_v27 }
0x1d55   :  { %7992 = vmatmul.mubr.msk.f32.vlgmr.msra.gmra.mrb[58].mxu1 %vm333_vm0, %v5363_v36  ;;  %v7291_v36 = vld [vmem:[%s10174_s19 + $0x28] sm:$0xff] }
0x1d56   :  { %8007 = vmatpush3.msra.mxu1 %v5256_v25  ;;  %v7260_v25 = vld [vmem:[%s10166_s11 + $0x30] sm:$0xff] }
0x1d57   :  { %8270 = vmatprep.subr.bf16.mxu1 %v8486_v62 }
0x1d5a   :  { %8004 = vmatmul.mubr.msk.f32.vlgmr.msra.gmra.mrb[66].mxu0 %vm333_vm0, %v5368_v50  ;;  %v7292_v50 = vld [vmem:[%s10174_s19 + $0x30] sm:$0xff] }
0x1d5b   :  { %8019 = vmatpush3.msra.mxu0 %v5261_v27  ;;  %v7288_v27 = vld [vmem:[%s10173_s18 + $0x30] sm:$0xff] }
0x1d5c   :  { %8274 = vmatprep.subr.bf16.mxu0 %v8486_v62  ;;  %v9861_v62 = vpop.f32.mrb[57].mxu1 }
0x1d69   :  { %v6061_v28 = vpop.trf.xlu0 }
0x1d6a   :  { %8020 = vmatprep.mubr.msk.f32.mxu0 %vm620_vm1, %v6061_v28  ;;  %v7289_v28 = vld [vmem:[%s10173_s18 + $0x38] sm:$0xff] }
0x1d6d   :  { %v6062_v37 = vpop.trf.xlu0 }
0x1d6e   :  { %8021 = vmatmul.mubr.msk.f32.vlgmr.msra.gmra.mrb[68].mxu0 %vm620_vm1, %v6062_v37  ;;  %v7302_v37 = vld [vmem:[%s10168_s13 + $0x40] sm:$0xff] }
0x1d6f   :  { %v5843_v49 = vpop.trf.xlu1  ;;  %8027 = vmatprep.mubr.msk.f32.mxu0 %vm8487_vm5, %v8488_v63 }
0x1d70   :  { %8008 = vmatprep.mubr.msk.f32.mxu1 %vm620_vm1, %v5843_v49  ;;  %v7293_v49 = vld [vmem:[%s10174_s19 + $0x38] sm:$0xff] }
0x1d73   :  { %v5844_v39 = vpop.trf.xlu1 }
0x1d74   :  { %8009 = vmatmul.mubr.msk.f32.vlgmr.msra.gmra.mrb[60].mxu1 %vm620_vm1, %v5844_v39  ;;  %v7304_v39 = vld [vmem:[%s10168_s13 + $0x50] sm:$0xff] }
0x1d75   :  { %8015 = vmatprep.mubr.msk.f32.mxu1 %vm8487_vm5, %v8488_v63 }
0x1e28   :  { %v5605_v13 = vpop.f32.mrb[58].mxu1 }
0x1e29   :  { %v7993_v38 = vpop.f32.mrb[59].mxu1 }
0x1e2a   :  { %v7306_v38 = vld [vmem:[%s10168_s13 + $0x60] sm:$0xff] }
0x1e2d   :  { %v5823_v11 = vpop.f32.mrb[66].mxu0 }
0x1e2e   :  { %v9863_v31 = vpack.c.bf16 %v5823_v11, %v5605_v13  ;;  %v8005_v24 = vpop.f32.mrb[67].mxu0  ;;  %v7303_v13 = vld [vmem:[%s10168_s13 + $0x48] sm:$0xff]  ;;  %v7305_v11 = vld [vmem:[%s10168_s13 + $0x58] sm:$0xff] }
0x1e2f   :  { %v7308_v24 = vld [vmem:[%s10168_s13 + $0x70] sm:$0xff] }
0x1e41   :  { %v8022_v48 = vpop.f32.mrb[68].mxu0 }
0x1e42   :  { %v6149_v53 = vpop.f32.mrb[69].mxu0  ;;  %v6159_v45 = vmul.f32 0.35355338, %v8022_v48  ;;  %v7307_v48 = vld [vmem:[%s10168_s13 + $0x68] sm:$0xff] }
0x1e43   :  { %v6158_v4 = vmul.f32 0.35355338, %v6149_v53  ;;  %v7322_v53 = vld [vmem:[%s10170_s15 + $0x20] sm:$0xff] }
0x1e44   :  { %v6161_v52 = vsel %vm8733_vm2, %v6159_v45, -1e+30  ;;  %v7309_v45 = vld [vmem:[%s10168_s13 + $0x78] sm:$0xff] }
0x1e45   :  { %v6160_v12 = vsel %vm8737_vm4, %v6158_v4, -1e+30  ;;  %v6165_v20 = vsel %vm333_vm0, %v6161_v52, -inf  ;;  %v7323_v4 = vld [vmem:[%s10170_s15 + $0x28] sm:$0xff] }
0x1e46   :  { %v6162_v14 = vsel %vm333_vm0, %v6160_v12, -inf }
0x1e47   :  { %v8010_v54 = vpop.f32.mrb[60].mxu1 }
0x1e48   :  { %v5941_v61 = vmul.f32 0.35355338, %v8010_v54  ;;  %v5931_v5 = vpop.f32.mrb[61].mxu1  ;;  %v7324_v54 = vld [vmem:[%s10170_s15 + $0x30] sm:$0xff] }
0x1e49   :  { %v5940_v9 = vmul.f32 0.35355338, %v5931_v5  ;;  %v7325_v5 = vld [vmem:[%s10170_s15 + $0x38] sm:$0xff] }
0x1e4a   :  { %v5943_v63 = vsel %vm8733_vm2, %v5941_v61, -1e+30  ;;  %v7330_v61 = vld [vmem:[%s10175_s20 + $0x20] sm:$0xff] }
0x1e4b   :  { %v5942_v32 = vsel %vm8737_vm4, %v5940_v9, -1e+30  ;;  %v5947_v10 = vsel %vm333_vm0, %v5943_v63, -inf  ;;  %v7332_v9 = vld [vmem:[%s10175_s20 + $0x30] sm:$0xff] }
0x1e4c   :  { %5948 = vmax.xlane.f32.xlu1 %v5947_v10  ;;  %v5944_v18 = vsel %vm333_vm0, %v5942_v32, -inf  ;;  %v7336_v10 = vld [vmem:[%s10176_s21 + $0x30] sm:$0xff] }
0x1e4d   :  { %5945 = vmax.xlane.f32.xlu0 %v5944_v18  ;;  %v6910_v18 = vld [vmem:[%s10177_s22] sm:$0xff] }
0x1e50   :  { %6166 = vmax.xlane.f32.xlu1 %v6165_v20  ;;  %v7337_v20 = vld [vmem:[%s10176_s21 + $0x38] sm:$0xff] }
0x1e51   :  { %6163 = vmax.xlane.f32.xlu0 %v6162_v14  ;;  %v6912_v14 = vld [vmem:[%s10177_s22 + $0x10] sm:$0xff] }
0x1ed9   :  { %v5949_v3 = vpop.xlane.xlu1 %5948 }
0x1eda   :  { %v5951_v35 = vsub.f32 %v5943_v63, %v5949_v3  ;;  %v5946_v57 = vpop.xlane.xlu0 %5945  ;;  %v7331_v63 = vld [vmem:[%s10175_s20 + $0x28] sm:$0xff] }
0x1edb   :  { %v5950_v40 = vsub.f32 %v5942_v32, %v5946_v57  ;;  %v7333_v32 = vld [vmem:[%s10175_s20 + $0x38] sm:$0xff]  ;;  %v6911_v3 = vld [vmem:[%s10177_s22 + $0x8] sm:$0xff] }
0x1edc   :  { %v5954_v60 = vmul.f32 1.442695, %v5951_v35  ;;  %v6914_v35 = vld [vmem:[%s10178_s23] sm:$0xff]  ;;  %v6913_v57 = vld [vmem:[%s10177_s22 + $0x18] sm:$0xff] }
0x1edd   :  { %v5952_v16 = vmul.f32 1.442695, %v5950_v40  ;;  %v6167_v19 = vpop.xlane.xlu1 %6166  ;;  %v6916_v40 = vld [vmem:[%s10178_s23 + $0x10] sm:$0xff] }
0x1ede   :  { %8439 = vpow2.f32 %v5954_v60  ;;  %v6169_v6 = vsub.f32 %v6161_v52, %v6167_v19  ;;  %v6164_v33 = vpop.xlane.xlu0 %6163  ;;  %v7334_v52 = vld [vmem:[%s10176_s21 + $0x20] sm:$0xff]  ;;  %v6915_v60 = vld [vmem:[%s10178_s23 + $0x8] sm:$0xff] }
0x1edf   :  { %8441 = vpow2.f32 %v5952_v16  ;;  %v6168_v43 = vsub.f32 %v6160_v12, %v6164_v33  ;;  %v7335_v12 = vld [vmem:[%s10176_s21 + $0x28] sm:$0xff]  ;;  %v6917_v16 = vld [vmem:[%s10178_s23 + $0x18] sm:$0xff] }
0x1ee0   :  { %v6172_v2 = vmul.f32 1.442695, %v6169_v6 }
0x1ee1   :  { %v6170_v7 = vmul.f32 1.442695, %v6168_v43 }
0x1ee2   :  { %8443 = vpow2.f32 %v6172_v2 }
0x1ee3   :  { %8445 = vpow2.f32 %v6170_v7 }
0x1ee8   :  { %v9877_v51 = vpop.eup %8439 }
0x1ee9   :  { %v9879_v23 = vpop.eup %8441  ;;  %v5959_v58 = vsel %vm333_vm0, %v9877_v51, 0.0 }
0x1eea   :  { %5960 = vadd.xlane.f32.xlu1 %v5959_v58  ;;  %v5956_v59 = vsel %vm333_vm0, %v9879_v23, 0.0 }
0x1eeb   :  { %5957 = vadd.xlane.f32.xlu0 %v5956_v59 }
0x1eec   :  { %v9885_v55 = vpop.eup %8443 }
0x1eed   :  { %v9887_v0 = vpop.eup %8445  ;;  %v6177_v56 = vsel %vm333_vm0, %v9885_v55, 0.0 }
0x1eee   :  { %6178 = vadd.xlane.f32.xlu1 %v6177_v56  ;;  %v6174_v1 = vsel %vm333_vm0, %v9887_v0, 0.0 }
0x1eef   :  { %6175 = vadd.xlane.f32.xlu0 %v6174_v1 }
0x1eff   :  { %5281 = vperm.xlu1 %8318, %v7241_v15  }
0x1f03   :  { %6265 = vperm.xlu1 %8318, %v7258_v8  }
0x1f05   :  { %5276 = vperm.xlu0 %8317, %v7240_v22  }
0x1f07   :  { %6275 = vperm.xlu1 %8318, %v7260_v25  }
0x1f09   :  { %6270 = vperm.xlu0 %8317, %v7259_v41  }
0x1f0b   :  { %6438 = vperm.xlu1 %8318, %v7286_v42  }
0x1f0d   :  { %6280 = vperm.xlu0 %8317, %v7261_v17  }
0x1f0f   :  { %6462 = vperm.xlu1 %8318, %v7290_v26  }
0x1f11   :  { %6443 = vperm.xlu0 %8317, %v7287_v47   ;;  %v7257_v47 = vld [vmem:[%s10165_s10 + $0x38] sm:$0xff] }
0x1f13   :  { %6448 = vperm.xlu1 %8318, %v7288_v27   ;;  %v7294_v27 = vld [vmem:[%s10167_s12 + $0x40] sm:$0xff] }
0x1f15   :  { %6467 = vperm.xlu0 %8317, %v7291_v36  }
0x1f17   :  { %6472 = vperm.xlu1 %8318, %v7292_v50  }
0x1f19   :  { %6453 = vperm.xlu0 %8317, %v7289_v28  }
0x1f1b   :  { %6504 = vperm.xlu1 %8318, %v7302_v37  }
0x1f1d   :  { %6477 = vperm.xlu0 %8317, %v7293_v49  }
0x1f1f   :  { %6514 = vperm.xlu1 %8318, %v7304_v39  }
0x1f21   :  { %6509 = vperm.xlu0 %8317, %v7303_v13  }
0x1f23   :  { %6524 = vperm.xlu1 %8318, %v7306_v38  }
0x1f25   :  { %6519 = vperm.xlu0 %8317, %v7305_v11  }
0x1f27   :  { %6534 = vperm.xlu1 %8318, %v7308_v24  }
0x1f29   :  { %6529 = vperm.xlu0 %8317, %v7307_v48  }
0x1f2b   :  { %6691 = vperm.xlu1 %8318, %v7322_v53  }
0x1f2d   :  { %6539 = vperm.xlu0 %8317, %v7309_v45  }
0x1f2f   :  { %6701 = vperm.xlu1 %8318, %v7324_v54  }
0x1f31   :  { %6696 = vperm.xlu0 %8317, %v7323_v4  }
0x1f33   :  { %6864 = vperm.xlu1 %8318, %v7330_v61  }
0x1f35   :  { %6706 = vperm.xlu0 %8317, %v7325_v5  }
0x1f37   :  { %6874 = vperm.xlu1 %8318, %v7332_v9  }
0x1f39   :  { %6869 = vperm.xlu0 %8317, %v7331_v63  }
0x1f3b   :  { %6888 = vperm.xlu1 %8318, %v7334_v52  }
0x1f3d   :  { %6879 = vperm.xlu0 %8317, %v7333_v32  }
0x1f3f   :  { %6898 = vperm.xlu1 %8318, %v7336_v10  }
0x1f41   :  { %6893 = vperm.xlu0 %8317, %v7335_v12  }
0x1f43   :  { %6962 = vperm.xlu1 %8318, %v6910_v18  }
0x1f45   :  { %6903 = vperm.xlu0 %8317, %v7337_v20  }
0x1f47   :  { %6972 = vperm.xlu1 %8318, %v6912_v14  }
0x1f49   :  { %6967 = vperm.xlu0 %8317, %v6911_v3  }
0x1f4b   :  { %6986 = vperm.xlu1 %8318, %v6914_v35  }
0x1f4d   :  { %6977 = vperm.xlu0 %8317, %v6913_v57  }
0x1f4f   :  { %6996 = vperm.xlu1 %8318, %v6916_v40  }
0x1f51   :  { %6991 = vperm.xlu0 %8317, %v6915_v60  }
0x1f55   :  { %7001 = vperm.xlu0 %8317, %v6917_v16  }
0x1f77   :  { %v5961_v19 = vpop.xlane.xlu1 %5960 }
0x1f78   :  { %8447 = vrcp.f32 %v5961_v19  ;;  %v5958_v6 = vpop.xlane.xlu0 %5957 }
0x1f79   :  { %8449 = vrcp.f32 %v5958_v6 }
0x1f7b   :  { %v6179_v33 = vpop.xlane.xlu1 %6178 }
0x1f7c   :  { %8451 = vrcp.f32 %v6179_v33  ;;  %v6176_v43 = vpop.xlane.xlu0 %6175 }
0x1f7d   :  { %8453 = vrcp.f32 %v6176_v43 }
0x1f82   :  { %v8448_v2 = vpop.eup %8447 }
0x1f83   :  { %v8450_v7 = vpop.eup %8449  ;;  %v5965_v58 = vmul.f32 %v8448_v2, %v9877_v51 }
0x1f84   :  { %v5964_v59 = vmul.f32 %v8450_v7, %v9879_v23  ;;  %v5277_v25 = vpop.permute.xlu0 %5276  ;;  %v5282_v23 = vpop.permute.xlu1 %5281 }
0x1f85   :  { %v5373_v51 = vadd.f32 %v9861_v62, %v5277_v25 }
0x1f86   :  { %v8452_v56 = vpop.eup %8451  ;;  %v8271_v1 = vpack.c.bf16 %v5965_v58, %v5964_v59 }
0x1f87   :  { %v8454_v15 = vpop.eup %8453  ;;  %v6183_v8 = vmul.f32 %v8452_v56, %v9885_v55  ;;  %v5378_v55 = vadd.f32 %v9859_v29, %v5282_v23  ;;  %v7256_v29 = vld [vmem:[%s10165_s10 + $0x30] sm:$0xff] }
0x1f88   :  { %v6182_v22 = vmul.f32 %v8454_v15, %v9887_v0  ;;  %8273 = vmatpush3.bf16.xpose.msk.msra.mxu1 %vm9141_vm7, %v8271_v1  ;;  %v7254_v0 = vld [vmem:[%s10165_s10 + $0x20] sm:$0xff]  ;;  %v6271_v36 = vpop.permute.xlu0 %6270  ;;  %v6266_v50 = vpop.permute.xlu1 %6265 }
0x1f89   :  { %8279 = vmatprep.subr.bf16.mxu1 %v9863_v31 }
0x1f8a   :  { %v8275_v41 = vpack.c.bf16 %v6183_v8, %v6182_v22 }
0x1f8c   :  { %8277 = vmatpush3.bf16.xpose.msk.msra.mxu0 %vm9141_vm7, %v8275_v41  ;;  %v6281_v38 = vpop.permute.xlu0 %6280  ;;  %v6276_v48 = vpop.permute.xlu1 %6275 }
0x1f8f   :  { %8016 = vmatmul.mubr.msk.f32.vlgmr.msra.gmra.mrb[62].mxu1 %vm333_vm0, %v5373_v51 }
0x1f90   :  { %8281 = vmatpush3.bf16.msra.mxu1 %v9863_v31  ;;  %8038 = vmatprep.mubr.msk.f32.mxu1 %vm333_vm0, %v7254_v0  ;;  %v7255_v31 = vld [vmem:[%s10165_s10 + $0x28] sm:$0xff]  ;;  %v6439_v51 = vpop.permute.xlu1 %6438  ;;  %v6444_v23 = vpop.permute.xlu0 %6443 }
0x1f93   :  { %8028 = vmatmul.mubr.msk.f32.vlgmr.msra.gmra.mrb[70].mxu0 %vm333_vm0, %v5378_v55 }
0x1f94   :  { %8052 = vmatprep.mubr.msk.f32.mxu0 %vm333_vm0, %v7294_v27 }
0x2062   :  { %v6041_v42 = vpop.f32.mrb[62].mxu1 }
0x2063   :  { %v8017_v44 = vpop.f32.mrb[63].mxu1 }
0x2064   :  { %v6468_v44 = vpop.permute.xlu0 %6467 }
0x2066   :  { %v6259_v17 = vpop.f32.mrb[70].mxu0 }
0x2067   :  { %v8282_v26 = vpack.c.bf16 %v6259_v17, %v6041_v42  ;;  %v8029_v62 = vpop.f32.mrb[71].mxu0  ;;  %v6463_v42 = vpop.permute.xlu1 %6462 }
0x2069   :  { %8283 = vmatprep.subr.bf16.mxu1 %v8282_v26 }
0x206a   :  { %8285 = vmatpush3.bf16.msra.mxu1 %v8282_v26  ;;  %v6454_v26 = vpop.permute.xlu0 %6453 }
0x206b   :  { %v6449_v17 = vpop.permute.xlu1 %6448 }
0x206d   :  { %8039 = vmatmul.mubr.msk.f32.vlgmr.msra.gmra.mrb[64].mxu1 %vm333_vm0, %v7255_v31 }
0x206e   :  { %8041 = vmatprep.mubr.msk.f32.mxu1 %vm333_vm0, %v7256_v29 }
0x2071   :  { %8042 = vmatmul.mubr.msk.f32.gmra.mrb[66].mxu1 %vm333_vm0, %v7257_v47 }
0x2140   :  { %v8040_v28 = vpop.f32.mrb[64].mxu1 }
0x2141   :  { %v6367_v37 = vadd.f32 %v8040_v28, %v6271_v36  ;;  %v6361_v49 = vpop.f32.mrb[65].mxu1 }
0x2142   :  { %v6362_v39 = vadd.f32 %v6361_v49, %v6266_v50  ;;  %v6473_v49 = vpop.permute.xlu1 %6472 }
0x2143   :  { %v6381_v13 = vadd.f32 %v6367_v37, %v9728_v21 }
0x2144   :  { %v6380_v11 = vadd.f32 %v6362_v39, %v9725_v46  ;;  %v8043_v24 = vpop.f32.mrb[66].mxu1  ;;  %v6478_v39 = vpop.permute.xlu0 %6477 }
0x2145   :  { %v6395_v53 = vsel %vm706_vm3, %v6381_v13, 0.0  ;;  %v6377_v45 = vadd.f32 %v8043_v24, %v6281_v38  ;;  %v6371_v54 = vpop.f32.mrb[67].mxu1 }
0x2146   :  { %v6394_v4 = vsel %vm706_vm3, %v6380_v11, 0.0  ;;  %v6372_v61 = vadd.f32 %v6371_v54, %v6276_v48  ;;  %v7296_v54 = vld [vmem:[%s10167_s12 + $0x50] sm:$0xff] }
0x2147   :  { %v6396_v5 = vadd.f32 %v6395_v53, %v6394_v4  ;;  %v6383_v9 = vadd.f32 %v6377_v45, %v9734_v30  ;;  %v7295_v45 = vld [vmem:[%s10167_s12 + $0x48] sm:$0xff]  ;;  %v7297_v4 = vld [vmem:[%s10167_s12 + $0x58] sm:$0xff] }
0x2148   :  { %v6382_v63 = vadd.f32 %v6372_v61, %v9731_v34  ;;  %v7298_v61 = vld [vmem:[%s10167_s12 + $0x60] sm:$0xff] }
0x2149   :  { %v6399_v32 = vsel %vm706_vm3, %v6383_v9, 0.0 }
0x214a   :  { %v6397_v52 = vsel %vm706_vm3, %v6382_v63, 0.0 }
0x214b   :  { %v6398_v21 = vadd.f32 %v6397_v52, %v6396_v5  ;;  %v7299_v5 = vld [vmem:[%s10167_s12 + $0x68] sm:$0xff]  ;;  %v7318_v52 = vld [vmem:[%s10217_s2 + $0x20] sm:$0xff] }
0x214c   :  { %8080 = vmatprep.mubr.msk.f32.mxu1 %vm3381_vm8, %v7318_v52 }
0x214d   :  { %v6400_v46 = vadd.f32 %v6399_v32, %v6398_v21  ;;  %v6510_v21 = vpop.permute.xlu0 %6509  ;;  %v6505_v32 = vpop.permute.xlu1 %6504 }
0x214f   :  { %v6401_v10 = vrot.slane %v6400_v46, 4 }
0x2151   :  { %v6402_v12 = vadd.f32 %v6401_v10, %v6400_v46  ;;  %v6520_v46 = vpop.permute.xlu0 %6519 }
0x2153   :  { %v6403_v18 = vrot.slane %v6402_v12, 2 }
0x2155   :  { %v6404_v20 = vadd.f32 %v6403_v18, %v6402_v12  ;;  %v6515_v12 = vpop.permute.xlu1 %6514 }
0x2157   :  { %v6405_v14 = vrot.slane %v6404_v20, 1 }
0x2159   :  { %v6406_v3 = vadd.f32 %v6405_v14, %v6404_v20 }
0x215b   :  { %v6407_v35 = vmul.f32 0.03125, %v6406_v3 }
0x215d   :  { %v6408_v57 = vsub.f32 %v6380_v11, %v6407_v35  ;;  %v6409_v40 = vsub.f32 %v6381_v13, %v6407_v35  ;;  %v6410_v60 = vsub.f32 %v6382_v63, %v6407_v35  ;;  %v6411_v16 = vsub.f32 %v6383_v9, %v6407_v35  ;;  %v7300_v9 = vld [vmem:[%s10167_s12 + $0x70] sm:$0xff]  ;;  %v7301_v63 = vld [vmem:[%s10167_s12 + $0x78] sm:$0xff] }
0x215f   :  { %v6412_v30 = vmul.f32 %v6408_v57, %v6408_v57  ;;  %v6413_v19 = vmul.f32 %v6409_v40, %v6409_v40  ;;  %v6414_v34 = vmul.f32 %v6410_v60, %v6410_v60  ;;  %v6415_v6 = vmul.f32 %v6411_v16, %v6411_v16 }
0x2161   :  { %v6416_v33 = vsel %vm706_vm3, %v6412_v30, 0.0  ;;  %v6417_v43 = vsel %vm706_vm3, %v6413_v19, 0.0  ;;  %v6419_v7 = vsel %vm706_vm3, %v6414_v34, 0.0  ;;  %v6421_v59 = vsel %vm706_vm3, %v6415_v6, 0.0  ;;  %v6525_v34 = vpop.permute.xlu1 %6524 }
0x2162   :  { %v6418_v2 = vadd.f32 %v6417_v43, %v6416_v33 }
0x2164   :  { %v6420_v58 = vadd.f32 %v6419_v7, %v6418_v2 }
0x2166   :  { %v6422_v56 = vadd.f32 %v6421_v59, %v6420_v58 }
0x2168   :  { %v6423_v1 = vrot.slane %v6422_v56, 4 }
0x216a   :  { %v6424_v15 = vadd.f32 %v6423_v1, %v6422_v56 }
0x216c   :  { %v6425_v8 = vrot.slane %v6424_v15, 2 }
0x216e   :  { %v6426_v22 = vadd.f32 %v6425_v8, %v6424_v15 }
0x2170   :  { %v6427_v25 = vrot.slane %v6426_v22, 1 }
0x2172   :  { %v6428_v41 = vadd.f32 %v6427_v25, %v6426_v22  ;;  %v6535_v22 = vpop.permute.xlu1 %6534 }
0x2174   :  { %v6429_v55 = vmul.f32 0.03125, %v6428_v41 }
0x2176   :  { %v6430_v0 = vadd.f32 1e-05, %v6429_v55 }
0x2178   :  { %8455 = vrsqrt.f32 %v6430_v0 }
0x2182   :  { %v8456_v62 = vpop.eup %8455 }
0x2183   :  { %v6434_v31 = vmul.f32 %v8456_v62, %v6410_v60  ;;  %v6432_v29 = vmul.f32 %v8456_v62, %v6408_v57  ;;  %v6433_v47 = vmul.f32 %v8456_v62, %v6409_v40  ;;  %v6435_v27 = vmul.f32 %v8456_v62, %v6411_v16  ;;  %v6530_v16 = vpop.permute.xlu0 %6529 }
0x2185   :  { %v6456_v36 = vmul.f32 %v6439_v51, %v6432_v29  ;;  %v6457_v50 = vmul.f32 %v6444_v23, %v6433_v47  ;;  %v6458_v28 = vmul.f32 %v6449_v17, %v6434_v31  ;;  %v6459_v37 = vmul.f32 %v6454_v26, %v6435_v27  ;;  %v7320_v17 = vld [vmem:[%s10217_s2 + $0x30] sm:$0xff]  ;;  %v7321_v26 = vld [vmem:[%s10217_s2 + $0x38] sm:$0xff]  ;;  %v6692_v31 = vpop.permute.xlu1 %6691 }
0x2187   :  { %v10065_v13 = vadd.f32 %v6463_v42, %v6456_v36  ;;  %v10067_v38 = vadd.f32 %v6468_v44, %v6457_v50  ;;  %v10069_v11 = vadd.f32 %v6473_v49, %v6458_v28  ;;  %v10071_v24 = vadd.f32 %v6478_v39, %v6459_v37  ;;  %v6540_v1 = vpop.permute.xlu0 %6539  ;;  %v7319_v44 = vld [vmem:[%s10217_s2 + $0x28] sm:$0xff]  ;;  %s8489_s2 = smov [#allocation2]  }
0x2188   :  { %s7047_s19 = sshll.u32 %s8489_s2, 4  ;;  %s7048_s19 = int_to_ptr.vmem [resolvable:$true] %s7047_s19 }
0x2189   :  { %v8286_v48 = vpack.c.bf16 %v10067_v38, %v10065_v13  ;;  %v8290_v53 = vpack.c.bf16 %v10071_v24, %v10069_v11  ;;  %v6702_v39 = vpop.permute.xlu1 %6701  ;;  %s8461_s4 = scalar_lea.vmem %s7048_s19, 256  ;;  %p8466_p1 = scmp.lt.s32.totalorder %s7048_s19, %s7048_s19 }
0x218a   :  { %p8462_p0 = scmp.ne.s32.totalorder %s7048_s19, %s8461_s4  ;;  %p8467_p2 = scmp.lt.s32.totalorder %s8461_s4, %s8461_s4 }
0x218b   :  { %8287 = vmatprep.subr.bf16.mxu0 %v8286_v48  ;;  %v6697_v62 = vpop.permute.xlu0 %6696 }
0x218c   :  { %8289 = vmatpush3.bf16.msra.mxu0 %v8286_v48  ;;  %p8468_p3 = por %p8467_p2, %p8466_p1 }
0x218d   :  { %8291 = vmatprep.subr.bf16.mxu0 %v8290_v53 }
0x218e   :  { %p8469_p4 = pnand %p8468_p3, %p8462_p0 }
0x218f   :  { %v6707_v28 = vpop.permute.xlu0 %6706 }
0x2190   :  { %8293 = vmatpush3.bf16.msra.mxu0 %v8290_v53 }
0x2193   :  { %8053 = vmatmul.mubr.msk.f32.vlgmr.msra.gmra.mrb[72].mxu0 %vm333_vm0, %v7295_v45 }
0x2194   :  { %8055 = vmatprep.mubr.msk.f32.mxu0 %vm333_vm0, %v7296_v54 }
0x2197   :  { %8056 = vmatmul.mubr.msk.f32.gmra.mrb[74].mxu0 %vm333_vm0, %v7297_v4 }
0x2198   :  { %8058 = vmatprep.mubr.msk.f32.mxu0 %vm333_vm0, %v7298_v61 }
0x219b   :  { %8059 = vmatmul.mubr.msk.f32.gmra.mrb[76].mxu0 %vm333_vm0, %v7299_v5 }
0x219c   :  { %8061 = vmatprep.mubr.msk.f32.mxu0 %vm333_vm0, %v7300_v9 }
0x219f   :  { %8062 = vmatmul.mubr.msk.f32.gmra.mrb[78].mxu0 %vm333_vm0, %v7301_v63 }
0x2266   :  { %v8054_v10 = vpop.f32.mrb[72].mxu0 }
0x2267   :  { %v6638_v18 = vadd.f32 %v8054_v10, %v6510_v21  ;;  %v6632_v20 = vpop.f32.mrb[73].mxu0 }
0x2268   :  { %v6633_v14 = vadd.f32 %v6632_v20, %v6505_v32 }
0x2269   :  { %v6672_v3 = vmax.f32 %v6638_v18, 0.0 }
0x226a   :  { %v6671_v35 = vmax.f32 %v6633_v14, 0.0  ;;  %v8057_v57 = vpop.f32.mrb[74].mxu0 }
0x226b   :  { %v6648_v40 = vadd.f32 %v8057_v57, %v6520_v46  ;;  %v6642_v60 = vpop.f32.mrb[75].mxu0 }
0x226c   :  { %v8294_v30 = vpack.c.bf16 %v6672_v3, %v6671_v35  ;;  %v6643_v19 = vadd.f32 %v6642_v60, %v6515_v12 }
0x226d   :  { %v6674_v6 = vmax.f32 %v6648_v40, 0.0 }
0x226e   :  { %v6673_v33 = vmax.f32 %v6643_v19, 0.0  ;;  %v8060_v43 = vpop.f32.mrb[76].mxu0  ;;  %8295 = vmatprep.subr.bf16.mxu1 %v8294_v30 }
0x226f   :  { %v6658_v2 = vadd.f32 %v8060_v43, %v6530_v16  ;;  %v6652_v7 = vpop.f32.mrb[77].mxu0  ;;  %8297 = vmatpush3.bf16.msra.mxu1 %v8294_v30 }
0x2270   :  { %v8298_v58 = vpack.c.bf16 %v6674_v6, %v6673_v33  ;;  %v6653_v59 = vadd.f32 %v6652_v7, %v6525_v34 }
0x2271   :  { %v6676_v56 = vmax.f32 %v6658_v2, 0.0 }
0x2272   :  { %v6675_v15 = vmax.f32 %v6653_v59, 0.0  ;;  %v8063_v8 = vpop.f32.mrb[78].mxu0  ;;  %8299 = vmatprep.subr.bf16.mxu1 %v8298_v58 }
0x2273   :  { %v6668_v25 = vadd.f32 %v8063_v8, %v6540_v1  ;;  %v6662_v41 = vpop.f32.mrb[79].mxu0  ;;  %8301 = vmatpush3.bf16.msra.mxu1 %v8298_v58 }
0x2274   :  { %v8302_v51 = vpack.c.bf16 %v6676_v56, %v6675_v15  ;;  %v6663_v23 = vadd.f32 %v6662_v41, %v6535_v22  ;;  %v6865_v15 = vpop.permute.xlu1 %6864  ;;  %v6870_v22 = vpop.permute.xlu0 %6869 }
0x2275   :  { %v6678_v55 = vmax.f32 %v6668_v25, 0.0 }
0x2276   :  { %v6677_v0 = vmax.f32 %v6663_v23, 0.0  ;;  %8303 = vmatprep.subr.bf16.mxu1 %v8302_v51 }
0x2277   :  { %8305 = vmatpush3.bf16.msra.mxu1 %v8302_v51 }
0x2278   :  { %v8306_v42 = vpack.c.bf16 %v6678_v55, %v6677_v0  ;;  %v6875_v41 = vpop.permute.xlu1 %6874  ;;  %v6880_v51 = vpop.permute.xlu0 %6879 }
0x227a   :  { %8307 = vmatprep.subr.bf16.mxu1 %v8306_v42 }
0x227b   :  { %8309 = vmatpush3.bf16.msra.mxu1 %v8306_v42 }
0x227c   :  { %v6889_v23 = vpop.permute.xlu1 %6888  ;;  %v6894_v0 = vpop.permute.xlu0 %6893 }
0x227e   :  { %8081 = vmatmul.mubr.msk.f32.vlgmr.msra.gmra.mrb[68].mxu1 %vm3381_vm8, %v7319_v44 }
0x227f   :  { %8083 = vmatprep.mubr.msk.f32.mxu1 %vm3381_vm8, %v7320_v17 }
0x2282   :  { %8084 = vmatmul.mubr.msk.f32.gmra.mrb[70].mxu1 %vm3381_vm8, %v7321_v26 }
0x2351   :  { %v8082_v29 = vpop.f32.mrb[68].mxu1 }
0x2352   :  { %v6793_v47 = vadd.f32 %v8082_v29, %v6697_v62  ;;  %v6787_v27 = vpop.f32.mrb[69].mxu1 }
0x2353   :  { %v6788_v36 = vadd.f32 %v6787_v27, %v6692_v31  ;;  %v6899_v27 = vpop.permute.xlu1 %6898 }
0x2354   :  { %v6807_v50 = vadd.f32 %v6793_v47, %v10067_v38 }
0x2355   :  { %v6806_v37 = vadd.f32 %v6788_v36, %v10065_v13  ;;  %v8085_v49 = vpop.f32.mrb[70].mxu1 }
0x2356   :  { %v6821_v48 = vsel %vm706_vm3, %v6807_v50, 0.0  ;;  %v6803_v53 = vadd.f32 %v8085_v49, %v6707_v28  ;;  %v6797_v45 = vpop.f32.mrb[71].mxu1 }
0x2357   :  { %v6820_v54 = vsel %vm706_vm3, %v6806_v37, 0.0  ;;  %v6798_v4 = vadd.f32 %v6797_v45, %v6702_v39 }
0x2358   :  { %v6822_v61 = vadd.f32 %v6821_v48, %v6820_v54  ;;  %v6809_v5 = vadd.f32 %v6803_v53, %v10071_v24 }
0x2359   :  { %v6808_v9 = vadd.f32 %v6798_v4, %v10069_v11 }
0x235a   :  { %v6825_v52 = vsel %vm706_vm3, %v6809_v5, 0.0 }
0x235b   :  { %v6823_v63 = vsel %vm706_vm3, %v6808_v9, 0.0 }
0x235c   :  { %v6824_v38 = vadd.f32 %v6823_v63, %v6822_v61 }
0x235e   :  { %v6826_v13 = vadd.f32 %v6825_v52, %v6824_v38 }
0x2360   :  { %v6827_v21 = vrot.slane %v6826_v13, 4 }
0x2362   :  { %v6828_v32 = vadd.f32 %v6827_v21, %v6826_v13 }
0x2364   :  { %v6829_v46 = vrot.slane %v6828_v32, 2 }
0x2366   :  { %v6830_v10 = vadd.f32 %v6829_v46, %v6828_v32 }
0x2368   :  { %v6831_v12 = vrot.slane %v6830_v10, 1 }
0x236a   :  { %v6832_v18 = vadd.f32 %v6831_v12, %v6830_v10 }
0x236c   :  { %v6833_v20 = vmul.f32 0.03125, %v6832_v18 }
0x236e   :  { %v6834_v14 = vsub.f32 %v6806_v37, %v6833_v20  ;;  %v6835_v3 = vsub.f32 %v6807_v50, %v6833_v20  ;;  %v6836_v35 = vsub.f32 %v6808_v9, %v6833_v20  ;;  %v6837_v57 = vsub.f32 %v6809_v5, %v6833_v20  ;;  %v6904_v37 = vpop.permute.xlu0 %6903 }
0x2370   :  { %v6838_v24 = vmul.f32 %v6834_v14, %v6834_v14  ;;  %v6839_v40 = vmul.f32 %v6835_v3, %v6835_v3  ;;  %v6840_v11 = vmul.f32 %v6836_v35, %v6836_v35  ;;  %v6841_v60 = vmul.f32 %v6837_v57, %v6837_v57 }
0x2372   :  { %v6842_v16 = vsel %vm706_vm3, %v6838_v24, 0.0  ;;  %v6843_v30 = vsel %vm706_vm3, %v6839_v40, 0.0  ;;  %v6845_v34 = vsel %vm706_vm3, %v6840_v11, 0.0  ;;  %v6847_v33 = vsel %vm706_vm3, %v6841_v60, 0.0 }
0x2373   :  { %v6844_v19 = vadd.f32 %v6843_v30, %v6842_v16 }
0x2375   :  { %v6846_v6 = vadd.f32 %v6845_v34, %v6844_v19 }
0x2377   :  { %v6848_v43 = vadd.f32 %v6847_v33, %v6846_v6 }
0x2379   :  { %v6849_v2 = vrot.slane %v6848_v43, 4 }
0x237b   :  { %v6850_v7 = vadd.f32 %v6849_v2, %v6848_v43 }
0x237d   :  { %v6851_v58 = vrot.slane %v6850_v7, 2 }
0x237f   :  { %v6852_v59 = vadd.f32 %v6851_v58, %v6850_v7  ;;  %v6963_v58 = vpop.permute.xlu1 %6962 }
0x2381   :  { %v6853_v56 = vrot.slane %v6852_v59, 1 }
0x2383   :  { %v6854_v1 = vadd.f32 %v6853_v56, %v6852_v59  ;;  %v6968_v59 = vpop.permute.xlu0 %6967  ;;  %v6973_v56 = vpop.permute.xlu1 %6972 }
0x2385   :  { %v6855_v8 = vmul.f32 0.03125, %v6854_v1 }
0x2387   :  { %v6856_v25 = vadd.f32 1e-05, %v6855_v8 }
0x2389   :  { %8457 = vrsqrt.f32 %v6856_v25 }
0x2393   :  { %v8458_v55 = vpop.eup %8457 }
0x2394   :  { %v6858_v42 = vmul.f32 %v8458_v55, %v6834_v14  ;;  %v6859_v44 = vmul.f32 %v8458_v55, %v6835_v3  ;;  %v6860_v17 = vmul.f32 %v8458_v55, %v6836_v35  ;;  %v6861_v26 = vmul.f32 %v8458_v55, %v6837_v57 }
0x2396   :  { %v6882_v62 = vmul.f32 %v6865_v15, %v6858_v42  ;;  %v6883_v31 = vmul.f32 %v6870_v22, %v6859_v44  ;;  %v6884_v29 = vmul.f32 %v6875_v41, %v6860_v17  ;;  %v6885_v47 = vmul.f32 %v6880_v51, %v6861_v26  ;;  %v6978_v41 = vpop.permute.xlu0 %6977 }
0x2398   :  { %v6906_v36 = vadd.f32 %v6889_v23, %v6882_v62  ;;  %v6907_v50 = vadd.f32 %v6894_v0, %v6883_v31  ;;  %v6908_v28 = vadd.f32 %v6899_v27, %v6884_v29  ;;  %v6909_v49 = vadd.f32 %v6904_v37, %v6885_v47  ;;  %v6987_v23 = vpop.permute.xlu1 %6986 }
0x239a   :  { %v6918_v39 = vsel %vm706_vm3, %v6906_v36, 0.0  ;;  %v6919_v48 = vsel %vm706_vm3, %v6907_v50, 0.0  ;;  %v6921_v45 = vsel %vm706_vm3, %v6908_v28, 0.0  ;;  %v6923_v4 = vsel %vm706_vm3, %v6909_v49, 0.0  ;;  %v6992_v42 = vpop.permute.xlu0 %6991 }
0x239b   :  { %v6920_v53 = vadd.f32 %v6919_v48, %v6918_v39 }
0x239c   :  { %v6997_v26 = vpop.permute.xlu1 %6996 }
0x239d   :  { %v6922_v54 = vadd.f32 %v6921_v45, %v6920_v53 }
0x239e   :  { %v7002_v29 = vpop.permute.xlu0 %7001 }
0x239f   :  { %v6924_v61 = vadd.f32 %v6923_v4, %v6922_v54 }
0x23a1   :  { %v6925_v5 = vrot.slane %v6924_v61, 4 }
0x23a3   :  { %v6926_v9 = vadd.f32 %v6925_v5, %v6924_v61 }
0x23a5   :  { %v6927_v63 = vrot.slane %v6926_v9, 2 }
0x23a7   :  { %v6928_v38 = vadd.f32 %v6927_v63, %v6926_v9 }
0x23a9   :  { %v6929_v52 = vrot.slane %v6928_v38, 1 }
0x23ab   :  { %v6930_v13 = vadd.f32 %v6929_v52, %v6928_v38 }
0x23ad   :  { %v6931_v21 = vmul.f32 0.03125, %v6930_v13 }
0x23af   :  { %v6932_v32 = vsub.f32 %v6906_v36, %v6931_v21  ;;  %v6933_v46 = vsub.f32 %v6907_v50, %v6931_v21  ;;  %v6934_v10 = vsub.f32 %v6908_v28, %v6931_v21  ;;  %v6935_v12 = vsub.f32 %v6909_v49, %v6931_v21 }
0x23b1   :  { %v6936_v18 = vmul.f32 %v6932_v32, %v6932_v32  ;;  %v6937_v20 = vmul.f32 %v6933_v46, %v6933_v46  ;;  %v6938_v14 = vmul.f32 %v6934_v10, %v6934_v10  ;;  %v6939_v3 = vmul.f32 %v6935_v12, %v6935_v12 }
0x23b3   :  { %v6940_v35 = vsel %vm706_vm3, %v6936_v18, 0.0  ;;  %v6941_v57 = vsel %vm706_vm3, %v6937_v20, 0.0  ;;  %v6943_v40 = vsel %vm706_vm3, %v6938_v14, 0.0  ;;  %v6945_v60 = vsel %vm706_vm3, %v6939_v3, 0.0 }
0x23b4   :  { %v6942_v24 = vadd.f32 %v6941_v57, %v6940_v35 }
0x23b6   :  { %v6944_v11 = vadd.f32 %v6943_v40, %v6942_v24 }
0x23b8   :  { %v6946_v16 = vadd.f32 %v6945_v60, %v6944_v11 }
0x23ba   :  { %v6947_v30 = vrot.slane %v6946_v16, 4 }
0x23bc   :  { %v6948_v19 = vadd.f32 %v6947_v30, %v6946_v16 }
0x23be   :  { %v6949_v34 = vrot.slane %v6948_v19, 2 }
0x23c0   :  { %v6950_v6 = vadd.f32 %v6949_v34, %v6948_v19 }
0x23c2   :  { %v6951_v33 = vrot.slane %v6950_v6, 1 }
0x23c4   :  { %v6952_v43 = vadd.f32 %v6951_v33, %v6950_v6 }
0x23c6   :  { %v6953_v2 = vmul.f32 0.03125, %v6952_v43 }
0x23c8   :  { %v6954_v7 = vadd.f32 1e-05, %v6953_v2 }
0x23ca   :  { %8459 = vrsqrt.f32 %v6954_v7 }
0x23d4   :  { %v8460_v1 = vpop.eup %8459 }
0x23d5   :  { %v6958_v15 = vmul.f32 %v8460_v1, %v6934_v10  ;;  %v6956_v8 = vmul.f32 %v8460_v1, %v6932_v32  ;;  %v6957_v22 = vmul.f32 %v8460_v1, %v6933_v46  ;;  %v6959_v25 = vmul.f32 %v8460_v1, %v6935_v12 }
0x23d7   :  { %v6980_v51 = vmul.f32 %v6963_v58, %v6956_v8  ;;  %v6981_v0 = vmul.f32 %v6968_v59, %v6957_v22  ;;  %v6982_v17 = vmul.f32 %v6973_v56, %v6958_v15  ;;  %v6983_v31 = vmul.f32 %v6978_v41, %v6959_v25 }
0x23d9   :  { %v7004_v55 = vadd.f32 %v6987_v23, %v6980_v51  ;;  %v7005_v44 = vadd.f32 %v6992_v42, %v6981_v0  ;;  %v7006_v62 = vadd.f32 %v6997_v26, %v6982_v17  ;;  %v7007_v47 = vadd.f32 %v7002_v29, %v6983_v31 }
0x23db   :  { %7008 = vxpose.xlu1.b32.start [1/4] (short) (narrow) %v7004_v55, 16 }
0x23df   :  { %7009 = vxpose.xlu1.b32.cont [2/4] (short) (narrow) %v7005_v44, 16 }
0x23e3   :  { %7010 = vxpose.xlu1.b32.cont [3/4] (short) (narrow) %v7006_v62, 16 }
0x23e7   :  { %7011 = vxpose.xlu1.b32.end [4/4] (short) (narrow) %v7007_v47, 16 }
0x245b   :  { %v7024_v27 = vpop.trf.xlu1 }
0x245c   :  { %7040 = vst.msk [vmem:[#allocation2] sm:$0xff] %vm333_vm0, %v7024_v27 }
0x245f   :  { %v7025_v36 = vpop.trf.xlu1 }
0x2460   :  { %7041 = vst.msk [vmem:[#allocation2 + $0x8] sm:$0xff] %vm333_vm0, %v7025_v36 }
0x2461   :  { %8472 = shalt.err (!%p8469_p4)
}
0x2462   :  { %s8473_s28 = scalar_lea.hbm %s10179_s24, 256 }
0x2463   :  { %p8474_p5 = scmp.ne.s32.totalorder %s10179_s24, %s8473_s28  ;;  %p8477_p6 = scmp.lt.u32.totalorder %s8473_s28, %s10179_s24 }
0x2465   :  { %p8479_p7 = pnand %p8477_p6, %p8474_p5 }
0x2467   :  { %8482 = shalt.err (!%p8479_p7)
}
0x2468   :  { %s8490_s17 = smov 128   ;;  %s8491_s14 = smov 8  }
0x2469   :  { %7053 = dma.vmem_to_hbm [thread:$0]  %s7048_s19, 256, %s10179_s24, [#allocation3], %s8490_s17, %s8490_s17, %s8491_s14  }
0x246a   :  { %8483 = dma.done.wait [#allocation3], 256  }
0x246b   :  { %8484 = vsyncadd [#allocation3], 4294967040 }
0x246c   :  { %7057 = vsyncpa [#allocation3], 1 }

</bundles_post_ra>
